<compile_context>
chip_gen: v7x
topology: tpu7x:2x2x1
jax: 0.10.0
libtpu: 0.0.40
codegen_flags: <defaults>
</compile_context>

<pallas_src>
import jax
import jax.numpy as jnp
from jax.experimental import pallas as pl
from jax.experimental.pallas import tpu as pltpu


# ----------------------------------------------------------------------------
# Pallas kernel: the whole middle flow (8 residual blocks x 3 ReLU+SepConv+BN)
# ----------------------------------------------------------------------------
def _middle_flow_kernel(x_ref, wdw_ref, wpw_ref, bias_ref, o_ref,
                        resid_ref, pad0_ref, pad1_ref, dw_ref):
    # x_ref    : (1, H, W, C)   input image for this batch element (read at b==0)
    # wdw_ref  : (1, 3, 9, C)   depthwise 3x3 weights (flat taps) of block b
    # wpw_ref  : (1, 3, C, C)   pointwise weights (Cin, Cout), BN scale folded, bf16
    # bias_ref : (1, 3, 1, C)   folded BatchNorm bias (f32)
    # o_ref    : (1, H, W, C)   final output (written at b == last)
    # resid_ref: (H, W, C) f32  residual carry, resident across the block axis
    # pad*_ref : (HP+2, W, C)   ping-pong activation scratch with zero halo rows
    # dw_ref   : (2*TH*W, C)    bf16 staging of the depthwise output for the MXU
    _, H, W, C = x_ref.shape
    TH = 8
    HP = pad0_ref.shape[0] - 2            # H padded up to a multiple of TH
    nstrip = HP // TH
    b = pl.program_id(1)

    # Static strip schedule: (row start, number of valid rows) per 8-row strip,
    # and matmul groups of up to 2 strips (M = 2*TH*W fills the 256-wide MXU).
    strips = [(i * TH, min(TH, H - i * TH)) for i in range(nstrip)]
    groups = []
    i = 0
    while i < nstrip:
        g = min(2, nstrip - i)
        groups.append((i, g))
        i += g

    # Block 0: pull the image into the resident f32 residual buffer.
    @pl.when(b == 0)
    def _():
        resid_ref[...] = x_ref[0, :, :, :].astype(jnp.float32)

    # Zero only the halo / tail-padding rows of the ping-pong scratch
    # (interior valid rows are fully rewritten every step).
    zcnt = HP + 1 - H                     # rows H+1 .. HP+1 (>= 1)
    pad0_ref[0:1, :, :] = jnp.zeros((1, W, C), jnp.float32)
    pad1_ref[0:1, :, :] = jnp.zeros((1, W, C), jnp.float32)
    pad0_ref[H + 1:HP + 2, :, :] = jnp.zeros((zcnt, W, C), jnp.float32)
    pad1_ref[H + 1:HP + 2, :, :] = jnp.zeros((zcnt, W, C), jnp.float32)

    # W-boundary validity folded into the +-1 tap weights (no per-tile selects).
    colv = jax.lax.broadcasted_iota(jnp.int32, (1, W, 1), 1)
    left_mask = (colv >= 1).astype(jnp.float32)       # tap reads x[.., w-1, ..]
    right_mask = (colv <= W - 2).astype(jnp.float32)  # tap reads x[.., w+1, ..]

    # Stage ReLU(resid) into pad0's interior.
    for (r0, rows) in strips:
        pad0_ref[r0 + 1:r0 + 1 + rows, :, :] = jnp.maximum(
            resid_ref[r0:r0 + rows, :, :], 0.0)

    def run_step(s, pad_in, write_fn):
        wdw_s = wdw_ref[0, s, :, :]                     # (9, C) f32
        wpw_s = wpw_ref[0, s, :, :]                     # (C, C) bf16
        bias_s = bias_ref[0, s, :, :]                   # (1, C) f32

        # Broadcast tap weights with the W-boundary mask pre-folded in.
        taps = []
        for k in range(9):
            w = wdw_s[k].reshape(1, 1, C)
            dw = k % 3
            if dw == 0:
                w = w * left_mask                        # (1, W, C)
            elif dw == 2:
                w = w * right_mask                       # (1, W, C)
            taps.append(w)

        for (g0, gsz) in groups:
            # Depthwise 3x3 per 8-row strip (f32 VPU), staged bf16 for the MXU.
            for j in range(gsz):
                r0 = (g0 + j) * TH
                acc = None
                for dh in range(3):
                    # Aligned read: only the (major) row offset changes; the
                    # zero halo rows handle the H boundary.
                    band = pad_in[r0 + dh:r0 + dh + TH, :, :]
                    for dw in range(3):
                        if dw == 1:
                            t = band
                        elif dw == 0:                    # needs x[.., w-1, ..]
                            t = pltpu.roll(band, shift=1, axis=1)
                        else:                            # needs x[.., w+1, ..]
                            t = pltpu.roll(band, shift=W - 1, axis=1)
                        term = t * taps[dh * 3 + dw]
                        acc = term if acc is None else acc + term
                dw_ref[j * TH * W:(j + 1) * TH * W, :] = (
                    acc.reshape(TH * W, C).astype(jnp.bfloat16))

            # Pointwise 1x1 conv: one bf16 MXU matmul per group, f32 accumulate.
            m = gsz * TH * W
            y = jnp.dot(dw_ref[0:m, :], wpw_s,
                        preferred_element_type=jnp.float32)
            y = y + bias_s                               # folded BN bias

            for j in range(gsz):
                r0, rows = strips[g0 + j]
                yj = y[j * TH * W:(j + 1) * TH * W].reshape(TH, W, C)
                write_fn(r0, rows, yj)

    def _to_pad1(r0, rows, y):        # ReLU feeding the next SepConv step
        pad1_ref[r0 + 1:r0 + 1 + rows, :, :] = jnp.maximum(y[:rows], 0.0)

    def _to_pad0(r0, rows, y):
        pad0_ref[r0 + 1:r0 + 1 + rows, :, :] = jnp.maximum(y[:rows], 0.0)

    def _to_resid(r0, rows, y):       # final step: residual accumulate, no ReLU
        resid_ref[r0:r0 + rows, :, :] = (
            resid_ref[r0:r0 + rows, :, :] + y[:rows])

    # ping-pong: pad0 -> pad1 -> pad0 -> residual accumulate
    run_step(0, pad0_ref, _to_pad1)
    run_step(1, pad1_ref, _to_pad0)
    run_step(2, pad0_ref, _to_resid)

    # Last block: write the carried residual back to HBM once.
    @pl.when(b == pl.num_programs(1) - 1)
    def _():
        o_ref[0, :, :, :] = resid_ref[...].astype(o_ref.dtype)


def middle_flow_fused(x_nhwc, wdw, wpw, bias):
    """Whole middle flow (8 residual blocks) in one pallas_call."""
    N, H, W, C = x_nhwc.shape
    B = wdw.shape[0]                      # number of residual blocks (8)
    TH = 8
    HP = pl.cdiv(H, TH) * TH
    return pl.pallas_call(
        _middle_flow_kernel,
        out_shape=jax.ShapeDtypeStruct((N, H, W, C), x_nhwc.dtype),
        grid_spec=pltpu.PrefetchScalarGridSpec(
            num_scalar_prefetch=0,
            grid=(N, B),
            in_specs=[
                pl.BlockSpec((1, H, W, C), lambda n, b: (n, 0, 0, 0)),
                pl.BlockSpec((1, 3, 9, C), lambda n, b: (b, 0, 0, 0)),
                pl.BlockSpec((1, 3, C, C), lambda n, b: (b, 0, 0, 0)),
                pl.BlockSpec((1, 3, 1, C), lambda n, b: (b, 0, 0, 0)),
            ],
            out_specs=pl.BlockSpec((1, H, W, C), lambda n, b: (n, 0, 0, 0)),
            scratch_shapes=[
                pltpu.VMEM((H, W, C), jnp.float32),         # resident residual
                pltpu.VMEM((HP + 2, W, C), jnp.float32),    # ping
                pltpu.VMEM((HP + 2, W, C), jnp.float32),    # pong
                pltpu.VMEM((2 * TH * W, C), jnp.bfloat16),  # MXU staging
            ],
        ),
        compiler_params=pltpu.CompilerParams(
            dimension_semantics=("parallel", "arbitrary"),
            vmem_limit_bytes=48 * 1024 * 1024,
        ),
    )(x_nhwc, wdw, wpw, bias)


# ----------------------------------------------------------------------------
# MiddleFlow forward: NCHW glue + parameter stacking / BN-scale folding
# ----------------------------------------------------------------------------
def middle_flow(x_nchw, params):
    x = jnp.transpose(x_nchw, (0, 2, 3, 1))            # NCHW -> NHWC (glue only)
    # Stack all 8 blocks x 3 steps; fold BN scale into the pointwise weight:
    #   (dw @ W) * scale + bias == dw @ (W * scale) + bias
    wdw = jnp.stack([jnp.stack([w for (w, _, _, _) in blk]) for blk in params])
    wpw = jnp.stack([jnp.stack([(w * sc).astype(jnp.bfloat16)
                                for (_, w, sc, _) in blk]) for blk in params])
    bias = jnp.stack([jnp.stack([bi for (_, _, _, bi) in blk]) for blk in params])
    y = middle_flow_fused(x, wdw, wpw, bias)
    return jnp.transpose(y, (0, 3, 1, 2))              # back to NCHW


# ----------------------------------------------------------------------------
# Deterministic synthetic parameters (module __init__ shapes, scaled down)
# ----------------------------------------------------------------------------
def init_params(key, C, num_blocks=8, convs_per_block=3):
    eps = 1e-5
    params = []
    for _ in range(num_blocks):
        block = []
        for _ in range(convs_per_block):
            key, k1, k2, k3, k4, k5, k6 = jax.random.split(key, 7)
            # depthwise weight: torch (C,1,3,3) stored here as (9, C)
            wdw = jax.random.normal(k1, (9, C), jnp.float32) * 0.1
            # pointwise weight: torch (Cout,Cin,1,1) stored as (Cin, Cout)
            wpw = jax.random.normal(k2, (C, C), jnp.float32) * (0.1 / float(C) ** 0.5)
            # BatchNorm parameters / running stats (inference-mode fold)
            gamma = 1.0 + 0.05 * jax.random.normal(k3, (C,), jnp.float32)
            beta = 0.05 * jax.random.normal(k4, (C,), jnp.float32)
            mean = 0.02 * jax.random.normal(k5, (C,), jnp.float32)
            var = 1.0 + 0.1 * jax.random.uniform(k6, (C,), jnp.float32)
            inv_std = gamma / jnp.sqrt(var + eps)
            scale = inv_std.reshape(1, C)
            bias = (beta - mean * inv_std).reshape(1, C)
            block.append((wdw, wpw, scale, bias))
        params.append(block)
    return params


# ----------------------------------------------------------------------------
# Pure-JAX reference (lax.conv, unfused BN, f32) for correctness checking
# ----------------------------------------------------------------------------
def _reference(x_nchw, params):
    x = x_nchw
    C = x.shape[1]
    for block in params:
        out = x
        for (wdw, wpw, scale, bias) in block:
            out = jnp.maximum(out, 0.0)
            k_dw = wdw.reshape(3, 3, C).transpose(2, 0, 1)[:, None]   # (C,1,3,3)
            out = jax.lax.conv_general_dilated(
                out, k_dw, window_strides=(1, 1), padding=((1, 1), (1, 1)),
                dimension_numbers=("NCHW", "OIHW", "NCHW"),
                feature_group_count=C)
            k_pw = wpw.T[:, :, None, None]                             # (Cout,Cin,1,1)
            out = jax.lax.conv_general_dilated(
                out, k_pw, window_strides=(1, 1), padding="VALID",
                dimension_numbers=("NCHW", "OIHW", "NCHW"))
            out = out * scale.reshape(1, C, 1, 1) + bias.reshape(1, C, 1, 1)
        x = x + out
    return x


if __name__ == "__main__":
    # Small demo shapes: C=128 (lane-dense stand-in for Xception's 728, which
    # at real size would be padded to 768 = 6*128), H=W=16, N=2.
    N, C, H, W = 2, 128, 16, 16
    key = jax.random.PRNGKey(0)
    kx, kp = jax.random.split(key)
    x = jax.random.normal(kx, (N, C, H, W), jnp.float32)   # NCHW like PyTorch
    params = init_params(kp, C)

    out = jax.jit(middle_flow)(x, params)
    out = jax.block_until_ready(out)

    assert out.shape == x.shape and out.dtype == x.dtype
    ref = _reference(x, params)
    # Tolerance loosened slightly for the bf16 MXU path (f32 accumulation).
    if not jnp.allclose(out, ref, atol=1e-2, rtol=1e-2):
        raise AssertionError(
            f"kernel/reference mismatch, max abs err = {jnp.max(jnp.abs(out - ref))}")

    print("KERNEL_OK")
</pallas_src>

<mosaic_0001>
module attributes {stable_mosaic.version = 11 : i64} {
  func.func @_middle_flow_kernel(%arg0: i32, %arg1: i32, %arg2: memref<1x16x16x128xf32, #tpu.memory_space<vmem>>, %arg3: memref<1x3x9x128xf32, #tpu.memory_space<vmem>>, %arg4: memref<1x3x128x128xbf16, #tpu.memory_space<vmem>>, %arg5: memref<1x3x1x128xf32, #tpu.memory_space<vmem>>, %arg6: memref<1x16x16x128xf32, #tpu.memory_space<vmem>>, %arg7: memref<16x16x128xf32, #tpu.memory_space<vmem>>, %arg8: memref<18x16x128xf32, #tpu.memory_space<vmem>>, %arg9: memref<18x16x128xf32, #tpu.memory_space<vmem>>, %arg10: memref<256x128xbf16, #tpu.memory_space<vmem>>) attributes {dimension_semantics = [#tpu.dimension_semantics<parallel>, #tpu.dimension_semantics<arbitrary>], iteration_bounds = array<i64: 2, 8>, scalar_prefetch = 0 : i64, scratch_operands = 4 : i64, tpu.core_type = #tpu.core_type<tc>, window_params = [{transform_indices = @transform_0, window_bounds = array<i64: 1, 16, 16, 128>}, {transform_indices = @transform_1, window_bounds = array<i64: 1, 3, 9, 128>}, {transform_indices = @transform_2, window_bounds = array<i64: 1, 3, 128, 128>}, {transform_indices = @transform_3, window_bounds = array<i64: 1, 3, 1, 128>}, {transform_indices = @transform_4, window_bounds = array<i64: 1, 16, 16, 128>}]} {
    %c0_i32 = arith.constant 0 : i32
    %0 = arith.cmpi eq, %arg1, %c0_i32 : i32
    %1 = arith.extui %0 : i1 to i32
    %c0_i32_0 = arith.constant 0 : i32
    %2 = arith.cmpi ne, %1, %c0_i32_0 : i32
    scf.if %2 {
      %c0_197 = arith.constant 0 : index
      %c0_198 = arith.constant 0 : index
      %c0_199 = arith.constant 0 : index
      %c0_200 = arith.constant 0 : index
      %454 = vector.load %arg2[%c0_197, %c0_198, %c0_199, %c0_200] : memref<1x16x16x128xf32, #tpu.memory_space<vmem>>, vector<1x16x16x128xf32>
      %455 = vector.shape_cast %454 : vector<1x16x16x128xf32> to vector<16x16x128xf32>
      %c0_201 = arith.constant 0 : index
      %c0_202 = arith.constant 0 : index
      %c0_203 = arith.constant 0 : index
      %456 = vector.load %arg7[%c0_201, %c0_202, %c0_203] : memref<16x16x128xf32, #tpu.memory_space<vmem>>, vector<16x16x128xf32>
      tpu.vector_store %arg7[%c0_201, %c0_202, %c0_203], %455 {strides = array<i32>} : memref<16x16x128xf32, #tpu.memory_space<vmem>>, vector<16x16x128xf32>,
    } else {
    }
    %cst = arith.constant 0.000000e+00 : f32
    %3 = vector.broadcast %cst : f32 to vector<1x16x128xf32>
    %c0 = arith.constant 0 : index
    %c0_1 = arith.constant 0 : index
    %c0_2 = arith.constant 0 : index
    %4 = vector.load %arg8[%c0, %c0_1, %c0_2] : memref<18x16x128xf32, #tpu.memory_space<vmem>>, vector<1x16x128xf32>
    tpu.vector_store %arg8[%c0, %c0_1, %c0_2], %3 {strides = array<i32>} : memref<18x16x128xf32, #tpu.memory_space<vmem>>, vector<1x16x128xf32>,
    %cst_3 = arith.constant 0.000000e+00 : f32
    %5 = vector.broadcast %cst_3 : f32 to vector<1x16x128xf32>
    %c0_4 = arith.constant 0 : index
    %c0_5 = arith.constant 0 : index
    %c0_6 = arith.constant 0 : index
    %6 = vector.load %arg9[%c0_4, %c0_5, %c0_6] : memref<18x16x128xf32, #tpu.memory_space<vmem>>, vector<1x16x128xf32>
    tpu.vector_store %arg9[%c0_4, %c0_5, %c0_6], %5 {strides = array<i32>} : memref<18x16x128xf32, #tpu.memory_space<vmem>>, vector<1x16x128xf32>,
    %cst_7 = arith.constant 0.000000e+00 : f32
    %7 = vector.broadcast %cst_7 : f32 to vector<1x16x128xf32>
    %c17 = arith.constant 17 : index
    %c0_8 = arith.constant 0 : index
    %c0_9 = arith.constant 0 : index
    %8 = vector.load %arg8[%c17, %c0_8, %c0_9] : memref<18x16x128xf32, #tpu.memory_space<vmem>>, vector<1x16x128xf32>
    tpu.vector_store %arg8[%c17, %c0_8, %c0_9], %7 {strides = array<i32>} : memref<18x16x128xf32, #tpu.memory_space<vmem>>, vector<1x16x128xf32>,
    %cst_10 = arith.constant 0.000000e+00 : f32
    %9 = vector.broadcast %cst_10 : f32 to vector<1x16x128xf32>
    %c17_11 = arith.constant 17 : index
    %c0_12 = arith.constant 0 : index
    %c0_13 = arith.constant 0 : index
    %10 = vector.load %arg9[%c17_11, %c0_12, %c0_13] : memref<18x16x128xf32, #tpu.memory_space<vmem>>, vector<1x16x128xf32>
    tpu.vector_store %arg9[%c17_11, %c0_12, %c0_13], %9 {strides = array<i32>} : memref<18x16x128xf32, #tpu.memory_space<vmem>>, vector<1x16x128xf32>,
    %11 = tpu.iota {dimensions = array<i32: 1>} : vector<1x16x1xi32>
    %c1_i32 = arith.constant 1 : i32
    %12 = vector.broadcast %c1_i32 : i32 to vector<1x16x1xi32>
    %13 = arith.cmpi sge, %11, %12 : vector<1x16x1xi32>
    %14 = arith.extui %13 : vector<1x16x1xi1> to vector<1x16x1xi32>
    %15 = arith.sitofp %14 : vector<1x16x1xi32> to vector<1x16x1xf32>
    %c14_i32 = arith.constant 14 : i32
    %16 = vector.broadcast %c14_i32 : i32 to vector<1x16x1xi32>
    %17 = arith.cmpi sle, %11, %16 : vector<1x16x1xi32>
    %18 = arith.extui %17 : vector<1x16x1xi1> to vector<1x16x1xi32>
    %19 = arith.sitofp %18 : vector<1x16x1xi32> to vector<1x16x1xf32>
    %c0_14 = arith.constant 0 : index
    %c0_15 = arith.constant 0 : index
    %c0_16 = arith.constant 0 : index
    %20 = vector.load %arg7[%c0_14, %c0_15, %c0_16] : memref<16x16x128xf32, #tpu.memory_space<vmem>>, vector<8x16x128xf32>
    %cst_17 = arith.constant 0.000000e+00 : f32
    %21 = vector.broadcast %cst_17 : f32 to vector<8x16x128xf32>
    %22 = arith.maximumf %20, %21 : vector<8x16x128xf32>
    %c1 = arith.constant 1 : index
    %c0_18 = arith.constant 0 : index
    %c0_19 = arith.constant 0 : index
    %23 = vector.load %arg8[%c1, %c0_18, %c0_19] : memref<18x16x128xf32, #tpu.memory_space<vmem>>, vector<8x16x128xf32>
    tpu.vector_store %arg8[%c1, %c0_18, %c0_19], %22 {strides = array<i32>} : memref<18x16x128xf32, #tpu.memory_space<vmem>>, vector<8x16x128xf32>,
    %c8 = arith.constant 8 : index
    %c0_20 = arith.constant 0 : index
    %c0_21 = arith.constant 0 : index
    %24 = vector.load %arg7[%c8, %c0_20, %c0_21] : memref<16x16x128xf32, #tpu.memory_space<vmem>>, vector<8x16x128xf32>
    %cst_22 = arith.constant 0.000000e+00 : f32
    %25 = vector.broadcast %cst_22 : f32 to vector<8x16x128xf32>
    %26 = arith.maximumf %24, %25 : vector<8x16x128xf32>
    %c9 = arith.constant 9 : index
    %c0_23 = arith.constant 0 : index
    %c0_24 = arith.constant 0 : index
    %27 = vector.load %arg8[%c9, %c0_23, %c0_24] : memref<18x16x128xf32, #tpu.memory_space<vmem>>, vector<8x16x128xf32>
    tpu.vector_store %arg8[%c9, %c0_23, %c0_24], %26 {strides = array<i32>} : memref<18x16x128xf32, #tpu.memory_space<vmem>>, vector<8x16x128xf32>,
    %c0_25 = arith.constant 0 : index
    %c0_26 = arith.constant 0 : index
    %c0_27 = arith.constant 0 : index
    %c0_28 = arith.constant 0 : index
    %28 = vector.load %arg3[%c0_25, %c0_26, %c0_27, %c0_28] : memref<1x3x9x128xf32, #tpu.memory_space<vmem>>, vector<1x1x9x128xf32>
    %29 = vector.shape_cast %28 : vector<1x1x9x128xf32> to vector<9x128xf32>
    %c0_29 = arith.constant 0 : index
    %c0_30 = arith.constant 0 : index
    %c0_31 = arith.constant 0 : index
    %c0_32 = arith.constant 0 : index
    %30 = vector.load %arg4[%c0_29, %c0_30, %c0_31, %c0_32] : memref<1x3x128x128xbf16, #tpu.memory_space<vmem>>, vector<1x1x128x128xbf16>
    %31 = vector.shape_cast %30 : vector<1x1x128x128xbf16> to vector<128x128xbf16>
    %c0_33 = arith.constant 0 : index
    %c0_34 = arith.constant 0 : index
    %c0_35 = arith.constant 0 : index
    %c0_36 = arith.constant 0 : index
    %32 = vector.load %arg5[%c0_33, %c0_34, %c0_35, %c0_36] : memref<1x3x1x128xf32, #tpu.memory_space<vmem>>, vector<1x1x1x128xf32>
    %33 = vector.shape_cast %32 : vector<1x1x1x128xf32> to vector<1x128xf32>
    %34 = vector.extract_strided_slice %29 {offsets = [0, 0], sizes = [1, 128], strides = [1, 1]} : vector<9x128xf32> to vector<1x128xf32>
    %35 = vector.shape_cast %34 : vector<1x128xf32> to vector<128xf32>
    %36 = vector.shape_cast %35 : vector<128xf32> to vector<1x1x128xf32>
    %37 = vector.broadcast %36 : vector<1x1x128xf32> to vector<1x16x128xf32>
    %38 = vector.broadcast %15 : vector<1x16x1xf32> to vector<1x16x128xf32>
    %39 = arith.mulf %37, %38 : vector<1x16x128xf32>
    %40 = vector.extract_strided_slice %29 {offsets = [1, 0], sizes = [1, 128], strides = [1, 1]} : vector<9x128xf32> to vector<1x128xf32>
    %41 = vector.shape_cast %40 : vector<1x128xf32> to vector<128xf32>
    %42 = vector.shape_cast %41 : vector<128xf32> to vector<1x1x128xf32>
    %43 = vector.extract_strided_slice %29 {offsets = [2, 0], sizes = [1, 128], strides = [1, 1]} : vector<9x128xf32> to vector<1x128xf32>
    %44 = vector.shape_cast %43 : vector<1x128xf32> to vector<128xf32>
    %45 = vector.shape_cast %44 : vector<128xf32> to vector<1x1x128xf32>
    %46 = vector.broadcast %45 : vector<1x1x128xf32> to vector<1x16x128xf32>
    %47 = vector.broadcast %19 : vector<1x16x1xf32> to vector<1x16x128xf32>
    %48 = arith.mulf %46, %47 : vector<1x16x128xf32>
    %49 = vector.extract_strided_slice %29 {offsets = [3, 0], sizes = [1, 128], strides = [1, 1]} : vector<9x128xf32> to vector<1x128xf32>
    %50 = vector.shape_cast %49 : vector<1x128xf32> to vector<128xf32>
    %51 = vector.shape_cast %50 : vector<128xf32> to vector<1x1x128xf32>
    %52 = vector.broadcast %51 : vector<1x1x128xf32> to vector<1x16x128xf32>
    %53 = vector.broadcast %15 : vector<1x16x1xf32> to vector<1x16x128xf32>
    %54 = arith.mulf %52, %53 : vector<1x16x128xf32>
    %55 = vector.extract_strided_slice %29 {offsets = [4, 0], sizes = [1, 128], strides = [1, 1]} : vector<9x128xf32> to vector<1x128xf32>
    %56 = vector.shape_cast %55 : vector<1x128xf32> to vector<128xf32>
    %57 = vector.shape_cast %56 : vector<128xf32> to vector<1x1x128xf32>
    %58 = vector.extract_strided_slice %29 {offsets = [5, 0], sizes = [1, 128], strides = [1, 1]} : vector<9x128xf32> to vector<1x128xf32>
    %59 = vector.shape_cast %58 : vector<1x128xf32> to vector<128xf32>
    %60 = vector.shape_cast %59 : vector<128xf32> to vector<1x1x128xf32>
    %61 = vector.broadcast %60 : vector<1x1x128xf32> to vector<1x16x128xf32>
    %62 = vector.broadcast %19 : vector<1x16x1xf32> to vector<1x16x128xf32>
    %63 = arith.mulf %61, %62 : vector<1x16x128xf32>
    %64 = vector.extract_strided_slice %29 {offsets = [6, 0], sizes = [1, 128], strides = [1, 1]} : vector<9x128xf32> to vector<1x128xf32>
    %65 = vector.shape_cast %64 : vector<1x128xf32> to vector<128xf32>
    %66 = vector.shape_cast %65 : vector<128xf32> to vector<1x1x128xf32>
    %67 = vector.broadcast %66 : vector<1x1x128xf32> to vector<1x16x128xf32>
    %68 = vector.broadcast %15 : vector<1x16x1xf32> to vector<1x16x128xf32>
    %69 = arith.mulf %67, %68 : vector<1x16x128xf32>
    %70 = vector.extract_strided_slice %29 {offsets = [7, 0], sizes = [1, 128], strides = [1, 1]} : vector<9x128xf32> to vector<1x128xf32>
    %71 = vector.shape_cast %70 : vector<1x128xf32> to vector<128xf32>
    %72 = vector.shape_cast %71 : vector<128xf32> to vector<1x1x128xf32>
    %73 = vector.extract_strided_slice %29 {offsets = [8, 0], sizes = [1, 128], strides = [1, 1]} : vector<9x128xf32> to vector<1x128xf32>
    %74 = vector.shape_cast %73 : vector<1x128xf32> to vector<128xf32>
    %75 = vector.shape_cast %74 : vector<128xf32> to vector<1x1x128xf32>
    %76 = vector.broadcast %75 : vector<1x1x128xf32> to vector<1x16x128xf32>
    %77 = vector.broadcast %19 : vector<1x16x1xf32> to vector<1x16x128xf32>
    %78 = arith.mulf %76, %77 : vector<1x16x128xf32>
    %c0_37 = arith.constant 0 : index
    %c0_38 = arith.constant 0 : index
    %c0_39 = arith.constant 0 : index
    %79 = vector.load %arg8[%c0_37, %c0_38, %c0_39] : memref<18x16x128xf32, #tpu.memory_space<vmem>>, vector<8x16x128xf32>
    %c1_i32_40 = arith.constant 1 : i32
    %80 = tpu.dynamic_rotate %79 by %c1_i32_40 dim 1 : vector<8x16x128xf32>, i32 -> vector<8x16x128xf32>
    %81 = vector.broadcast %39 : vector<1x16x128xf32> to vector<8x16x128xf32>
    %82 = arith.mulf %80, %81 : vector<8x16x128xf32>
    %83 = vector.broadcast %42 : vector<1x1x128xf32> to vector<8x16x128xf32>
    %84 = arith.mulf %79, %83 : vector<8x16x128xf32>
    %85 = arith.addf %82, %84 : vector<8x16x128xf32>
    %c15_i32 = arith.constant 15 : i32
    %86 = tpu.dynamic_rotate %79 by %c15_i32 dim 1 : vector<8x16x128xf32>, i32 -> vector<8x16x128xf32>
    %87 = vector.broadcast %48 : vector<1x16x128xf32> to vector<8x16x128xf32>
    %88 = arith.mulf %86, %87 : vector<8x16x128xf32>
    %89 = arith.addf %85, %88 : vector<8x16x128xf32>
    %c1_41 = arith.constant 1 : index
    %c0_42 = arith.constant 0 : index
    %c0_43 = arith.constant 0 : index
    %90 = vector.load %arg8[%c1_41, %c0_42, %c0_43] : memref<18x16x128xf32, #tpu.memory_space<vmem>>, vector<8x16x128xf32>
    %c1_i32_44 = arith.constant 1 : i32
    %91 = tpu.dynamic_rotate %90 by %c1_i32_44 dim 1 : vector<8x16x128xf32>, i32 -> vector<8x16x128xf32>
    %92 = vector.broadcast %54 : vector<1x16x128xf32> to vector<8x16x128xf32>
    %93 = arith.mulf %91, %92 : vector<8x16x128xf32>
    %94 = arith.addf %89, %93 : vector<8x16x128xf32>
    %95 = vector.broadcast %57 : vector<1x1x128xf32> to vector<8x16x128xf32>
    %96 = arith.mulf %90, %95 : vector<8x16x128xf32>
    %97 = arith.addf %94, %96 : vector<8x16x128xf32>
    %c15_i32_45 = arith.constant 15 : i32
    %98 = tpu.dynamic_rotate %90 by %c15_i32_45 dim 1 : vector<8x16x128xf32>, i32 -> vector<8x16x128xf32>
    %99 = vector.broadcast %63 : vector<1x16x128xf32> to vector<8x16x128xf32>
    %100 = arith.mulf %98, %99 : vector<8x16x128xf32>
    %101 = arith.addf %97, %100 : vector<8x16x128xf32>
    %c2 = arith.constant 2 : index
    %c0_46 = arith.constant 0 : index
    %c0_47 = arith.constant 0 : index
    %102 = vector.load %arg8[%c2, %c0_46, %c0_47] : memref<18x16x128xf32, #tpu.memory_space<vmem>>, vector<8x16x128xf32>
    %c1_i32_48 = arith.constant 1 : i32
    %103 = tpu.dynamic_rotate %102 by %c1_i32_48 dim 1 : vector<8x16x128xf32>, i32 -> vector<8x16x128xf32>
    %104 = vector.broadcast %69 : vector<1x16x128xf32> to vector<8x16x128xf32>
    %105 = arith.mulf %103, %104 : vector<8x16x128xf32>
    %106 = arith.addf %101, %105 : vector<8x16x128xf32>
    %107 = vector.broadcast %72 : vector<1x1x128xf32> to vector<8x16x128xf32>
    %108 = arith.mulf %102, %107 : vector<8x16x128xf32>
    %109 = arith.addf %106, %108 : vector<8x16x128xf32>
    %c15_i32_49 = arith.constant 15 : i32
    %110 = tpu.dynamic_rotate %102 by %c15_i32_49 dim 1 : vector<8x16x128xf32>, i32 -> vector<8x16x128xf32>
    %111 = vector.broadcast %78 : vector<1x16x128xf32> to vector<8x16x128xf32>
    %112 = arith.mulf %110, %111 : vector<8x16x128xf32>
    %113 = arith.addf %109, %112 : vector<8x16x128xf32>
    %114 = vector.shape_cast %113 : vector<8x16x128xf32> to vector<128x128xf32>
    %115 = arith.truncf %114 : vector<128x128xf32> to vector<128x128xbf16>
    %c0_50 = arith.constant 0 : index
    %c0_51 = arith.constant 0 : index
    %116 = vector.load %arg10[%c0_50, %c0_51] : memref<256x128xbf16, #tpu.memory_space<vmem>>, vector<128x128xbf16>
    tpu.vector_store %arg10[%c0_50, %c0_51], %115 {strides = array<i32>} : memref<256x128xbf16, #tpu.memory_space<vmem>>, vector<128x128xbf16>,
    %c8_52 = arith.constant 8 : index
    %c0_53 = arith.constant 0 : index
    %c0_54 = arith.constant 0 : index
    %117 = vector.load %arg8[%c8_52, %c0_53, %c0_54] : memref<18x16x128xf32, #tpu.memory_space<vmem>>, vector<8x16x128xf32>
    %c1_i32_55 = arith.constant 1 : i32
    %118 = tpu.dynamic_rotate %117 by %c1_i32_55 dim 1 : vector<8x16x128xf32>, i32 -> vector<8x16x128xf32>
    %119 = vector.broadcast %39 : vector<1x16x128xf32> to vector<8x16x128xf32>
    %120 = arith.mulf %118, %119 : vector<8x16x128xf32>
    %121 = vector.broadcast %42 : vector<1x1x128xf32> to vector<8x16x128xf32>
    %122 = arith.mulf %117, %121 : vector<8x16x128xf32>
    %123 = arith.addf %120, %122 : vector<8x16x128xf32>
    %c15_i32_56 = arith.constant 15 : i32
    %124 = tpu.dynamic_rotate %117 by %c15_i32_56 dim 1 : vector<8x16x128xf32>, i32 -> vector<8x16x128xf32>
    %125 = vector.broadcast %48 : vector<1x16x128xf32> to vector<8x16x128xf32>
    %126 = arith.mulf %124, %125 : vector<8x16x128xf32>
    %127 = arith.addf %123, %126 : vector<8x16x128xf32>
    %c9_57 = arith.constant 9 : index
    %c0_58 = arith.constant 0 : index
    %c0_59 = arith.constant 0 : index
    %128 = vector.load %arg8[%c9_57, %c0_58, %c0_59] : memref<18x16x128xf32, #tpu.memory_space<vmem>>, vector<8x16x128xf32>
    %c1_i32_60 = arith.constant 1 : i32
    %129 = tpu.dynamic_rotate %128 by %c1_i32_60 dim 1 : vector<8x16x128xf32>, i32 -> vector<8x16x128xf32>
    %130 = vector.broadcast %54 : vector<1x16x128xf32> to vector<8x16x128xf32>
    %131 = arith.mulf %129, %130 : vector<8x16x128xf32>
    %132 = arith.addf %127, %131 : vector<8x16x128xf32>
    %133 = vector.broadcast %57 : vector<1x1x128xf32> to vector<8x16x128xf32>
    %134 = arith.mulf %128, %133 : vector<8x16x128xf32>
    %135 = arith.addf %132, %134 : vector<8x16x128xf32>
    %c15_i32_61 = arith.constant 15 : i32
    %136 = tpu.dynamic_rotate %128 by %c15_i32_61 dim 1 : vector<8x16x128xf32>, i32 -> vector<8x16x128xf32>
    %137 = vector.broadcast %63 : vector<1x16x128xf32> to vector<8x16x128xf32>
    %138 = arith.mulf %136, %137 : vector<8x16x128xf32>
    %139 = arith.addf %135, %138 : vector<8x16x128xf32>
    %c10 = arith.constant 10 : index
    %c0_62 = arith.constant 0 : index
    %c0_63 = arith.constant 0 : index
    %140 = vector.load %arg8[%c10, %c0_62, %c0_63] : memref<18x16x128xf32, #tpu.memory_space<vmem>>, vector<8x16x128xf32>
    %c1_i32_64 = arith.constant 1 : i32
    %141 = tpu.dynamic_rotate %140 by %c1_i32_64 dim 1 : vector<8x16x128xf32>, i32 -> vector<8x16x128xf32>
    %142 = vector.broadcast %69 : vector<1x16x128xf32> to vector<8x16x128xf32>
    %143 = arith.mulf %141, %142 : vector<8x16x128xf32>
    %144 = arith.addf %139, %143 : vector<8x16x128xf32>
    %145 = vector.broadcast %72 : vector<1x1x128xf32> to vector<8x16x128xf32>
    %146 = arith.mulf %140, %145 : vector<8x16x128xf32>
    %147 = arith.addf %144, %146 : vector<8x16x128xf32>
    %c15_i32_65 = arith.constant 15 : i32
    %148 = tpu.dynamic_rotate %140 by %c15_i32_65 dim 1 : vector<8x16x128xf32>, i32 -> vector<8x16x128xf32>
    %149 = vector.broadcast %78 : vector<1x16x128xf32> to vector<8x16x128xf32>
    %150 = arith.mulf %148, %149 : vector<8x16x128xf32>
    %151 = arith.addf %147, %150 : vector<8x16x128xf32>
    %152 = vector.shape_cast %151 : vector<8x16x128xf32> to vector<128x128xf32>
    %153 = arith.truncf %152 : vector<128x128xf32> to vector<128x128xbf16>
    %c128 = arith.constant 128 : index
    %c0_66 = arith.constant 0 : index
    %154 = vector.load %arg10[%c128, %c0_66] : memref<256x128xbf16, #tpu.memory_space<vmem>>, vector<128x128xbf16>
    tpu.vector_store %arg10[%c128, %c0_66], %153 {strides = array<i32>} : memref<256x128xbf16, #tpu.memory_space<vmem>>, vector<128x128xbf16>,
    %c0_67 = arith.constant 0 : index
    %c0_68 = arith.constant 0 : index
    %155 = vector.load %arg10[%c0_67, %c0_68] : memref<256x128xbf16, #tpu.memory_space<vmem>>, vector<256x128xbf16>
    %cst_69 = arith.constant dense<0.000000e+00> : vector<256x128xf32>
    %156 = tpu.matmul %155, %31, %cst_69 {dimension_numbers = #tpu.dot_dimension_numbers<[1], [0], [0], [1], [0, 0, 1, 1], [], []>} : vector<256x128xbf16>, vector<128x128xbf16>, vector<256x128xf32> -> vector<256x128xf32>
    %157 = vector.broadcast %33 : vector<1x128xf32> to vector<256x128xf32>
    %158 = arith.addf %156, %157 : vector<256x128xf32>
    %159 = vector.extract_strided_slice %158 {offsets = [0, 0], sizes = [128, 128], strides = [1, 1]} : vector<256x128xf32> to vector<128x128xf32>
    %160 = vector.shape_cast %159 : vector<128x128xf32> to vector<8x16x128xf32>
    %cst_70 = arith.constant 0.000000e+00 : f32
    %161 = vector.broadcast %cst_70 : f32 to vector<8x16x128xf32>
    %162 = arith.maximumf %160, %161 : vector<8x16x128xf32>
    %c1_71 = arith.constant 1 : index
    %c0_72 = arith.constant 0 : index
    %c0_73 = arith.constant 0 : index
    %163 = vector.load %arg9[%c1_71, %c0_72, %c0_73] : memref<18x16x128xf32, #tpu.memory_space<vmem>>, vector<8x16x128xf32>
    tpu.vector_store %arg9[%c1_71, %c0_72, %c0_73], %162 {strides = array<i32>} : memref<18x16x128xf32, #tpu.memory_space<vmem>>, vector<8x16x128xf32>,
    %164 = vector.extract_strided_slice %158 {offsets = [128, 0], sizes = [128, 128], strides = [1, 1]} : vector<256x128xf32> to vector<128x128xf32>
    %165 = vector.shape_cast %164 : vector<128x128xf32> to vector<8x16x128xf32>
    %cst_74 = arith.constant 0.000000e+00 : f32
    %166 = vector.broadcast %cst_74 : f32 to vector<8x16x128xf32>
    %167 = arith.maximumf %165, %166 : vector<8x16x128xf32>
    %c9_75 = arith.constant 9 : index
    %c0_76 = arith.constant 0 : index
    %c0_77 = arith.constant 0 : index
    %168 = vector.load %arg9[%c9_75, %c0_76, %c0_77] : memref<18x16x128xf32, #tpu.memory_space<vmem>>, vector<8x16x128xf32>
    tpu.vector_store %arg9[%c9_75, %c0_76, %c0_77], %167 {strides = array<i32>} : memref<18x16x128xf32, #tpu.memory_space<vmem>>, vector<8x16x128xf32>,
    %c0_78 = arith.constant 0 : index
    %c1_79 = arith.constant 1 : index
    %c0_80 = arith.constant 0 : index
    %c0_81 = arith.constant 0 : index
    %169 = vector.load %arg3[%c0_78, %c1_79, %c0_80, %c0_81] : memref<1x3x9x128xf32, #tpu.memory_space<vmem>>, vector<1x1x9x128xf32>
    %170 = vector.shape_cast %169 : vector<1x1x9x128xf32> to vector<9x128xf32>
    %c0_82 = arith.constant 0 : index
    %c1_83 = arith.constant 1 : index
    %c0_84 = arith.constant 0 : index
    %c0_85 = arith.constant 0 : index
    %171 = vector.load %arg4[%c0_82, %c1_83, %c0_84, %c0_85] : memref<1x3x128x128xbf16, #tpu.memory_space<vmem>>, vector<1x1x128x128xbf16>
    %172 = vector.shape_cast %171 : vector<1x1x128x128xbf16> to vector<128x128xbf16>
    %c0_86 = arith.constant 0 : index
    %c1_87 = arith.constant 1 : index
    %c0_88 = arith.constant 0 : index
    %c0_89 = arith.constant 0 : index
    %173 = vector.load %arg5[%c0_86, %c1_87, %c0_88, %c0_89] : memref<1x3x1x128xf32, #tpu.memory_space<vmem>>, vector<1x1x1x128xf32>
    %174 = vector.shape_cast %173 : vector<1x1x1x128xf32> to vector<1x128xf32>
    %175 = vector.extract_strided_slice %170 {offsets = [0, 0], sizes = [1, 128], strides = [1, 1]} : vector<9x128xf32> to vector<1x128xf32>
    %176 = vector.shape_cast %175 : vector<1x128xf32> to vector<128xf32>
    %177 = vector.shape_cast %176 : vector<128xf32> to vector<1x1x128xf32>
    %178 = vector.broadcast %177 : vector<1x1x128xf32> to vector<1x16x128xf32>
    %179 = vector.broadcast %15 : vector<1x16x1xf32> to vector<1x16x128xf32>
    %180 = arith.mulf %178, %179 : vector<1x16x128xf32>
    %181 = vector.extract_strided_slice %170 {offsets = [1, 0], sizes = [1, 128], strides = [1, 1]} : vector<9x128xf32> to vector<1x128xf32>
    %182 = vector.shape_cast %181 : vector<1x128xf32> to vector<128xf32>
    %183 = vector.shape_cast %182 : vector<128xf32> to vector<1x1x128xf32>
    %184 = vector.extract_strided_slice %170 {offsets = [2, 0], sizes = [1, 128], strides = [1, 1]} : vector<9x128xf32> to vector<1x128xf32>
    %185 = vector.shape_cast %184 : vector<1x128xf32> to vector<128xf32>
    %186 = vector.shape_cast %185 : vector<128xf32> to vector<1x1x128xf32>
    %187 = vector.broadcast %186 : vector<1x1x128xf32> to vector<1x16x128xf32>
    %188 = vector.broadcast %19 : vector<1x16x1xf32> to vector<1x16x128xf32>
    %189 = arith.mulf %187, %188 : vector<1x16x128xf32>
    %190 = vector.extract_strided_slice %170 {offsets = [3, 0], sizes = [1, 128], strides = [1, 1]} : vector<9x128xf32> to vector<1x128xf32>
    %191 = vector.shape_cast %190 : vector<1x128xf32> to vector<128xf32>
    %192 = vector.shape_cast %191 : vector<128xf32> to vector<1x1x128xf32>
    %193 = vector.broadcast %192 : vector<1x1x128xf32> to vector<1x16x128xf32>
    %194 = vector.broadcast %15 : vector<1x16x1xf32> to vector<1x16x128xf32>
    %195 = arith.mulf %193, %194 : vector<1x16x128xf32>
    %196 = vector.extract_strided_slice %170 {offsets = [4, 0], sizes = [1, 128], strides = [1, 1]} : vector<9x128xf32> to vector<1x128xf32>
    %197 = vector.shape_cast %196 : vector<1x128xf32> to vector<128xf32>
    %198 = vector.shape_cast %197 : vector<128xf32> to vector<1x1x128xf32>
    %199 = vector.extract_strided_slice %170 {offsets = [5, 0], sizes = [1, 128], strides = [1, 1]} : vector<9x128xf32> to vector<1x128xf32>
    %200 = vector.shape_cast %199 : vector<1x128xf32> to vector<128xf32>
    %201 = vector.shape_cast %200 : vector<128xf32> to vector<1x1x128xf32>
    %202 = vector.broadcast %201 : vector<1x1x128xf32> to vector<1x16x128xf32>
    %203 = vector.broadcast %19 : vector<1x16x1xf32> to vector<1x16x128xf32>
    %204 = arith.mulf %202, %203 : vector<1x16x128xf32>
    %205 = vector.extract_strided_slice %170 {offsets = [6, 0], sizes = [1, 128], strides = [1, 1]} : vector<9x128xf32> to vector<1x128xf32>
    %206 = vector.shape_cast %205 : vector<1x128xf32> to vector<128xf32>
    %207 = vector.shape_cast %206 : vector<128xf32> to vector<1x1x128xf32>
    %208 = vector.broadcast %207 : vector<1x1x128xf32> to vector<1x16x128xf32>
    %209 = vector.broadcast %15 : vector<1x16x1xf32> to vector<1x16x128xf32>
    %210 = arith.mulf %208, %209 : vector<1x16x128xf32>
    %211 = vector.extract_strided_slice %170 {offsets = [7, 0], sizes = [1, 128], strides = [1, 1]} : vector<9x128xf32> to vector<1x128xf32>
    %212 = vector.shape_cast %211 : vector<1x128xf32> to vector<128xf32>
    %213 = vector.shape_cast %212 : vector<128xf32> to vector<1x1x128xf32>
    %214 = vector.extract_strided_slice %170 {offsets = [8, 0], sizes = [1, 128], strides = [1, 1]} : vector<9x128xf32> to vector<1x128xf32>
    %215 = vector.shape_cast %214 : vector<1x128xf32> to vector<128xf32>
    %216 = vector.shape_cast %215 : vector<128xf32> to vector<1x1x128xf32>
    %217 = vector.broadcast %216 : vector<1x1x128xf32> to vector<1x16x128xf32>
    %218 = vector.broadcast %19 : vector<1x16x1xf32> to vector<1x16x128xf32>
    %219 = arith.mulf %217, %218 : vector<1x16x128xf32>
    %c0_90 = arith.constant 0 : index
    %c0_91 = arith.constant 0 : index
    %c0_92 = arith.constant 0 : index
    %220 = vector.load %arg9[%c0_90, %c0_91, %c0_92] : memref<18x16x128xf32, #tpu.memory_space<vmem>>, vector<8x16x128xf32>
    %c1_i32_93 = arith.constant 1 : i32
    %221 = tpu.dynamic_rotate %220 by %c1_i32_93 dim 1 : vector<8x16x128xf32>, i32 -> vector<8x16x128xf32>
    %222 = vector.broadcast %180 : vector<1x16x128xf32> to vector<8x16x128xf32>
    %223 = arith.mulf %221, %222 : vector<8x16x128xf32>
    %224 = vector.broadcast %183 : vector<1x1x128xf32> to vector<8x16x128xf32>
    %225 = arith.mulf %220, %224 : vector<8x16x128xf32>
    %226 = arith.addf %223, %225 : vector<8x16x128xf32>
    %c15_i32_94 = arith.constant 15 : i32
    %227 = tpu.dynamic_rotate %220 by %c15_i32_94 dim 1 : vector<8x16x128xf32>, i32 -> vector<8x16x128xf32>
    %228 = vector.broadcast %189 : vector<1x16x128xf32> to vector<8x16x128xf32>
    %229 = arith.mulf %227, %228 : vector<8x16x128xf32>
    %230 = arith.addf %226, %229 : vector<8x16x128xf32>
    %c1_95 = arith.constant 1 : index
    %c0_96 = arith.constant 0 : index
    %c0_97 = arith.constant 0 : index
    %231 = vector.load %arg9[%c1_95, %c0_96, %c0_97] : memref<18x16x128xf32, #tpu.memory_space<vmem>>, vector<8x16x128xf32>
    %c1_i32_98 = arith.constant 1 : i32
    %232 = tpu.dynamic_rotate %231 by %c1_i32_98 dim 1 : vector<8x16x128xf32>, i32 -> vector<8x16x128xf32>
    %233 = vector.broadcast %195 : vector<1x16x128xf32> to vector<8x16x128xf32>
    %234 = arith.mulf %232, %233 : vector<8x16x128xf32>
    %235 = arith.addf %230, %234 : vector<8x16x128xf32>
    %236 = vector.broadcast %198 : vector<1x1x128xf32> to vector<8x16x128xf32>
    %237 = arith.mulf %231, %236 : vector<8x16x128xf32>
    %238 = arith.addf %235, %237 : vector<8x16x128xf32>
    %c15_i32_99 = arith.constant 15 : i32
    %239 = tpu.dynamic_rotate %231 by %c15_i32_99 dim 1 : vector<8x16x128xf32>, i32 -> vector<8x16x128xf32>
    %240 = vector.broadcast %204 : vector<1x16x128xf32> to vector<8x16x128xf32>
    %241 = arith.mulf %239, %240 : vector<8x16x128xf32>
    %242 = arith.addf %238, %241 : vector<8x16x128xf32>
    %c2_100 = arith.constant 2 : index
    %c0_101 = arith.constant 0 : index
    %c0_102 = arith.constant 0 : index
    %243 = vector.load %arg9[%c2_100, %c0_101, %c0_102] : memref<18x16x128xf32, #tpu.memory_space<vmem>>, vector<8x16x128xf32>
    %c1_i32_103 = arith.constant 1 : i32
    %244 = tpu.dynamic_rotate %243 by %c1_i32_103 dim 1 : vector<8x16x128xf32>, i32 -> vector<8x16x128xf32>
    %245 = vector.broadcast %210 : vector<1x16x128xf32> to vector<8x16x128xf32>
    %246 = arith.mulf %244, %245 : vector<8x16x128xf32>
    %247 = arith.addf %242, %246 : vector<8x16x128xf32>
    %248 = vector.broadcast %213 : vector<1x1x128xf32> to vector<8x16x128xf32>
    %249 = arith.mulf %243, %248 : vector<8x16x128xf32>
    %250 = arith.addf %247, %249 : vector<8x16x128xf32>
    %c15_i32_104 = arith.constant 15 : i32
    %251 = tpu.dynamic_rotate %243 by %c15_i32_104 dim 1 : vector<8x16x128xf32>, i32 -> vector<8x16x128xf32>
    %252 = vector.broadcast %219 : vector<1x16x128xf32> to vector<8x16x128xf32>
    %253 = arith.mulf %251, %252 : vector<8x16x128xf32>
    %254 = arith.addf %250, %253 : vector<8x16x128xf32>
    %255 = vector.shape_cast %254 : vector<8x16x128xf32> to vector<128x128xf32>
    %256 = arith.truncf %255 : vector<128x128xf32> to vector<128x128xbf16>
    %c0_105 = arith.constant 0 : index
    %c0_106 = arith.constant 0 : index
    %257 = vector.load %arg10[%c0_105, %c0_106] : memref<256x128xbf16, #tpu.memory_space<vmem>>, vector<128x128xbf16>
    tpu.vector_store %arg10[%c0_105, %c0_106], %256 {strides = array<i32>} : memref<256x128xbf16, #tpu.memory_space<vmem>>, vector<128x128xbf16>,
    %c8_107 = arith.constant 8 : index
    %c0_108 = arith.constant 0 : index
    %c0_109 = arith.constant 0 : index
    %258 = vector.load %arg9[%c8_107, %c0_108, %c0_109] : memref<18x16x128xf32, #tpu.memory_space<vmem>>, vector<8x16x128xf32>
    %c1_i32_110 = arith.constant 1 : i32
    %259 = tpu.dynamic_rotate %258 by %c1_i32_110 dim 1 : vector<8x16x128xf32>, i32 -> vector<8x16x128xf32>
    %260 = vector.broadcast %180 : vector<1x16x128xf32> to vector<8x16x128xf32>
    %261 = arith.mulf %259, %260 : vector<8x16x128xf32>
    %262 = vector.broadcast %183 : vector<1x1x128xf32> to vector<8x16x128xf32>
    %263 = arith.mulf %258, %262 : vector<8x16x128xf32>
    %264 = arith.addf %261, %263 : vector<8x16x128xf32>
    %c15_i32_111 = arith.constant 15 : i32
    %265 = tpu.dynamic_rotate %258 by %c15_i32_111 dim 1 : vector<8x16x128xf32>, i32 -> vector<8x16x128xf32>
    %266 = vector.broadcast %189 : vector<1x16x128xf32> to vector<8x16x128xf32>
    %267 = arith.mulf %265, %266 : vector<8x16x128xf32>
    %268 = arith.addf %264, %267 : vector<8x16x128xf32>
    %c9_112 = arith.constant 9 : index
    %c0_113 = arith.constant 0 : index
    %c0_114 = arith.constant 0 : index
    %269 = vector.load %arg9[%c9_112, %c0_113, %c0_114] : memref<18x16x128xf32, #tpu.memory_space<vmem>>, vector<8x16x128xf32>
    %c1_i32_115 = arith.constant 1 : i32
    %270 = tpu.dynamic_rotate %269 by %c1_i32_115 dim 1 : vector<8x16x128xf32>, i32 -> vector<8x16x128xf32>
    %271 = vector.broadcast %195 : vector<1x16x128xf32> to vector<8x16x128xf32>
    %272 = arith.mulf %270, %271 : vector<8x16x128xf32>
    %273 = arith.addf %268, %272 : vector<8x16x128xf32>
    %274 = vector.broadcast %198 : vector<1x1x128xf32> to vector<8x16x128xf32>
    %275 = arith.mulf %269, %274 : vector<8x16x128xf32>
    %276 = arith.addf %273, %275 : vector<8x16x128xf32>
    %c15_i32_116 = arith.constant 15 : i32
    %277 = tpu.dynamic_rotate %269 by %c15_i32_116 dim 1 : vector<8x16x128xf32>, i32 -> vector<8x16x128xf32>
    %278 = vector.broadcast %204 : vector<1x16x128xf32> to vector<8x16x128xf32>
    %279 = arith.mulf %277, %278 : vector<8x16x128xf32>
    %280 = arith.addf %276, %279 : vector<8x16x128xf32>
    %c10_117 = arith.constant 10 : index
    %c0_118 = arith.constant 0 : index
    %c0_119 = arith.constant 0 : index
    %281 = vector.load %arg9[%c10_117, %c0_118, %c0_119] : memref<18x16x128xf32, #tpu.memory_space<vmem>>, vector<8x16x128xf32>
    %c1_i32_120 = arith.constant 1 : i32
    %282 = tpu.dynamic_rotate %281 by %c1_i32_120 dim 1 : vector<8x16x128xf32>, i32 -> vector<8x16x128xf32>
    %283 = vector.broadcast %210 : vector<1x16x128xf32> to vector<8x16x128xf32>
    %284 = arith.mulf %282, %283 : vector<8x16x128xf32>
    %285 = arith.addf %280, %284 : vector<8x16x128xf32>
    %286 = vector.broadcast %213 : vector<1x1x128xf32> to vector<8x16x128xf32>
    %287 = arith.mulf %281, %286 : vector<8x16x128xf32>
    %288 = arith.addf %285, %287 : vector<8x16x128xf32>
    %c15_i32_121 = arith.constant 15 : i32
    %289 = tpu.dynamic_rotate %281 by %c15_i32_121 dim 1 : vector<8x16x128xf32>, i32 -> vector<8x16x128xf32>
    %290 = vector.broadcast %219 : vector<1x16x128xf32> to vector<8x16x128xf32>
    %291 = arith.mulf %289, %290 : vector<8x16x128xf32>
    %292 = arith.addf %288, %291 : vector<8x16x128xf32>
    %293 = vector.shape_cast %292 : vector<8x16x128xf32> to vector<128x128xf32>
    %294 = arith.truncf %293 : vector<128x128xf32> to vector<128x128xbf16>
    %c128_122 = arith.constant 128 : index
    %c0_123 = arith.constant 0 : index
    %295 = vector.load %arg10[%c128_122, %c0_123] : memref<256x128xbf16, #tpu.memory_space<vmem>>, vector<128x128xbf16>
    tpu.vector_store %arg10[%c128_122, %c0_123], %294 {strides = array<i32>} : memref<256x128xbf16, #tpu.memory_space<vmem>>, vector<128x128xbf16>,
    %c0_124 = arith.constant 0 : index
    %c0_125 = arith.constant 0 : index
    %296 = vector.load %arg10[%c0_124, %c0_125] : memref<256x128xbf16, #tpu.memory_space<vmem>>, vector<256x128xbf16>
    %cst_126 = arith.constant dense<0.000000e+00> : vector<256x128xf32>
    %297 = tpu.matmul %296, %172, %cst_126 {dimension_numbers = #tpu.dot_dimension_numbers<[1], [0], [0], [1], [0, 0, 1, 1], [], []>} : vector<256x128xbf16>, vector<128x128xbf16>, vector<256x128xf32> -> vector<256x128xf32>
    %298 = vector.broadcast %174 : vector<1x128xf32> to vector<256x128xf32>
    %299 = arith.addf %297, %298 : vector<256x128xf32>
    %300 = vector.extract_strided_slice %299 {offsets = [0, 0], sizes = [128, 128], strides = [1, 1]} : vector<256x128xf32> to vector<128x128xf32>
    %301 = vector.shape_cast %300 : vector<128x128xf32> to vector<8x16x128xf32>
    %cst_127 = arith.constant 0.000000e+00 : f32
    %302 = vector.broadcast %cst_127 : f32 to vector<8x16x128xf32>
    %303 = arith.maximumf %301, %302 : vector<8x16x128xf32>
    %c1_128 = arith.constant 1 : index
    %c0_129 = arith.constant 0 : index
    %c0_130 = arith.constant 0 : index
    %304 = vector.load %arg8[%c1_128, %c0_129, %c0_130] : memref<18x16x128xf32, #tpu.memory_space<vmem>>, vector<8x16x128xf32>
    tpu.vector_store %arg8[%c1_128, %c0_129, %c0_130], %303 {strides = array<i32>} : memref<18x16x128xf32, #tpu.memory_space<vmem>>, vector<8x16x128xf32>,
    %305 = vector.extract_strided_slice %299 {offsets = [128, 0], sizes = [128, 128], strides = [1, 1]} : vector<256x128xf32> to vector<128x128xf32>
    %306 = vector.shape_cast %305 : vector<128x128xf32> to vector<8x16x128xf32>
    %cst_131 = arith.constant 0.000000e+00 : f32
    %307 = vector.broadcast %cst_131 : f32 to vector<8x16x128xf32>
    %308 = arith.maximumf %306, %307 : vector<8x16x128xf32>
    %c9_132 = arith.constant 9 : index
    %c0_133 = arith.constant 0 : index
    %c0_134 = arith.constant 0 : index
    %309 = vector.load %arg8[%c9_132, %c0_133, %c0_134] : memref<18x16x128xf32, #tpu.memory_space<vmem>>, vector<8x16x128xf32>
    tpu.vector_store %arg8[%c9_132, %c0_133, %c0_134], %308 {strides = array<i32>} : memref<18x16x128xf32, #tpu.memory_space<vmem>>, vector<8x16x128xf32>,
    %c0_135 = arith.constant 0 : index
    %c2_136 = arith.constant 2 : index
    %c0_137 = arith.constant 0 : index
    %c0_138 = arith.constant 0 : index
    %310 = vector.load %arg3[%c0_135, %c2_136, %c0_137, %c0_138] : memref<1x3x9x128xf32, #tpu.memory_space<vmem>>, vector<1x1x9x128xf32>
    %311 = vector.shape_cast %310 : vector<1x1x9x128xf32> to vector<9x128xf32>
    %c0_139 = arith.constant 0 : index
    %c2_140 = arith.constant 2 : index
    %c0_141 = arith.constant 0 : index
    %c0_142 = arith.constant 0 : index
    %312 = vector.load %arg4[%c0_139, %c2_140, %c0_141, %c0_142] : memref<1x3x128x128xbf16, #tpu.memory_space<vmem>>, vector<1x1x128x128xbf16>
    %313 = vector.shape_cast %312 : vector<1x1x128x128xbf16> to vector<128x128xbf16>
    %c0_143 = arith.constant 0 : index
    %c2_144 = arith.constant 2 : index
    %c0_145 = arith.constant 0 : index
    %c0_146 = arith.constant 0 : index
    %314 = vector.load %arg5[%c0_143, %c2_144, %c0_145, %c0_146] : memref<1x3x1x128xf32, #tpu.memory_space<vmem>>, vector<1x1x1x128xf32>
    %315 = vector.shape_cast %314 : vector<1x1x1x128xf32> to vector<1x128xf32>
    %316 = vector.extract_strided_slice %311 {offsets = [0, 0], sizes = [1, 128], strides = [1, 1]} : vector<9x128xf32> to vector<1x128xf32>
    %317 = vector.shape_cast %316 : vector<1x128xf32> to vector<128xf32>
    %318 = vector.shape_cast %317 : vector<128xf32> to vector<1x1x128xf32>
    %319 = vector.broadcast %318 : vector<1x1x128xf32> to vector<1x16x128xf32>
    %320 = vector.broadcast %15 : vector<1x16x1xf32> to vector<1x16x128xf32>
    %321 = arith.mulf %319, %320 : vector<1x16x128xf32>
    %322 = vector.extract_strided_slice %311 {offsets = [1, 0], sizes = [1, 128], strides = [1, 1]} : vector<9x128xf32> to vector<1x128xf32>
    %323 = vector.shape_cast %322 : vector<1x128xf32> to vector<128xf32>
    %324 = vector.shape_cast %323 : vector<128xf32> to vector<1x1x128xf32>
    %325 = vector.extract_strided_slice %311 {offsets = [2, 0], sizes = [1, 128], strides = [1, 1]} : vector<9x128xf32> to vector<1x128xf32>
    %326 = vector.shape_cast %325 : vector<1x128xf32> to vector<128xf32>
    %327 = vector.shape_cast %326 : vector<128xf32> to vector<1x1x128xf32>
    %328 = vector.broadcast %327 : vector<1x1x128xf32> to vector<1x16x128xf32>
    %329 = vector.broadcast %19 : vector<1x16x1xf32> to vector<1x16x128xf32>
    %330 = arith.mulf %328, %329 : vector<1x16x128xf32>
    %331 = vector.extract_strided_slice %311 {offsets = [3, 0], sizes = [1, 128], strides = [1, 1]} : vector<9x128xf32> to vector<1x128xf32>
    %332 = vector.shape_cast %331 : vector<1x128xf32> to vector<128xf32>
    %333 = vector.shape_cast %332 : vector<128xf32> to vector<1x1x128xf32>
    %334 = vector.broadcast %333 : vector<1x1x128xf32> to vector<1x16x128xf32>
    %335 = vector.broadcast %15 : vector<1x16x1xf32> to vector<1x16x128xf32>
    %336 = arith.mulf %334, %335 : vector<1x16x128xf32>
    %337 = vector.extract_strided_slice %311 {offsets = [4, 0], sizes = [1, 128], strides = [1, 1]} : vector<9x128xf32> to vector<1x128xf32>
    %338 = vector.shape_cast %337 : vector<1x128xf32> to vector<128xf32>
    %339 = vector.shape_cast %338 : vector<128xf32> to vector<1x1x128xf32>
    %340 = vector.extract_strided_slice %311 {offsets = [5, 0], sizes = [1, 128], strides = [1, 1]} : vector<9x128xf32> to vector<1x128xf32>
    %341 = vector.shape_cast %340 : vector<1x128xf32> to vector<128xf32>
    %342 = vector.shape_cast %341 : vector<128xf32> to vector<1x1x128xf32>
    %343 = vector.broadcast %342 : vector<1x1x128xf32> to vector<1x16x128xf32>
    %344 = vector.broadcast %19 : vector<1x16x1xf32> to vector<1x16x128xf32>
    %345 = arith.mulf %343, %344 : vector<1x16x128xf32>
    %346 = vector.extract_strided_slice %311 {offsets = [6, 0], sizes = [1, 128], strides = [1, 1]} : vector<9x128xf32> to vector<1x128xf32>
    %347 = vector.shape_cast %346 : vector<1x128xf32> to vector<128xf32>
    %348 = vector.shape_cast %347 : vector<128xf32> to vector<1x1x128xf32>
    %349 = vector.broadcast %348 : vector<1x1x128xf32> to vector<1x16x128xf32>
    %350 = vector.broadcast %15 : vector<1x16x1xf32> to vector<1x16x128xf32>
    %351 = arith.mulf %349, %350 : vector<1x16x128xf32>
    %352 = vector.extract_strided_slice %311 {offsets = [7, 0], sizes = [1, 128], strides = [1, 1]} : vector<9x128xf32> to vector<1x128xf32>
    %353 = vector.shape_cast %352 : vector<1x128xf32> to vector<128xf32>
    %354 = vector.shape_cast %353 : vector<128xf32> to vector<1x1x128xf32>
    %355 = vector.extract_strided_slice %311 {offsets = [8, 0], sizes = [1, 128], strides = [1, 1]} : vector<9x128xf32> to vector<1x128xf32>
    %356 = vector.shape_cast %355 : vector<1x128xf32> to vector<128xf32>
    %357 = vector.shape_cast %356 : vector<128xf32> to vector<1x1x128xf32>
    %358 = vector.broadcast %357 : vector<1x1x128xf32> to vector<1x16x128xf32>
    %359 = vector.broadcast %19 : vector<1x16x1xf32> to vector<1x16x128xf32>
    %360 = arith.mulf %358, %359 : vector<1x16x128xf32>
    %c0_147 = arith.constant 0 : index
    %c0_148 = arith.constant 0 : index
    %c0_149 = arith.constant 0 : index
    %361 = vector.load %arg8[%c0_147, %c0_148, %c0_149] : memref<18x16x128xf32, #tpu.memory_space<vmem>>, vector<8x16x128xf32>
    %c1_i32_150 = arith.constant 1 : i32
    %362 = tpu.dynamic_rotate %361 by %c1_i32_150 dim 1 : vector<8x16x128xf32>, i32 -> vector<8x16x128xf32>
    %363 = vector.broadcast %321 : vector<1x16x128xf32> to vector<8x16x128xf32>
    %364 = arith.mulf %362, %363 : vector<8x16x128xf32>
    %365 = vector.broadcast %324 : vector<1x1x128xf32> to vector<8x16x128xf32>
    %366 = arith.mulf %361, %365 : vector<8x16x128xf32>
    %367 = arith.addf %364, %366 : vector<8x16x128xf32>
    %c15_i32_151 = arith.constant 15 : i32
    %368 = tpu.dynamic_rotate %361 by %c15_i32_151 dim 1 : vector<8x16x128xf32>, i32 -> vector<8x16x128xf32>
    %369 = vector.broadcast %330 : vector<1x16x128xf32> to vector<8x16x128xf32>
    %370 = arith.mulf %368, %369 : vector<8x16x128xf32>
    %371 = arith.addf %367, %370 : vector<8x16x128xf32>
    %c1_152 = arith.constant 1 : index
    %c0_153 = arith.constant 0 : index
    %c0_154 = arith.constant 0 : index
    %372 = vector.load %arg8[%c1_152, %c0_153, %c0_154] : memref<18x16x128xf32, #tpu.memory_space<vmem>>, vector<8x16x128xf32>
    %c1_i32_155 = arith.constant 1 : i32
    %373 = tpu.dynamic_rotate %372 by %c1_i32_155 dim 1 : vector<8x16x128xf32>, i32 -> vector<8x16x128xf32>
    %374 = vector.broadcast %336 : vector<1x16x128xf32> to vector<8x16x128xf32>
    %375 = arith.mulf %373, %374 : vector<8x16x128xf32>
    %376 = arith.addf %371, %375 : vector<8x16x128xf32>
    %377 = vector.broadcast %339 : vector<1x1x128xf32> to vector<8x16x128xf32>
    %378 = arith.mulf %372, %377 : vector<8x16x128xf32>
    %379 = arith.addf %376, %378 : vector<8x16x128xf32>
    %c15_i32_156 = arith.constant 15 : i32
    %380 = tpu.dynamic_rotate %372 by %c15_i32_156 dim 1 : vector<8x16x128xf32>, i32 -> vector<8x16x128xf32>
    %381 = vector.broadcast %345 : vector<1x16x128xf32> to vector<8x16x128xf32>
    %382 = arith.mulf %380, %381 : vector<8x16x128xf32>
    %383 = arith.addf %379, %382 : vector<8x16x128xf32>
    %c2_157 = arith.constant 2 : index
    %c0_158 = arith.constant 0 : index
    %c0_159 = arith.constant 0 : index
    %384 = vector.load %arg8[%c2_157, %c0_158, %c0_159] : memref<18x16x128xf32, #tpu.memory_space<vmem>>, vector<8x16x128xf32>
    %c1_i32_160 = arith.constant 1 : i32
    %385 = tpu.dynamic_rotate %384 by %c1_i32_160 dim 1 : vector<8x16x128xf32>, i32 -> vector<8x16x128xf32>
    %386 = vector.broadcast %351 : vector<1x16x128xf32> to vector<8x16x128xf32>
    %387 = arith.mulf %385, %386 : vector<8x16x128xf32>
    %388 = arith.addf %383, %387 : vector<8x16x128xf32>
    %389 = vector.broadcast %354 : vector<1x1x128xf32> to vector<8x16x128xf32>
    %390 = arith.mulf %384, %389 : vector<8x16x128xf32>
    %391 = arith.addf %388, %390 : vector<8x16x128xf32>
    %c15_i32_161 = arith.constant 15 : i32
    %392 = tpu.dynamic_rotate %384 by %c15_i32_161 dim 1 : vector<8x16x128xf32>, i32 -> vector<8x16x128xf32>
    %393 = vector.broadcast %360 : vector<1x16x128xf32> to vector<8x16x128xf32>
    %394 = arith.mulf %392, %393 : vector<8x16x128xf32>
    %395 = arith.addf %391, %394 : vector<8x16x128xf32>
    %396 = vector.shape_cast %395 : vector<8x16x128xf32> to vector<128x128xf32>
    %397 = arith.truncf %396 : vector<128x128xf32> to vector<128x128xbf16>
    %c0_162 = arith.constant 0 : index
    %c0_163 = arith.constant 0 : index
    %398 = vector.load %arg10[%c0_162, %c0_163] : memref<256x128xbf16, #tpu.memory_space<vmem>>, vector<128x128xbf16>
    tpu.vector_store %arg10[%c0_162, %c0_163], %397 {strides = array<i32>} : memref<256x128xbf16, #tpu.memory_space<vmem>>, vector<128x128xbf16>,
    %c8_164 = arith.constant 8 : index
    %c0_165 = arith.constant 0 : index
    %c0_166 = arith.constant 0 : index
    %399 = vector.load %arg8[%c8_164, %c0_165, %c0_166] : memref<18x16x128xf32, #tpu.memory_space<vmem>>, vector<8x16x128xf32>
    %c1_i32_167 = arith.constant 1 : i32
    %400 = tpu.dynamic_rotate %399 by %c1_i32_167 dim 1 : vector<8x16x128xf32>, i32 -> vector<8x16x128xf32>
    %401 = vector.broadcast %321 : vector<1x16x128xf32> to vector<8x16x128xf32>
    %402 = arith.mulf %400, %401 : vector<8x16x128xf32>
    %403 = vector.broadcast %324 : vector<1x1x128xf32> to vector<8x16x128xf32>
    %404 = arith.mulf %399, %403 : vector<8x16x128xf32>
    %405 = arith.addf %402, %404 : vector<8x16x128xf32>
    %c15_i32_168 = arith.constant 15 : i32
    %406 = tpu.dynamic_rotate %399 by %c15_i32_168 dim 1 : vector<8x16x128xf32>, i32 -> vector<8x16x128xf32>
    %407 = vector.broadcast %330 : vector<1x16x128xf32> to vector<8x16x128xf32>
    %408 = arith.mulf %406, %407 : vector<8x16x128xf32>
    %409 = arith.addf %405, %408 : vector<8x16x128xf32>
    %c9_169 = arith.constant 9 : index
    %c0_170 = arith.constant 0 : index
    %c0_171 = arith.constant 0 : index
    %410 = vector.load %arg8[%c9_169, %c0_170, %c0_171] : memref<18x16x128xf32, #tpu.memory_space<vmem>>, vector<8x16x128xf32>
    %c1_i32_172 = arith.constant 1 : i32
    %411 = tpu.dynamic_rotate %410 by %c1_i32_172 dim 1 : vector<8x16x128xf32>, i32 -> vector<8x16x128xf32>
    %412 = vector.broadcast %336 : vector<1x16x128xf32> to vector<8x16x128xf32>
    %413 = arith.mulf %411, %412 : vector<8x16x128xf32>
    %414 = arith.addf %409, %413 : vector<8x16x128xf32>
    %415 = vector.broadcast %339 : vector<1x1x128xf32> to vector<8x16x128xf32>
    %416 = arith.mulf %410, %415 : vector<8x16x128xf32>
    %417 = arith.addf %414, %416 : vector<8x16x128xf32>
    %c15_i32_173 = arith.constant 15 : i32
    %418 = tpu.dynamic_rotate %410 by %c15_i32_173 dim 1 : vector<8x16x128xf32>, i32 -> vector<8x16x128xf32>
    %419 = vector.broadcast %345 : vector<1x16x128xf32> to vector<8x16x128xf32>
    %420 = arith.mulf %418, %419 : vector<8x16x128xf32>
    %421 = arith.addf %417, %420 : vector<8x16x128xf32>
    %c10_174 = arith.constant 10 : index
    %c0_175 = arith.constant 0 : index
    %c0_176 = arith.constant 0 : index
    %422 = vector.load %arg8[%c10_174, %c0_175, %c0_176] : memref<18x16x128xf32, #tpu.memory_space<vmem>>, vector<8x16x128xf32>
    %c1_i32_177 = arith.constant 1 : i32
    %423 = tpu.dynamic_rotate %422 by %c1_i32_177 dim 1 : vector<8x16x128xf32>, i32 -> vector<8x16x128xf32>
    %424 = vector.broadcast %351 : vector<1x16x128xf32> to vector<8x16x128xf32>
    %425 = arith.mulf %423, %424 : vector<8x16x128xf32>
    %426 = arith.addf %421, %425 : vector<8x16x128xf32>
    %427 = vector.broadcast %354 : vector<1x1x128xf32> to vector<8x16x128xf32>
    %428 = arith.mulf %422, %427 : vector<8x16x128xf32>
    %429 = arith.addf %426, %428 : vector<8x16x128xf32>
    %c15_i32_178 = arith.constant 15 : i32
    %430 = tpu.dynamic_rotate %422 by %c15_i32_178 dim 1 : vector<8x16x128xf32>, i32 -> vector<8x16x128xf32>
    %431 = vector.broadcast %360 : vector<1x16x128xf32> to vector<8x16x128xf32>
    %432 = arith.mulf %430, %431 : vector<8x16x128xf32>
    %433 = arith.addf %429, %432 : vector<8x16x128xf32>
    %434 = vector.shape_cast %433 : vector<8x16x128xf32> to vector<128x128xf32>
    %435 = arith.truncf %434 : vector<128x128xf32> to vector<128x128xbf16>
    %c128_179 = arith.constant 128 : index
    %c0_180 = arith.constant 0 : index
    %436 = vector.load %arg10[%c128_179, %c0_180] : memref<256x128xbf16, #tpu.memory_space<vmem>>, vector<128x128xbf16>
    tpu.vector_store %arg10[%c128_179, %c0_180], %435 {strides = array<i32>} : memref<256x128xbf16, #tpu.memory_space<vmem>>, vector<128x128xbf16>,
    %c0_181 = arith.constant 0 : index
    %c0_182 = arith.constant 0 : index
    %437 = vector.load %arg10[%c0_181, %c0_182] : memref<256x128xbf16, #tpu.memory_space<vmem>>, vector<256x128xbf16>
    %cst_183 = arith.constant dense<0.000000e+00> : vector<256x128xf32>
    %438 = tpu.matmul %437, %313, %cst_183 {dimension_numbers = #tpu.dot_dimension_numbers<[1], [0], [0], [1], [0, 0, 1, 1], [], []>} : vector<256x128xbf16>, vector<128x128xbf16>, vector<256x128xf32> -> vector<256x128xf32>
    %439 = vector.broadcast %315 : vector<1x128xf32> to vector<256x128xf32>
    %440 = arith.addf %438, %439 : vector<256x128xf32>
    %441 = vector.extract_strided_slice %440 {offsets = [0, 0], sizes = [128, 128], strides = [1, 1]} : vector<256x128xf32> to vector<128x128xf32>
    %442 = vector.shape_cast %441 : vector<128x128xf32> to vector<8x16x128xf32>
    %c0_184 = arith.constant 0 : index
    %c0_185 = arith.constant 0 : index
    %c0_186 = arith.constant 0 : index
    %443 = vector.load %arg7[%c0_184, %c0_185, %c0_186] : memref<16x16x128xf32, #tpu.memory_space<vmem>>, vector<8x16x128xf32>
    %444 = arith.addf %443, %442 : vector<8x16x128xf32>
    %c0_187 = arith.constant 0 : index
    %c0_188 = arith.constant 0 : index
    %c0_189 = arith.constant 0 : index
    %445 = vector.load %arg7[%c0_187, %c0_188, %c0_189] : memref<16x16x128xf32, #tpu.memory_space<vmem>>, vector<8x16x128xf32>
    tpu.vector_store %arg7[%c0_187, %c0_188, %c0_189], %444 {strides = array<i32>} : memref<16x16x128xf32, #tpu.memory_space<vmem>>, vector<8x16x128xf32>,
    %446 = vector.extract_strided_slice %440 {offsets = [128, 0], sizes = [128, 128], strides = [1, 1]} : vector<256x128xf32> to vector<128x128xf32>
    %447 = vector.shape_cast %446 : vector<128x128xf32> to vector<8x16x128xf32>
    %c8_190 = arith.constant 8 : index
    %c0_191 = arith.constant 0 : index
    %c0_192 = arith.constant 0 : index
    %448 = vector.load %arg7[%c8_190, %c0_191, %c0_192] : memref<16x16x128xf32, #tpu.memory_space<vmem>>, vector<8x16x128xf32>
    %449 = arith.addf %448, %447 : vector<8x16x128xf32>
    %c8_193 = arith.constant 8 : index
    %c0_194 = arith.constant 0 : index
    %c0_195 = arith.constant 0 : index
    %450 = vector.load %arg7[%c8_193, %c0_194, %c0_195] : memref<16x16x128xf32, #tpu.memory_space<vmem>>, vector<8x16x128xf32>
    tpu.vector_store %arg7[%c8_193, %c0_194, %c0_195], %449 {strides = array<i32>} : memref<16x16x128xf32, #tpu.memory_space<vmem>>, vector<8x16x128xf32>,
    %c7_i32 = arith.constant 7 : i32
    %451 = arith.cmpi eq, %arg1, %c7_i32 : i32
    %452 = arith.extui %451 : i1 to i32
    %c0_i32_196 = arith.constant 0 : i32
    %453 = arith.cmpi ne, %452, %c0_i32_196 : i32
    scf.if %453 {
      %c0_197 = arith.constant 0 : index
      %c0_198 = arith.constant 0 : index
      %c0_199 = arith.constant 0 : index
      %454 = vector.load %arg7[%c0_197, %c0_198, %c0_199] : memref<16x16x128xf32, #tpu.memory_space<vmem>>, vector<16x16x128xf32>
      %c0_200 = arith.constant 0 : index
      %c0_201 = arith.constant 0 : index
      %c0_202 = arith.constant 0 : index
      %c0_203 = arith.constant 0 : index
      %455 = vector.load %arg6[%c0_200, %c0_201, %c0_202, %c0_203] : memref<1x16x16x128xf32, #tpu.memory_space<vmem>>, vector<1x16x16x128xf32>
      %456 = vector.shape_cast %455 : vector<1x16x16x128xf32> to vector<16x16x128xf32>
      %457 = vector.shape_cast %454 : vector<16x16x128xf32> to vector<1x16x16x128xf32>
      tpu.vector_store %arg6[%c0_200, %c0_201, %c0_202, %c0_203], %457 {strides = array<i32>} : memref<1x16x16x128xf32, #tpu.memory_space<vmem>>, vector<1x16x16x128xf32>,
    } else {
    }
    return
  }
  func.func @transform_0(%arg0: i32, %arg1: i32) -> (i32, i32, i32, i32) {
    %c0_i32 = arith.constant 0 : i32
    %c0_i32_0 = arith.constant 0 : i32
    %c0_i32_1 = arith.constant 0 : i32
    %c0_i32_2 = arith.constant 0 : i32
    return %arg0, %c0_i32, %c0_i32_0, %c0_i32_1 : i32, i32, i32, i32
  }
  func.func @transform_1(%arg0: i32, %arg1: i32) -> (i32, i32, i32, i32) {
    %c0_i32 = arith.constant 0 : i32
    %c0_i32_0 = arith.constant 0 : i32
    %c0_i32_1 = arith.constant 0 : i32
    %c0_i32_2 = arith.constant 0 : i32
    return %arg1, %c0_i32, %c0_i32_0, %c0_i32_1 : i32, i32, i32, i32
  }
  func.func @transform_2(%arg0: i32, %arg1: i32) -> (i32, i32, i32, i32) {
    %c0_i32 = arith.constant 0 : i32
    %c0_i32_0 = arith.constant 0 : i32
    %c0_i32_1 = arith.constant 0 : i32
    %c0_i32_2 = arith.constant 0 : i32
    return %arg1, %c0_i32, %c0_i32_0, %c0_i32_1 : i32, i32, i32, i32
  }
  func.func @transform_3(%arg0: i32, %arg1: i32) -> (i32, i32, i32, i32) {
    %c0_i32 = arith.constant 0 : i32
    %c0_i32_0 = arith.constant 0 : i32
    %c0_i32_1 = arith.constant 0 : i32
    %c0_i32_2 = arith.constant 0 : i32
    return %arg1, %c0_i32, %c0_i32_0, %c0_i32_1 : i32, i32, i32, i32
  }
  func.func @transform_4(%arg0: i32, %arg1: i32) -> (i32, i32, i32, i32) {
    %c0_i32 = arith.constant 0 : i32
    %c0_i32_0 = arith.constant 0 : i32
    %c0_i32_1 = arith.constant 0 : i32
    %c0_i32_2 = arith.constant 0 : i32
    return %arg0, %c0_i32, %c0_i32_0, %c0_i32_1 : i32, i32, i32, i32
  }
}

</mosaic_0001>

<bundles_post_ra>
// kernel: middle_flow.1
= control target key start
LH: loop header
LB: loop body
LE: loop exit
PB: predicated region body
PF: predicated region fallthrough
CT: control target
= control target key end

     0   :  { %9 = vsyncpa [#allocation7], 0  ;;  %s8567_s0 = inlined_call_operand.vmem [shape: f32[2,16,16,128], index: 0, kind: input, shape index: {}]   ;;  %s8568_s1 = inlined_call_operand.vmem [shape: f32[8,3,9,128], index: 1, kind: input, shape index: {}]   ;;  %s8569_s2 = inlined_call_operand.vmem [shape: bf16[8,3,128,128], index: 2, kind: input, shape index: {}]   ;;  %s8570_s3 = inlined_call_operand.vmem [shape: f32[8,3,1,128], index: 3, kind: input, shape index: {}]   ;;  %s8571_s4 = inlined_call_operand.hbm [shape: f32[2,16,16,128], index: 4, kind: output, shape index: {}]  }
   0x1   :  { %11 = vsyncpa [#allocation7 + $0x1], 0  ;;  %s5503_s15 = smov 0   ;;  %s5505_s16 = smov 0  }
   0x2   :  { %s5507_s17 = smov 0   ;;  %s5509_s18 = smov 0  }
   0x3   :  { %s5511_s19 = smov 0   ;;  %s5513_s20 = smov 0  }
   0x4   :  { %s5515_s21 = smov 0   ;;  %s5517_s22 = smov 0  }
   0x5 LB: > { %8628 = sst [smem:[#allocation9_spill]] %s5464_s20  ;;  %s4951_s23 = sadd.s32 4294967295, %s5472_s22   ;;  %s5472_s22 = sphi %s5517_s22, %s17_s22   ;;  %s5468_s21 = sphi %s5515_s21, %s8866_s21   ;;  %s5464_s20 = sphi %s5513_s20, %s8870_s20   ;;  %s5460_s19 = sphi %s5511_s19, %s8864_s19   ;;  %s5456_s18 = sphi %s5509_s18, %s8863_s18   ;;  %s5452_s17 = sphi %s5507_s17, %s8869_s17   ;;  %s5448_s16 = sphi %s5505_s16, %s8868_s16   ;;  %s5444_s15 = sphi %s5503_s15, %s8867_s15  }
   0x6   : > { %8629 = sst [smem:[#allocation10_spill]] %s5468_s21  ;;  %s4952_s24 = sadd.s32 4294967294, %s5472_s22  }
   0x7   : > { %s26_s25 = sadd.s32 1, %s5464_s20  ;;  %s29_s26 = sadd.s32 1, %s5468_s21 }
   0x8   : > { %p27_p0 = scmp.ge.s32.totalorder %s26_s25, 8  ;;  %p150_p1 = scmp.ne.s32.totalorder %s5452_s17, %s5448_s16 }
   0x9   : > { %p151_p2 = scmp.eq.s32.totalorder %s4951_s23, 15  ;;  %p156_p4 = scmp.ne.s32.totalorder %s5448_s16, %s5444_s15 }
   0xa   : > { %s8872_s25 = smov (%p27_p0, %s26_s25), 0  ;;  %s8874_s26 = smov (!%p27_p0, %s29_s26), %s5468_s21 }
   0xb   : > { %8630 = sst [smem:[#allocation11_spill]] %s8872_s25  ;;  %p5552_p3 = por %p151_p2, %p150_p1 }
   0xc   : > { %p31_p5 = scmp.ge.s32.totalorder %s8874_s26, 2  ;;  %p157_p6 = scmp.eq.s32.totalorder %s4952_s24, 15 }
   0xd   : > { %p4955_p7 = scmp.ge.s32.totalorder %s5472_s22, 1  ;;  %p206_p8 = scmp.lt.s32.totalorder %s5472_s22, 17 }
   0xe   : > { %s8876_s26 = smov (%p31_p5, %s8874_s26), 0  ;;  %p5562_p9 = por %p157_p6, %p156_p4 }
   0xf   : > { %8632 = sst [smem:[#allocation12_spill]] %s8876_s26  ;;  %p207_p10 = pnand %p4955_p7, %p206_p8 }
  0x10   : > { %s137_s29 = ssub.s32 %s5468_s21, %s8876_s26  ;;  %s140_s30 = sadd.s32 1, %s5452_s17 }
  0x11   : > { %p138_p11 = scmp.eq.s32.totalorder %s137_s29, 0  ;;  %210 = sbr.rel (%p207_p10) target bundleno = 1053 (0x41d), region = 36 }
  0x13   : > { %s5570_s5 = scalar_select %p138_p11, %s5452_s17, %s140_s30  }
  0x15   : > { %8634 = sst [smem:[#allocation13_spill]] %s5570_s5 }
  0x18   : > { %s8574_s6 = sand.u32 1, %s5448_s16   ;;  %p246_p12 = scmp.lt.s32.totalorder %s5460_s19, 1 }
  0x19   : > { %s4956_s7 = sshll.u32 %s8574_s6, 8  ;;  %p251_p13 = scmp.lt.s32.totalorder %s5456_s18, 7 }
  0x1a   : > { %s247_s8 = scalar_select %p246_p12, %s5460_s19, 1 }
  0x1b   : > { %s252_s9 = scalar_select %p251_p13, %s5456_s18, 7 }
  0x1c   : > { %s5038_s10 = sshll.u32 %s247_s8, 8  ;;  %p4961_p0 = scmp.ne.s32.totalorder %s5456_s18, 0 }
  0x1d   : > { %s5582_s13 = scalar_lea.vmem %s8567_s0, %s5038_s10  ;;  %s5272_s14 = smul.u32 48, %s252_s9 }
  0x1e   : > { %s5273_s23 = smul.u32 192, %s252_s9  ;;  %s5599_s10 = scalar_lea.vmem [#allocation6], %s4956_s7  ;;  %v270_v0 = vld [vmem:[%s5582_s13] sm:$0xff] (!%p4961_p0)  ;;  %v271_v1 = vld [vmem:[%s5582_s13 + $0x8] sm:$0xff] (!%p4961_p0)  ;;  %v272_v2 = vld [vmem:[%s5582_s13 + $0x10] sm:$0xff] (!%p4961_p0) }
  0x1f   : > { %s5587_s30 = scalar_lea.vmem %s8568_s1, %s5272_s14  ;;  %s5274_s26 = smul.u32 3, %s252_s9  ;;  %302 = vst [vmem:[#allocation2] sm:$0xff] (!%p4961_p0), %v270_v0  ;;  %303 = vst [vmem:[#allocation2 + $0x8] sm:$0xff] (!%p4961_p0), %v271_v1  ;;  %v273_v3 = vld [vmem:[%s5582_s13 + $0x18] sm:$0xff] (!%p4961_p0)  ;;  %v274_v4 = vld [vmem:[%s5582_s13 + $0x20] sm:$0xff] (!%p4961_p0) }
  0x20   : > { %s5592_s6 = scalar_lea.vmem %s8569_s2, %s5273_s23  ;;  %269 = sbr.rel (%p4961_p0) target bundleno = 47 (0x2f), region = 40  ;;  %304 = vst [vmem:[#allocation2 + $0x10] sm:$0xff] (!%p4961_p0), %v272_v2  ;;  %v275_v5 = vld [vmem:[%s5582_s13 + $0x28] sm:$0xff] (!%p4961_p0)  ;;  %305 = vst [vmem:[#allocation2 + $0x18] sm:$0xff] (!%p4961_p0), %v273_v3  ;;  %v276_v6 = vld [vmem:[%s5582_s13 + $0x30] sm:$0xff] (!%p4961_p0) }
  0x21   : > { %s5597_s5 = scalar_lea.vmem %s8570_s3, %s5274_s26  ;;  %306 = vst [vmem:[#allocation2 + $0x20] sm:$0xff] (!%p4961_p0), %v274_v4  ;;  %307 = vst [vmem:[#allocation2 + $0x28] sm:$0xff] (!%p4961_p0), %v275_v5  ;;  %v277_v7 = vld [vmem:[%s5582_s13 + $0x38] sm:$0xff] (!%p4961_p0)  ;;  %v278_v8 = vld [vmem:[%s5582_s13 + $0x40] sm:$0xff] (!%p4961_p0) }
  0x22   : > { %308 = vst [vmem:[#allocation2 + $0x30] sm:$0xff] (!%p4961_p0), %v276_v6  ;;  %309 = vst [vmem:[#allocation2 + $0x38] sm:$0xff] (!%p4961_p0), %v277_v7  ;;  %v279_v9 = vld [vmem:[%s5582_s13 + $0x48] sm:$0xff] (!%p4961_p0)  ;;  %v280_v10 = vld [vmem:[%s5582_s13 + $0x50] sm:$0xff] (!%p4961_p0) }
  0x23   : > { %310 = vst [vmem:[#allocation2 + $0x40] sm:$0xff] (!%p4961_p0), %v278_v8  ;;  %v281_v11 = vld [vmem:[%s5582_s13 + $0x58] sm:$0xff] (!%p4961_p0)  ;;  %311 = vst [vmem:[#allocation2 + $0x48] sm:$0xff] (!%p4961_p0), %v279_v9  ;;  %v282_v12 = vld [vmem:[%s5582_s13 + $0x60] sm:$0xff] (!%p4961_p0) }
  0x24   : > { %312 = vst [vmem:[#allocation2 + $0x50] sm:$0xff] (!%p4961_p0), %v280_v10  ;;  %313 = vst [vmem:[#allocation2 + $0x58] sm:$0xff] (!%p4961_p0), %v281_v11  ;;  %v283_v13 = vld [vmem:[%s5582_s13 + $0x68] sm:$0xff] (!%p4961_p0)  ;;  %v284_v14 = vld [vmem:[%s5582_s13 + $0x70] sm:$0xff] (!%p4961_p0) }
  0x25   : > { %314 = vst [vmem:[#allocation2 + $0x60] sm:$0xff] (!%p4961_p0), %v282_v12  ;;  %315 = vst [vmem:[#allocation2 + $0x68] sm:$0xff] (!%p4961_p0), %v283_v13  ;;  %v285_v15 = vld [vmem:[%s5582_s13 + $0x78] sm:$0xff] (!%p4961_p0)  ;;  %v286_v16 = vld [vmem:[%s5582_s13 + $0x80] sm:$0xff] (!%p4961_p0) }
  0x26   : > { %316 = vst [vmem:[#allocation2 + $0x70] sm:$0xff] (!%p4961_p0), %v284_v14  ;;  %v287_v17 = vld [vmem:[%s5582_s13 + $0x88] sm:$0xff] (!%p4961_p0)  ;;  %317 = vst [vmem:[#allocation2 + $0x78] sm:$0xff] (!%p4961_p0), %v285_v15  ;;  %v288_v18 = vld [vmem:[%s5582_s13 + $0x90] sm:$0xff] (!%p4961_p0) }
  0x27   : > { %318 = vst [vmem:[#allocation2 + $0x80] sm:$0xff] %v286_v16  ;;  %319 = vst [vmem:[#allocation2 + $0x88] sm:$0xff] %v287_v17  ;;  %v289_v19 = vld [vmem:[%s5582_s13 + $0x98] sm:$0xff]  ;;  %v290_v20 = vld [vmem:[%s5582_s13 + $0xa0] sm:$0xff] }
  0x28   : > { %320 = vst [vmem:[#allocation2 + $0x90] sm:$0xff] %v288_v18  ;;  %321 = vst [vmem:[#allocation2 + $0x98] sm:$0xff] %v289_v19  ;;  %v291_v21 = vld [vmem:[%s5582_s13 + $0xa8] sm:$0xff]  ;;  %v292_v22 = vld [vmem:[%s5582_s13 + $0xb0] sm:$0xff] }
  0x29   : > { %322 = vst [vmem:[#allocation2 + $0xa0] sm:$0xff] %v290_v20  ;;  %v293_v23 = vld [vmem:[%s5582_s13 + $0xb8] sm:$0xff]  ;;  %323 = vst [vmem:[#allocation2 + $0xa8] sm:$0xff] %v291_v21  ;;  %v294_v24 = vld [vmem:[%s5582_s13 + $0xc0] sm:$0xff] }
  0x2a   : > { %324 = vst [vmem:[#allocation2 + $0xb0] sm:$0xff] %v292_v22  ;;  %325 = vst [vmem:[#allocation2 + $0xb8] sm:$0xff] %v293_v23  ;;  %v295_v25 = vld [vmem:[%s5582_s13 + $0xc8] sm:$0xff]  ;;  %v296_v26 = vld [vmem:[%s5582_s13 + $0xd0] sm:$0xff] }
  0x2b   : > { %326 = vst [vmem:[#allocation2 + $0xc0] sm:$0xff] %v294_v24  ;;  %327 = vst [vmem:[#allocation2 + $0xc8] sm:$0xff] %v295_v25  ;;  %v297_v27 = vld [vmem:[%s5582_s13 + $0xd8] sm:$0xff]  ;;  %v298_v28 = vld [vmem:[%s5582_s13 + $0xe0] sm:$0xff] }
  0x2c   : > { %328 = vst [vmem:[#allocation2 + $0xd0] sm:$0xff] %v296_v26  ;;  %v299_v29 = vld [vmem:[%s5582_s13 + $0xe8] sm:$0xff]  ;;  %329 = vst [vmem:[#allocation2 + $0xd8] sm:$0xff] %v297_v27  ;;  %v300_v30 = vld [vmem:[%s5582_s13 + $0xf0] sm:$0xff] }
  0x2d   : > { %330 = vst [vmem:[#allocation2 + $0xe0] sm:$0xff] %v298_v28  ;;  %331 = vst [vmem:[#allocation2 + $0xe8] sm:$0xff] %v299_v29  ;;  %v301_v31 = vld [vmem:[%s5582_s13 + $0xf8] sm:$0xff] }
  0x2e   : > { %332 = vst [vmem:[#allocation2 + $0xf0] sm:$0xff] %v300_v30  ;;  %333 = vst [vmem:[#allocation2 + $0xf8] sm:$0xff] %v301_v31 }
  0x2f PF: > { %v5349_v32 = vld [vmem:[%s5592_s6] sm:$0xff]   ;;  %v344_v33 = vlaneseq  ;;  %v5350_v34 = vld [vmem:[%s5592_s6 + $0x8] sm:$0xff]   ;;  %v5351_v35 = vld [vmem:[%s5592_s6 + $0x10] sm:$0xff]   ;;  %v5474_v51 = vmov 0.0   ;;  %p5032_p1 = scmp.ne.s32.totalorder %s5456_s18, 7 }
  0x30   : > { %5112 = vmatprep.subr.bf16.mxu0 %v5349_v32  ;;  %5256 = vmatprep.subr.bf16.mxu1 %v5349_v32  ;;  %v5352_v38 = vld [vmem:[%s5592_s6 + $0x18] sm:$0xff]   ;;  %v359_v39 = vld [vmem:[#allocation2] sm:$0xff]  ;;  %v360_v40 = vld [vmem:[#allocation2 + $0x8] sm:$0xff]  ;;  %v5685_v0 = vrot.slane %v5474_v51, 7  ;;  %v5701_v5 = vrot.slane %v5474_v51, 1 }
  0x31   : > { %5113 = vmatpush3.bf16.msra.mxu0 %v5349_v32  ;;  %5264 = vmatpush3.bf16.msra.mxu1 %v5349_v32  ;;  %v5637_v36 = vshrl.u32 %v344_v33, 7  ;;  %v5646_v42 = vld [vmem:[%s5587_s30] sm:$0xff]  ;;  %v361_v44 = vld [vmem:[#allocation2 + $0x10] sm:$0xff]  ;;  %v5651_v46 = vmax.f32 %v359_v39, 0.0  ;;  %v5653_v47 = vmax.f32 %v360_v40, 0.0  ;;  %v362_v49 = vld [vmem:[#allocation2 + $0x18] sm:$0xff] }
  0x32   : > { %5114 = vmatprep.subr.bf16.mxu0 %v5350_v34  ;;  %5257 = vmatprep.subr.bf16.mxu1 %v5350_v34  ;;  %v363_v45 = vld [vmem:[#allocation2 + $0x20] sm:$0xff]  ;;  %v364_v50 = vld [vmem:[#allocation2 + $0x28] sm:$0xff]  ;;  %v5667_v55 = vmax.f32 %v361_v44, 0.0  ;;  %v5678_v59 = vmax.f32 %v362_v49, 0.0  ;;  %8640 = vst [vmem:[#allocation19_spill] sm:$0xff] %v5685_v0  ;;  %8643 = vst [vmem:[#allocation22_spill] sm:$0xff] %v5701_v5 }
  0x33   : > { %v346_v37 = vadd.s32 8, %v5637_v36  ;;  %v5642_v41 = vsub.s32 0, %v5637_v36  ;;  %vm347_vm0 = vcmp.ge.s32.totalorder %v5637_v36, 1  ;;  %v5649_v43 = vsub.s32 2, %v5637_v36  ;;  %v5353_v48 = vld [vmem:[%s5592_s6 + $0x20] sm:$0xff]   ;;  %v5354_v63 = vld [vmem:[%s5592_s6 + $0x28] sm:$0xff]  }
  0x34   : > { %v5658_v52 = vsel %vm347_vm0, 1.0, %v5474_v51  ;;  %v5669_v56 = vmax.f32 %v363_v45, 0.0  ;;  %v5676_v58 = vsub.s32 3, %v5637_v36  ;;  %v5680_v60 = vmax.f32 %v364_v50, 0.0  ;;  %v5689_v1 = vld [vmem:[%s5587_s30 + $0x8] ss:$0 sm:$0xff] }
  0x35   : > { %5115 = vmatpush3.bf16.msra.mxu0 %v5350_v34  ;;  %5265 = vmatpush3.bf16.msra.mxu1 %v5350_v34  ;;  %8635 = vst [vmem:[#allocation14_spill] sm:$0xff] %v5642_v41  ;;  %vm354_vm1 = vcmp.le.s32.totalorder %v346_v37, 14  ;;  %8636 = vst [vmem:[#allocation15_spill] sm:$0xff] %v5649_v43  ;;  %v5665_v54 = vrot.slane %v5646_v42, %v5642_v41  ;;  %v5673_v57 = vrot.slane %v5646_v42, %v5649_v43  ;;  %v5355_v10 = vld [vmem:[%s5592_s6 + $0x30] sm:$0xff]   ;;  %v5356_v22 = vld [vmem:[%s5592_s6 + $0x38] sm:$0xff]  }
  0x36   : > { %5116 = vmatprep.subr.bf16.mxu0 %v5351_v35  ;;  %5258 = vmatprep.subr.bf16.mxu1 %v5351_v35  ;;  %8637 = vst [vmem:[#allocation16_spill] sm:$0xff] %v5658_v52  ;;  %v5661_v53 = vsel %vm354_vm1, 1.0, %v5474_v51  ;;  %8639 = vst [vmem:[#allocation18_spill] sm:$0xff] %v5676_v58  ;;  %v530_v61 = vrot.slane %v5651_v46, 7  ;;  %v538_v62 = vrot.slane %v5653_v47, 7  ;;  %vm545_vm2 = vcmp.lt.s32.totalorder %v5637_v36, 1 }
  0x37   : > { %8638 = vst [vmem:[#allocation17_spill] sm:$0xff] %v5661_v53  ;;  %v5693_v2 = vmul.f32 %v5658_v52, %v5665_v54  ;;  %v5696_v3 = vsub.s32 5, %v5637_v36  ;;  %v5699_v4 = vsub.s32 6, %v5637_v36  ;;  %v5705_v6 = vmul.f32 %v5661_v53, %v5673_v57 }
  0x38   : > { %v5709_v7 = vrot.slane %v5646_v42, %v5676_v58  ;;  %v531_v8 = vrot.slane %v5667_v55, 7  ;;  %v532_v9 = vrot.slane %v5669_v56, 7  ;;  %v539_v11 = vrot.slane %v5678_v59, 7 }
  0x39   : > { %5117 = vmatpush3.bf16.msra.mxu0 %v5351_v35  ;;  %5266 = vmatpush3.bf16.msra.mxu1 %v5351_v35  ;;  %8641 = vst [vmem:[#allocation20_spill] sm:$0xff] %v5696_v3  ;;  %8642 = vst [vmem:[#allocation21_spill] sm:$0xff] %v5699_v4  ;;  %v8576_v12 = vrot.slane %v5680_v60, 7  ;;  %v555_v13 = vsel %vm545_vm2, %v538_v62, %v530_v61  ;;  %v5719_v14 = vsub.s32 1, %v5637_v36  ;;  %v615_v15 = vrot.slane %v5651_v46, 1 }
  0x3a   : > { %5118 = vmatprep.subr.bf16.mxu0 %v5352_v38  ;;  %5259 = vmatprep.subr.bf16.mxu1 %v5352_v38  ;;  %v616_v16 = vrot.slane %v5667_v55, 1  ;;  %v623_v17 = vrot.slane %v5653_v47, 1  ;;  %vm630_vm3 = vcmp.lt.s32.totalorder %v5637_v36, 7  ;;  %v5727_v18 = vmul.f32 %v5689_v1, %v5661_v53 }
  0x3b   : > { %8644 = vst [vmem:[#allocation23_spill] sm:$0xff] %v5719_v14  ;;  %v562_v19 = vmul.f32 %v5685_v0, %v5693_v2  ;;  %v563_v20 = vmul.f32 %v5685_v0, %v5665_v54  ;;  %v5735_v21 = vrot.slane %v5646_v42, %v5719_v14  ;;  %v5740_v23 = vmul.f32 %v5658_v52, %v5709_v7 }
  0x3c   : > { %v5744_v24 = vrot.slane %v5646_v42, %v5696_v3  ;;  %v5748_v25 = vrot.slane %v5646_v42, %v5699_v4  ;;  %v547_v26 = vsel %vm545_vm2, %v530_v61, %v538_v62  ;;  %v564_v27 = vmul.f32 %v555_v13, %v5693_v2 }
  0x3d   : > { %5119 = vmatpush3.bf16.msra.mxu0 %v5352_v38  ;;  %5267 = vmatpush3.bf16.msra.mxu1 %v5352_v38  ;;  %v582_v28 = vmul.f32 0.0, %v5735_v21  ;;  %v584_v29 = vmul.f32 %v5735_v21, %v5651_v46  ;;  %v624_v30 = vrot.slane %v5678_v59, 1  ;;  %v556_v31 = vsel %vm545_vm2, %v539_v11, %v531_v8 }
  0x3e   : > { %5120 = vmatprep.subr.bf16.mxu0 %v5353_v48  ;;  %5260 = vmatprep.subr.bf16.mxu1 %v5353_v48  ;;  %v632_v32 = vsel %vm630_vm3, %v615_v15, %v623_v17  ;;  %v647_v33 = vmul.f32 %v5701_v5, %v5673_v57  ;;  %v648_v34 = vmul.f32 %v5701_v5, %v5705_v6 }
  0x3f   : > { %v565_v35 = vmul.f32 %v547_v26, %v5665_v54  ;;  %v585_v37 = vmul.f32 %v5735_v21, %v5653_v47  ;;  %v598_v38 = vadd.f32 %v582_v28, %v562_v19  ;;  %v599_v39 = vadd.f32 %v582_v28, %v563_v20 }
  0x40   : > { %v5770_v40 = vmul.f32 %v5661_v53, %v5744_v24  ;;  %v548_v44 = vsel %vm545_vm2, %v531_v8, %v539_v11  ;;  %v566_v45 = vmul.f32 %v556_v31, %v5693_v2  ;;  %v586_v49 = vmul.f32 %v5735_v21, %v5667_v55 }
  0x41   : > { %5121 = vmatpush3.bf16.msra.mxu0 %v5353_v48  ;;  %5268 = vmatpush3.bf16.msra.mxu1 %v5353_v48  ;;  %v640_v48 = vsel %vm630_vm3, %v623_v17, %v615_v15  ;;  %v600_v50 = vadd.f32 %v584_v29, %v564_v27  ;;  %v649_v51 = vmul.f32 %v632_v32, %v5673_v57  ;;  %v5803_v28 = vsub.s32 4, %v5637_v36 }
  0x42   : > { %5122 = vmatprep.subr.bf16.mxu0 %v5354_v63  ;;  %5261 = vmatprep.subr.bf16.mxu1 %v5354_v63  ;;  %v727_v61 = vmul.f32 %v555_v13, %v5740_v23  ;;  %v633_v62 = vsel %vm630_vm3, %v616_v16, %v624_v30  ;;  %v664_v8 = vadd.f32 %v648_v34, %v599_v39  ;;  %v5812_v39 = vsub.s32 7, %v5637_v36 }
  0x43   : > { %v728_v11 = vmul.f32 %v547_v26, %v5709_v7  ;;  %v567_v19 = vmul.f32 %v548_v44, %v5665_v54  ;;  %v587_v15 = vmul.f32 %v5735_v21, %v5678_v59  ;;  %v601_v17 = vadd.f32 %v585_v37, %v565_v35  ;;  %8645 = vst [vmem:[#allocation24_spill] sm:$0xff] %v5803_v28 }
  0x44   : > { %v650_v20 = vmul.f32 %v640_v48, %v5705_v6  ;;  %v5790_v13 = vmul.f32 %v5658_v52, %v5748_v25  ;;  %v5798_v26 = vsel %vm545_vm2, %v532_v9, %v8576_v12  ;;  %v641_v27 = vsel %vm630_vm3, %v624_v30, %v616_v16  ;;  %8646 = vst [vmem:[#allocation25_spill] sm:$0xff] %v5812_v39 }
  0x45   : > { %5123 = vmatpush3.bf16.msra.mxu0 %v5354_v63  ;;  %5269 = vmatpush3.bf16.msra.mxu1 %v5354_v63  ;;  %v663_v63 = vadd.f32 %v647_v33, %v598_v38  ;;  %v651_v29 = vmul.f32 %v633_v62, %v5673_v57  ;;  %v665_v33 = vadd.f32 %v649_v51, %v600_v50 }
  0x46   : > { %5124 = vmatprep.subr.bf16.mxu0 %v5355_v10  ;;  %5262 = vmatprep.subr.bf16.mxu1 %v5355_v10  ;;  %v729_v34 = vmul.f32 %v556_v31, %v5740_v23  ;;  %v744_v37 = vadd.f32 %v728_v11, %v664_v8  ;;  %v5809_v38 = vrot.slane %v5646_v42, %v5803_v28 }
  0x47   : > { %v743_v35 = vadd.f32 %v727_v61, %v663_v63  ;;  %v603_v16 = vadd.f32 %v587_v15, %v567_v19  ;;  %v652_v30 = vmul.f32 %v641_v27, %v5705_v6  ;;  %v666_v12 = vadd.f32 %v650_v20, %v601_v17 }
  0x48   : > { %v764_v50 = vmul.f32 %v5809_v38, %v5653_v47  ;;  %v827_v51 = vmul.f32 %v632_v32, %v5744_v24  ;;  %v828_v61 = vmul.f32 %v640_v48, %v5770_v40  ;;  %v8647_v63 = vrot.slane %v5680_v60, 7 }
  0x49   : > { %5125 = vmatpush3.bf16.msra.mxu0 %v5355_v10  ;;  %5270 = vmatpush3.bf16.msra.mxu1 %v5355_v10  ;;  %v602_v10 = vadd.f32 %v586_v49, %v566_v45  ;;  %v730_v45 = vmul.f32 %v548_v44, %v5709_v7  ;;  %v763_v49 = vmul.f32 %v5809_v38, %v5651_v46 }
  0x4a   : > { %5126 = vmatprep.subr.bf16.mxu0 %v5356_v22  ;;  %5263 = vmatprep.subr.bf16.mxu1 %v5356_v22  ;;  %v557_v8 = vsel %vm545_vm2, %v8647_v63, %v532_v9  ;;  %v745_v11 = vadd.f32 %v729_v34, %v665_v33  ;;  %v5831_v46 = vrot.slane %v5646_v42, %v5812_v39 }
  0x4b   : > { %v765_v47 = vmul.f32 %v5809_v38, %v5667_v55  ;;  %v779_v32 = vadd.f32 %v763_v49, %v743_v35  ;;  %v780_v19 = vadd.f32 %v764_v50, %v744_v37  ;;  %v909_v48 = vmul.f32 %v548_v44, %v5748_v25 }
  0x4c   : > { %v667_v15 = vadd.f32 %v651_v29, %v602_v10  ;;  %v668_v17 = vadd.f32 %v652_v30, %v603_v16  ;;  %v746_v20 = vadd.f32 %v730_v45, %v666_v12  ;;  %v766_v9 = vmul.f32 %v5809_v38, %v5678_v59 }
  0x4d   : > { %5127 = vmatpush3.bf16.msra.mxu0 %v5356_v22  ;;  %5271 = vmatpush3.bf16.msra.mxu1 %v5356_v22  ;;  %v908_v22 = vmul.f32 %v556_v31, %v5790_v13  ;;  %v843_v33 = vadd.f32 %v827_v51, %v779_v32  ;;  %v844_v34 = vadd.f32 %v828_v61, %v780_v19 }
  0x4e   : > { %v944_v31 = vmul.f32 %v5831_v46, %v5667_v55  ;;  %v945_v42 = vmul.f32 %v5831_v46, %v5678_v59  ;;  %v731_v63 = vmul.f32 %v557_v8, %v5740_v23  ;;  %v732_v35 = vmul.f32 %v5798_v26, %v5709_v7 }
  0x4f   : > { %v829_v44 = vmul.f32 %v633_v62, %v5744_v24  ;;  %v1008_v12 = vmul.f32 %v5689_v1, %v633_v62  ;;  %v781_v10 = vadd.f32 %v765_v47, %v745_v11  ;;  %v924_v29 = vadd.f32 %v908_v22, %v843_v33 }
  0x50   : > { %v925_v37 = vadd.f32 %v909_v48, %v844_v34  ;;  %v1009_v16 = vmul.f32 %v641_v27, %v5727_v18  ;;  %v782_v30 = vadd.f32 %v766_v9, %v746_v20  ;;  %v830_v55 = vmul.f32 %v641_v27, %v5770_v40 }
  0x51   : > { %v960_v45 = vadd.f32 %v944_v31, %v924_v29  ;;  %v747_v59 = vadd.f32 %v731_v63, %v667_v15  ;;  %v748_v50 = vadd.f32 %v732_v35, %v668_v17  ;;  %v845_v51 = vadd.f32 %v829_v44, %v781_v10  ;;  %v366_v63 = vld [vmem:[#allocation2 + $0x38] sm:$0xff] }
  0x52   : > { %v961_v49 = vadd.f32 %v945_v42, %v925_v37  ;;  %v846_v19 = vadd.f32 %v830_v55, %v782_v30  ;;  %v568_v39 = vmul.f32 %v557_v8, %v5693_v2  ;;  %v569_v62 = vmul.f32 %v5798_v26, %v5665_v54 }
  0x53   : > { %v1024_v61 = vadd.f32 %v1008_v12, %v960_v45  ;;  %v588_v11 = vmul.f32 %v5735_v21, %v5669_v56  ;;  %v589_v27 = vmul.f32 %v5735_v21, %v5680_v60  ;;  %v617_v47 = vrot.slane %v5669_v56, 1 }
  0x54   : > { %v1025_v32 = vadd.f32 %v1009_v16, %v961_v49  ;;  %v625_v48 = vrot.slane %v5680_v60, 1  ;;  %v910_v17 = vmul.f32 %v557_v8, %v5790_v13  ;;  %v911_v20 = vmul.f32 %v5798_v26, %v5748_v25 }
  0x55   : > { %v604_v15 = vadd.f32 %v588_v11, %v568_v39  ;;  %v946_v9 = vmul.f32 %v5831_v46, %v5669_v56  ;;  %v605_v33 = vadd.f32 %v589_v27, %v569_v62  ;;  %v947_v42 = vmul.f32 %v5831_v46, %v5680_v60  ;;  %v365_v39 = vld [vmem:[#allocation2 + $0x30] sm:$0xff] }
  0x56   : > { %v1040_v22 = vpack.c.bf16 %v1025_v32, %v1024_v61  ;;  %v634_v34 = vsel %vm630_vm3, %v617_v47, %v625_v48  ;;  %v642_v31 = vsel %vm630_vm3, %v625_v48, %v617_v47  ;;  %v926_v12 = vadd.f32 %v910_v17, %v845_v51 }
  0x57   : > { %v653_v8 = vmul.f32 %v634_v34, %v5673_v57  ;;  %v654_v26 = vmul.f32 %v642_v31, %v5705_v6  ;;  %v831_v35 = vmul.f32 %v634_v34, %v5744_v24  ;;  %v832_v44 = vmul.f32 %v642_v31, %v5770_v40 }
  0x58   : > { %5128 = vmatprep.mubr.bf16.mxu0 %v1040_v22  ;;  %v927_v10 = vadd.f32 %v911_v20, %v846_v19  ;;  %v1010_v29 = vmul.f32 %v5689_v1, %v634_v34  ;;  %v1011_v37 = vmul.f32 %v642_v31, %v5727_v18  ;;  %v381_v55 = vmax.f32 %v365_v39, 0.0 }
  0x59   : > { %v669_v16 = vadd.f32 %v653_v8, %v604_v15  ;;  %v670_v30 = vadd.f32 %v654_v26, %v605_v33  ;;  %v382_v45 = vmax.f32 %v366_v63, 0.0  ;;  %v962_v49 = vadd.f32 %v946_v9, %v926_v12 }
  0x5a   : > { %v963_v61 = vadd.f32 %v947_v42, %v927_v10  ;;  %v767_v32 = vmul.f32 %v5809_v38, %v5669_v56  ;;  %v768_v62 = vmul.f32 %v5809_v38, %v5680_v60  ;;  %v533_v11 = vrot.slane %v381_v55, 7 }
  0x5b   : > { %v541_v22 = vrot.slane %v382_v45, 7  ;;  %v590_v51 = vmul.f32 %v5735_v21, %v381_v55  ;;  %v591_v19 = vmul.f32 %v5735_v21, %v382_v45  ;;  %v1026_v27 = vadd.f32 %v1010_v29, %v962_v49 }
  0x5c   : > { %v1027_v47 = vadd.f32 %v1011_v37, %v963_v61  ;;  %v618_v48 = vrot.slane %v381_v55, 1  ;;  %v626_v15 = vrot.slane %v382_v45, 1  ;;  %v783_v56 = vadd.f32 %v767_v32, %v747_v59  ;;  %v367_v61 = vld [vmem:[#allocation2 + $0x40] sm:$0xff]  ;;  %v368_v32 = vld [vmem:[#allocation2 + $0x48] sm:$0xff] }
  0x5d   : > { %v550_v17 = vsel %vm545_vm2, %v533_v11, %v541_v22  ;;  %v558_v20 = vsel %vm545_vm2, %v541_v22, %v533_v11  ;;  %v784_v9 = vadd.f32 %v768_v62, %v748_v50 }
  0x5e   : > { %v1041_v33 = vpack.c.bf16 %v1027_v47, %v1026_v27  ;;  %v570_v60 = vmul.f32 %v558_v20, %v5693_v2  ;;  %v571_v34 = vmul.f32 %v550_v17, %v5665_v54  ;;  %v635_v31 = vsel %vm630_vm3, %v618_v48, %v626_v15 }
  0x5f   : > { %v643_v42 = vsel %vm630_vm3, %v626_v15, %v618_v48  ;;  %v655_v39 = vmul.f32 %v635_v31, %v5673_v57  ;;  %v733_v63 = vmul.f32 %v558_v20, %v5740_v23  ;;  %v734_v8 = vmul.f32 %v550_v17, %v5709_v7 }
  0x60   : > { %5129 = vmatmul.mubr.bf16.vlgmr.msra.gmra.mrb[0].mxu0 %v1041_v33  ;;  %v606_v59 = vadd.f32 %v590_v51, %v570_v60  ;;  %v607_v50 = vadd.f32 %v591_v19, %v571_v34  ;;  %v656_v26 = vmul.f32 %v643_v42, %v5705_v6  ;;  %v833_v12 = vmul.f32 %v635_v31, %v5744_v24 }
  0x61   : > { %v834_v10 = vmul.f32 %v643_v42, %v5770_v40  ;;  %v847_v29 = vadd.f32 %v831_v35, %v783_v56  ;;  %v848_v37 = vadd.f32 %v832_v44, %v784_v9  ;;  %v912_v49 = vmul.f32 %v558_v20, %v5790_v13 }
  0x62   : > { %v671_v62 = vadd.f32 %v655_v39, %v606_v59  ;;  %v672_v11 = vadd.f32 %v656_v26, %v607_v50  ;;  %v913_v22 = vmul.f32 %v550_v17, %v5748_v25  ;;  %v948_v27 = vmul.f32 %v5831_v46, %v381_v55 }
  0x63   : > { %v928_v51 = vadd.f32 %v912_v49, %v847_v29  ;;  %v949_v19 = vmul.f32 %v5831_v46, %v382_v45  ;;  %v1012_v47 = vmul.f32 %v5689_v1, %v635_v31  ;;  %v1013_v48 = vmul.f32 %v643_v42, %v5727_v18 }
  0x64   : > { %v929_v15 = vadd.f32 %v913_v22, %v848_v37  ;;  %v383_v35 = vmax.f32 %v367_v61, 0.0  ;;  %v5903_v44 = vmax.f32 %v368_v32, 0.0  ;;  %v749_v20 = vadd.f32 %v733_v63, %v669_v16 }
  0x65   : > { %v964_v56 = vadd.f32 %v948_v27, %v928_v51  ;;  %v750_v9 = vadd.f32 %v734_v8, %v670_v30  ;;  %v769_v33 = vmul.f32 %v5809_v38, %v381_v55  ;;  %v770_v17 = vmul.f32 %v5809_v38, %v382_v45 }
  0x66   : > { %v965_v60 = vadd.f32 %v949_v19, %v929_v15  ;;  %v534_v34 = vrot.slane %v383_v35, 7  ;;  %v542_v39 = vrot.slane %v5903_v44, 7  ;;  %v592_v59 = vmul.f32 %v5735_v21, %v383_v35 }
  0x67   : > { %v1028_v31 = vadd.f32 %v1012_v47, %v964_v56  ;;  %v593_v42 = vmul.f32 %v5735_v21, %v5903_v44  ;;  %v619_v50 = vrot.slane %v383_v35, 1  ;;  %v627_v26 = vrot.slane %v5903_v44, 1 }
  0x68   : > { %v1029_v16 = vadd.f32 %v1013_v48, %v965_v60  ;;  %v551_v30 = vsel %vm545_vm2, %v534_v34, %v542_v39  ;;  %v559_v55 = vsel %vm545_vm2, %v542_v39, %v534_v34  ;;  %v785_v45 = vadd.f32 %v769_v33, %v749_v20  ;;  %v369_v33 = vld [vmem:[#allocation2 + $0x50] sm:$0xff]  ;;  %v370_v60 = vld [vmem:[#allocation2 + $0x58] sm:$0xff] }
  0x69   : > { %v572_v63 = vmul.f32 %v559_v55, %v5693_v2  ;;  %v573_v8 = vmul.f32 %v551_v30, %v5665_v54  ;;  %v636_v29 = vsel %vm630_vm3, %v619_v50, %v627_v26  ;;  %v644_v37 = vsel %vm630_vm3, %v627_v26, %v619_v50 }
  0x6a   : > { %v1042_v49 = vpack.c.bf16 %v1029_v16, %v1028_v31  ;;  %v657_v61 = vmul.f32 %v636_v29, %v5673_v57  ;;  %v658_v32 = vmul.f32 %v644_v37, %v5705_v6  ;;  %v735_v22 = vmul.f32 %v559_v55, %v5740_v23 }
  0x6b   : > { %v608_v27 = vadd.f32 %v592_v59, %v572_v63  ;;  %v609_v51 = vadd.f32 %v593_v42, %v573_v8  ;;  %v736_v19 = vmul.f32 %v551_v30, %v5709_v7  ;;  %v786_v47 = vadd.f32 %v770_v17, %v750_v9 }
  0x6c   : > { %5132 = vmatprep.mubr.bf16.mxu0 %v1042_v49  ;;  %v835_v48 = vmul.f32 %v636_v29, %v5744_v24  ;;  %v836_v15 = vmul.f32 %v644_v37, %v5770_v40  ;;  %v849_v20 = vadd.f32 %v833_v12, %v785_v45  ;;  %v914_v56 = vmul.f32 %v559_v55, %v5790_v13 }
  0x6d   : > { %v673_v34 = vadd.f32 %v657_v61, %v608_v27  ;;  %v674_v39 = vadd.f32 %v658_v32, %v609_v51  ;;  %v850_v31 = vadd.f32 %v834_v10, %v786_v47  ;;  %v915_v50 = vmul.f32 %v551_v30, %v5748_v25 }
  0x6e   : > { %v930_v59 = vadd.f32 %v914_v56, %v849_v20  ;;  %v950_v42 = vmul.f32 %v5831_v46, %v383_v35  ;;  %v951_v9 = vmul.f32 %v5831_v46, %v5903_v44  ;;  %v1014_v17 = vmul.f32 %v5689_v1, %v636_v29 }
  0x6f   : > { %v931_v26 = vadd.f32 %v915_v50, %v850_v31  ;;  %v1015_v12 = vmul.f32 %v644_v37, %v5727_v18  ;;  %v385_v16 = vmax.f32 %v369_v33, 0.0  ;;  %v5935_v55 = vmax.f32 %v370_v60, 0.0 }
  0x70   : > { %v966_v45 = vadd.f32 %v950_v42, %v930_v59  ;;  %v751_v63 = vadd.f32 %v735_v22, %v671_v62  ;;  %v752_v8 = vadd.f32 %v736_v19, %v672_v11  ;;  %v771_v10 = vmul.f32 %v5809_v38, %v383_v35 }
  0x71   : > { %v967_v30 = vadd.f32 %v951_v9, %v931_v26  ;;  %v535_v49 = vrot.slane %v385_v16, 7  ;;  %v543_v61 = vrot.slane %v5935_v55, 7  ;;  %v594_v32 = vmul.f32 %v5735_v21, %v385_v16 }
  0x72   : > { %v1030_v27 = vadd.f32 %v1014_v17, %v966_v45  ;;  %v595_v29 = vmul.f32 %v5735_v21, %v5935_v55  ;;  %v620_v51 = vrot.slane %v385_v16, 1  ;;  %v628_v37 = vrot.slane %v5935_v55, 1 }
  0x73   : > { %v1031_v47 = vadd.f32 %v1015_v12, %v967_v30  ;;  %v552_v62 = vsel %vm545_vm2, %v535_v49, %v543_v61  ;;  %v560_v11 = vsel %vm545_vm2, %v543_v61, %v535_v49  ;;  %v772_v35 = vmul.f32 %v5809_v38, %v5903_v44  ;;  %v371_v30 = vld [vmem:[#allocation2 + $0x60] sm:$0xff]  ;;  %v372_v49 = vld [vmem:[#allocation2 + $0x68] sm:$0xff] }
  0x74   : > { %v574_v22 = vmul.f32 %v560_v11, %v5693_v2  ;;  %v575_v19 = vmul.f32 %v552_v62, %v5665_v54  ;;  %v637_v20 = vsel %vm630_vm3, %v620_v51, %v628_v37  ;;  %v645_v56 = vsel %vm630_vm3, %v628_v37, %v620_v51  ;;  %v5963_v61 = vld [vmem:[%s5592_s6 + $0x40] sm:$0xff]  }
  0x75   : > { %v1043_v33 = vpack.c.bf16 %v1031_v47, %v1030_v27  ;;  %v659_v60 = vmul.f32 %v637_v20, %v5673_v57  ;;  %v660_v31 = vmul.f32 %v645_v56, %v5705_v6  ;;  %v737_v50 = vmul.f32 %v560_v11, %v5740_v23  ;;  %8648 = vst [vmem:[#allocation26_spill] sm:$0xff] %v5963_v61 }
  0x76   : > { %v610_v59 = vadd.f32 %v594_v32, %v574_v22  ;;  %v611_v44 = vadd.f32 %v595_v29, %v575_v19  ;;  %v738_v42 = vmul.f32 %v552_v62, %v5709_v7  ;;  %v787_v9 = vadd.f32 %v771_v10, %v751_v63  ;;  %5160 = vmatprep.subr.bf16.mxu1 %v5963_v61 }
  0x77   : > { %5133 = vmatmul.mubr.bf16.gmra.mrb[4].mxu0 %v1043_v33  ;;  %v788_v17 = vadd.f32 %v772_v35, %v752_v8  ;;  %v837_v26 = vmul.f32 %v637_v20, %v5744_v24  ;;  %v838_v12 = vmul.f32 %v645_v56, %v5770_v40  ;;  %v916_v45 = vmul.f32 %v560_v11, %v5790_v13 }
  0x78   : > { %v5965_v27 = vadd.f32 %v659_v60, %v610_v59  ;;  %v5967_v51 = vadd.f32 %v660_v31, %v611_v44  ;;  %v851_v32 = vadd.f32 %v835_v48, %v787_v9  ;;  %v917_v29 = vmul.f32 %v552_v62, %v5748_v25 }
  0x79   : > { %v852_v63 = vadd.f32 %v836_v15, %v788_v17  ;;  %v952_v8 = vmul.f32 %v5831_v46, %v385_v16  ;;  %v953_v10 = vmul.f32 %v5831_v46, %v5935_v55  ;;  %v1016_v37 = vmul.f32 %v5689_v1, %v637_v20 }
  0x7a   : > { %v932_v47 = vadd.f32 %v916_v45, %v851_v32  ;;  %v1017_v11 = vmul.f32 %v645_v56, %v5727_v18  ;;  %v5976_v35 = vmax.f32 %v371_v30, 0.0  ;;  %v5978_v22 = vmax.f32 %v372_v49, 0.0 }
  0x7b   : > { %v933_v48 = vadd.f32 %v917_v29, %v852_v63  ;;  %v753_v19 = vadd.f32 %v737_v50, %v673_v34  ;;  %v754_v62 = vadd.f32 %v738_v42, %v674_v39  ;;  %v773_v15 = vmul.f32 %v5809_v38, %v385_v16 }
  0x7c   : > { %v968_v33 = vadd.f32 %v952_v8, %v932_v47  ;;  %v536_v60 = vrot.slane %v5976_v35, 7  ;;  %v544_v31 = vrot.slane %v5978_v22, 7  ;;  %v596_v20 = vmul.f32 %v5735_v21, %v5976_v35 }
  0x7d   : > { %v969_v59 = vadd.f32 %v953_v10, %v933_v48  ;;  %v597_v56 = vmul.f32 %v5735_v21, %v5978_v22  ;;  %v621_v44 = vrot.slane %v5976_v35, 1  ;;  %v629_v9 = vrot.slane %v5978_v22, 1 }
  0x7e   : > { %v1032_v34 = vadd.f32 %v1016_v37, %v968_v33  ;;  %v553_v39 = vsel %vm545_vm2, %v536_v60, %v544_v31  ;;  %v561_v16 = vsel %vm545_vm2, %v544_v31, %v536_v60  ;;  %v774_v50 = vmul.f32 %v5809_v38, %v5935_v55  ;;  %v373_v60 = vld [vmem:[#allocation2 + $0x70] sm:$0xff]  ;;  %v374_v31 = vld [vmem:[#allocation2 + $0x78] sm:$0xff] }
  0x7f   : > { %v1033_v42 = vadd.f32 %v1017_v11, %v969_v59  ;;  %v576_v17 = vmul.f32 %v561_v16, %v5693_v2  ;;  %v577_v45 = vmul.f32 %v553_v39, %v5665_v54  ;;  %v638_v30 = vsel %vm630_vm3, %v621_v44, %v629_v9 }
  0x80   : > { %v646_v49 = vsel %vm630_vm3, %v629_v9, %v621_v44  ;;  %v661_v32 = vmul.f32 %v638_v30, %v5673_v57  ;;  %v6003_v29 = vmul.f32 %v561_v16, %v5740_v23  ;;  %v6006_v63 = vmul.f32 %v553_v39, %v5709_v7  ;;  %v409_v9 = vld [vmem:[#allocation2 + $0x80] sm:$0xff] }
  0x81   : > { %v1044_v55 = vpack.c.bf16 %v1033_v42, %v1032_v34  ;;  %v612_v8 = vadd.f32 %v596_v20, %v576_v17  ;;  %v613_v10 = vadd.f32 %v597_v56, %v577_v45  ;;  %v662_v37 = vmul.f32 %v646_v49, %v5705_v6  ;;  %v412_v17 = vld [vmem:[#allocation2 + $0x98] sm:$0xff]  ;;  %v413_v45 = vld [vmem:[#allocation2 + $0xa0] sm:$0xff] }
  0x82   : > { %v789_v47 = vadd.f32 %v773_v15, %v753_v19  ;;  %v790_v11 = vadd.f32 %v774_v50, %v754_v62  ;;  %v6010_v48 = vmul.f32 %v638_v30, %v5744_v24  ;;  %v6013_v33 = vmul.f32 %v646_v49, %v5770_v40  ;;  %v410_v19 = vld [vmem:[#allocation2 + $0x88] sm:$0xff]  ;;  %v411_v62 = vld [vmem:[#allocation2 + $0x90] sm:$0xff] }
  0x83   : > { %5136 = vmatprep.mubr.bf16.mxu0 %v1044_v55  ;;  %v6015_v59 = vadd.f32 %v661_v32, %v612_v8  ;;  %v6017_v44 = vadd.f32 %v662_v37, %v613_v10  ;;  %v918_v20 = vmul.f32 %v561_v16, %v5790_v13  ;;  %v919_v56 = vmul.f32 %v553_v39, %v5748_v25  ;;  %v414_v32 = vld [vmem:[#allocation2 + $0xa8] sm:$0xff] }
  0x84   : > { %8649 = vst [vmem:[#allocation27_spill] sm:$0xff] %v6010_v48  ;;  %8650 = vst [vmem:[#allocation28_spill] sm:$0xff] %v6013_v33  ;;  %v853_v15 = vadd.f32 %v837_v26, %v789_v47  ;;  %v854_v34 = vadd.f32 %v838_v12, %v790_v11  ;;  %v954_v50 = vmul.f32 %v5831_v46, %v5976_v35  ;;  %v6027_v8 = vmax.f32 %v373_v60, 0.0 }
  0x85   : > { %8651 = vst [vmem:[#allocation29_spill] sm:$0xff] %v6015_v59  ;;  %8652 = vst [vmem:[#allocation30_spill] sm:$0xff] %v6017_v44  ;;  %v955_v42 = vmul.f32 %v5831_v46, %v5978_v22  ;;  %v1018_v55 = vmul.f32 %v5689_v1, %v638_v30  ;;  %v1019_v16 = vmul.f32 %v646_v49, %v5727_v18  ;;  %v6029_v39 = vmax.f32 %v374_v31, 0.0 }
  0x86   : > { %v934_v10 = vadd.f32 %v918_v20, %v853_v15  ;;  %v935_v26 = vadd.f32 %v919_v56, %v854_v34  ;;  %v6031_v12 = vmax.f32 %v409_v9, 0.0  ;;  %v6033_v37 = vmax.f32 %v410_v19, 0.0 }
  0x87   : > { %8653 = vst [vmem:[#allocation31_spill] sm:$0xff] %v6029_v39  ;;  %v6035_v47 = vmax.f32 %v411_v62, 0.0  ;;  %v6037_v11 = vmax.f32 %v412_v17, 0.0  ;;  %v6039_v28 = vmax.f32 %v413_v45, 0.0  ;;  %v6041_v4 = vmax.f32 %v414_v32, 0.0 }
  0x88   : > { %v970_v30 = vadd.f32 %v954_v50, %v934_v10  ;;  %v971_v49 = vadd.f32 %v955_v42, %v935_v26  ;;  %v702_v60 = vrot.slane %v6027_v8, 7  ;;  %v710_v31 = vrot.slane %v6029_v39, 7 }
  0x89   : > { %v802_v20 = vrot.slane %v6027_v8, 1  ;;  %v810_v56 = vrot.slane %v6029_v39, 1  ;;  %v883_v9 = vrot.slane %v6031_v12, 7  ;;  %v891_v19 = vrot.slane %v6033_v37, 7 }
  0x8a   : > { %v1034_v62 = vadd.f32 %v1018_v55, %v970_v30  ;;  %v1035_v15 = vadd.f32 %v1019_v16, %v971_v49  ;;  %v6051_v34 = vsel %vm545_vm2, %v702_v60, %v710_v31  ;;  %v6055_v50 = vsel %vm545_vm2, %v710_v31, %v702_v60 }
  0x8b   : > { %v6059_v42 = vsel %vm630_vm3, %v802_v20, %v810_v56  ;;  %v6063_v17 = vsel %vm630_vm3, %v810_v56, %v802_v20  ;;  %v6067_v45 = vsel %vm545_vm2, %v883_v9, %v891_v19  ;;  %v6071_v32 = vsel %vm545_vm2, %v891_v19, %v883_v9 }
  0x8c   : > { %8654 = vst [vmem:[#allocation32_spill] sm:$0xff] %v6059_v42  ;;  %8655 = vst [vmem:[#allocation33_spill] sm:$0xff] %v6063_v17  ;;  %v1045_v55 = vpack.c.bf16 %v1035_v15, %v1034_v62  ;;  %v983_v16 = vrot.slane %v6031_v12, 1  ;;  %v991_v10 = vrot.slane %v6033_v37, 1  ;;  %v1075_v26 = vrot.slane %v6035_v47, 7 }
  0x8d   : > { %8656 = vst [vmem:[#allocation34_spill] sm:$0xff] %v6067_v45  ;;  %8657 = vst [vmem:[#allocation35_spill] sm:$0xff] %v6071_v32  ;;  %v1076_v30 = vrot.slane %v6039_v28, 7  ;;  %v1083_v49 = vrot.slane %v6037_v11, 7  ;;  %v1084_v60 = vrot.slane %v6041_v4, 7  ;;  %v1105_v31 = vmul.f32 %v6055_v50, %v5693_v2 }
  0x8e   : > { %5137 = vmatmul.mubr.bf16.gmra.mrb[8].mxu0 %v1045_v55  ;;  %v6083_v20 = vsel %vm630_vm3, %v983_v16, %v991_v10  ;;  %v6087_v56 = vsel %vm630_vm3, %v991_v10, %v983_v16  ;;  %v1106_v9 = vmul.f32 %v6051_v34, %v5665_v54  ;;  %v1107_v19 = vmul.f32 %v6071_v32, %v5693_v2 }
  0x8f   : > { %v1091_v62 = vsel %vm545_vm2, %v1075_v26, %v1083_v49  ;;  %v6097_v15 = vsel %vm545_vm2, %v1076_v30, %v1084_v60  ;;  %v1099_v55 = vsel %vm545_vm2, %v1083_v49, %v1075_v26  ;;  %v6103_v16 = vsel %vm545_vm2, %v1084_v60, %v1076_v30 }
  0x90   : > { %v1108_v10 = vmul.f32 %v6067_v45, %v5665_v54  ;;  %v1109_v3 = vmul.f32 %v1099_v55, %v5693_v2  ;;  %v1110_v58 = vmul.f32 %v1091_v62, %v5665_v54  ;;  %v1121_v53 = vmul.f32 %v5735_v21, %v6027_v8 }
  0x91   : > { %v1122_v14 = vmul.f32 %v5735_v21, %v6029_v39  ;;  %v1123_v26 = vmul.f32 %v5735_v21, %v6031_v12  ;;  %v1124_v30 = vmul.f32 %v5735_v21, %v6033_v37  ;;  %v1125_v49 = vmul.f32 %v5735_v21, %v6035_v47 }
  0x92   : > { %v1126_v60 = vmul.f32 %v5735_v21, %v6037_v11  ;;  %v1137_v52 = vadd.f32 %v1121_v53, %v1105_v31  ;;  %v1155_v43 = vrot.slane %v6035_v47, 1  ;;  %v1163_v41 = vrot.slane %v6037_v11, 1 }
  0x93   : > { %v1138_v5 = vadd.f32 %v1122_v14, %v1106_v9  ;;  %v1139_v0 = vadd.f32 %v1123_v26, %v1107_v19  ;;  %v1140_v61 = vadd.f32 %v1124_v30, %v1108_v10  ;;  %v1141_v44 = vadd.f32 %v1125_v49, %v1109_v3 }
  0x94   : > { %v1142_v59 = vadd.f32 %v1126_v60, %v1110_v58  ;;  %v1171_v33 = vsel %vm630_vm3, %v1155_v43, %v1163_v41  ;;  %v1179_v48 = vsel %vm630_vm3, %v1163_v41, %v1155_v43  ;;  %v1185_v39 = vmul.f32 %v6059_v42, %v5673_v57 }
  0x95   : > { %v1186_v53 = vmul.f32 %v6063_v17, %v5705_v6  ;;  %v1187_v31 = vmul.f32 %v6083_v20, %v5673_v57  ;;  %v1188_v14 = vmul.f32 %v6087_v56, %v5705_v6  ;;  %v1189_v58 = vmul.f32 %v1171_v33, %v5673_v57 }
  0x96   : > { %v1190_v3 = vmul.f32 %v1179_v48, %v5705_v6  ;;  %v1201_v9 = vadd.f32 %v1185_v39, %v1137_v52  ;;  %v1265_v41 = vmul.f32 %v6071_v32, %v5740_v23  ;;  %v1266_v43 = vmul.f32 %v6067_v45, %v5709_v7 }
  0x97   : > { %v1202_v19 = vadd.f32 %v1186_v53, %v1138_v5  ;;  %v1203_v10 = vadd.f32 %v1187_v31, %v1139_v0  ;;  %v1204_v26 = vadd.f32 %v1188_v14, %v1140_v61  ;;  %v1205_v30 = vadd.f32 %v1189_v58, %v1141_v44 }
  0x98   : > { %v1206_v49 = vadd.f32 %v1190_v3, %v1142_v59  ;;  %v1267_v60 = vmul.f32 %v1099_v55, %v5740_v23  ;;  %v1268_v17 = vmul.f32 %v1091_v62, %v5709_v7  ;;  %v1269_v42 = vmul.f32 %v6103_v16, %v5740_v23 }
  0x99   : > { %v1270_v52 = vmul.f32 %v6097_v15, %v5709_v7  ;;  %v1281_v39 = vadd.f32 %v1265_v41, %v1201_v9  ;;  %v1282_v32 = vadd.f32 %v1266_v43, %v1202_v19  ;;  %v1297_v45 = vmul.f32 %v5809_v38, %v6031_v12 }
  0x9a   : > { %v1283_v5 = vadd.f32 %v1267_v60, %v1203_v10  ;;  %v1284_v0 = vadd.f32 %v1268_v17, %v1204_v26  ;;  %v6149_v61 = vadd.f32 %v1269_v42, %v1205_v30  ;;  %v1298_v59 = vmul.f32 %v5809_v38, %v6033_v37 }
  0x9b   : > { %v6153_v44 = vadd.f32 %v1270_v52, %v1206_v49  ;;  %v1299_v53 = vmul.f32 %v5809_v38, %v6035_v47  ;;  %v1300_v31 = vmul.f32 %v5809_v38, %v6037_v11  ;;  %v1313_v14 = vadd.f32 %v1297_v45, %v1281_v39 }
  0x9c   : > { %v1314_v58 = vadd.f32 %v1298_v59, %v1282_v32  ;;  %v1361_v3 = vmul.f32 %v6083_v20, %v5744_v24  ;;  %v1362_v42 = vmul.f32 %v6087_v56, %v5770_v40  ;;  %v1363_v17 = vmul.f32 %v1171_v33, %v5744_v24 }
  0x9d   : > { %v1315_v9 = vadd.f32 %v1299_v53, %v1283_v5  ;;  %v1316_v41 = vadd.f32 %v1300_v31, %v1284_v0  ;;  %v1364_v43 = vmul.f32 %v1179_v48, %v5770_v40  ;;  %v1442_v19 = vmul.f32 %v1099_v55, %v5790_v13 }
  0x9e   : > { %v1377_v10 = vadd.f32 %v1361_v3, %v1313_v14  ;;  %v1378_v26 = vadd.f32 %v1362_v42, %v1314_v58  ;;  %v1443_v30 = vmul.f32 %v1091_v62, %v5748_v25  ;;  %v1474_v45 = vmul.f32 %v5831_v46, %v6035_v47 }
  0x9f   : > { %v1379_v32 = vadd.f32 %v1363_v17, %v1315_v9  ;;  %v1380_v49 = vadd.f32 %v1364_v43, %v1316_v41  ;;  %v1475_v60 = vmul.f32 %v5831_v46, %v6037_v11  ;;  %v1538_v52 = vmul.f32 %v5689_v1, %v1171_v33 }
  0xa0   : > { %v1458_v39 = vadd.f32 %v1442_v19, %v1377_v10  ;;  %v1459_v5 = vadd.f32 %v1443_v30, %v1378_v26  ;;  %v1539_v0 = vmul.f32 %v1179_v48, %v5727_v18  ;;  %v1111_v55 = vmul.f32 %v6103_v16, %v5693_v2 }
  0xa1   : > { %v1112_v62 = vmul.f32 %v6097_v15, %v5665_v54  ;;  %v1127_v47 = vmul.f32 %v5735_v21, %v6039_v28  ;;  %v1128_v59 = vmul.f32 %v5735_v21, %v6041_v4  ;;  %v1156_v11 = vrot.slane %v6039_v28, 1 }
  0xa2   : > { %v1490_v53 = vadd.f32 %v1474_v45, %v1458_v39  ;;  %v1491_v1 = vadd.f32 %v1475_v60, %v1459_v5  ;;  %v1164_v33 = vrot.slane %v6041_v4, 1  ;;  %v1444_v48 = vmul.f32 %v6103_v16, %v5790_v13  ;;  %v6208_v39 = vld [vmem:[%s5587_s30 + $0x8] ss:$0 sm:$0xff] }
  0xa3   : > { %v1143_v31 = vadd.f32 %v1127_v47, %v1111_v55  ;;  %v1144_v14 = vadd.f32 %v1128_v59, %v1112_v62  ;;  %v1445_v58 = vmul.f32 %v6097_v15, %v5748_v25  ;;  %v1476_v3 = vmul.f32 %v5831_v46, %v6039_v28 }
  0xa4   : > { %v1554_v42 = vadd.f32 %v1538_v52, %v1490_v53  ;;  %v1555_v17 = vadd.f32 %v1539_v0, %v1491_v1  ;;  %v1172_v9 = vsel %vm630_vm3, %v1156_v11, %v1164_v33  ;;  %v1180_v41 = vsel %vm630_vm3, %v1164_v33, %v1156_v11 }
  0xa5   : > { %v1191_v43 = vmul.f32 %v1172_v9, %v5673_v57  ;;  %v1192_v16 = vmul.f32 %v1180_v41, %v5705_v6  ;;  %v6196_v19 = vmul.f32 %v1172_v9, %v5744_v24  ;;  %v6199_v15 = vmul.f32 %v1180_v41, %v5770_v40 }
  0xa6   : > { %v1570_v10 = vpack.c.bf16 %v1555_v17, %v1554_v42  ;;  %v1460_v26 = vadd.f32 %v1444_v48, %v1379_v32  ;;  %v1461_v30 = vadd.f32 %v1445_v58, %v1380_v49  ;;  %v1477_v45 = vmul.f32 %v5831_v46, %v6041_v4 }
  0xa7   : > { %v6203_v60 = vadd.f32 %v1191_v43, %v1143_v31  ;;  %v6205_v52 = vadd.f32 %v1192_v16, %v1144_v14  ;;  %v1540_v5 = vmul.f32 %v6208_v39, %v1172_v9  ;;  %v1541_v0 = vmul.f32 %v1180_v41, %v5727_v18  ;;  %v8661_v9 = vld [vmem:[#allocation27_spill] sm:$0xff]  ;;  %v8662_v43 = vld [vmem:[#allocation28_spill] sm:$0xff] }
  0xa8   : > { %5144 = vmatprep.mubr.bf16.mxu1 %v1570_v10  ;;  %v1492_v55 = vadd.f32 %v1476_v3, %v1460_v26  ;;  %v1493_v62 = vadd.f32 %v1477_v45, %v1461_v30  ;;  %v755_v32 = vadd.f32 %v6003_v29, %v5965_v27  ;;  %v756_v49 = vadd.f32 %v6006_v63, %v5967_v51  ;;  %v8658_v29 = vld [vmem:[#allocation31_spill] sm:$0xff]  ;;  %v8663_v30 = vld [vmem:[#allocation29_spill] sm:$0xff] }
  0xa9   : > { %v775_v47 = vmul.f32 %v5809_v38, %v5976_v35  ;;  %v776_v59 = vmul.f32 %v5809_v38, %v5978_v22  ;;  %v920_v11 = vmul.f32 %v6055_v50, %v5790_v13  ;;  %v921_v53 = vmul.f32 %v6051_v34, %v5748_v25  ;;  %v8659_v35 = vld [vmem:[#allocation32_spill] sm:$0xff]  ;;  %v8660_v22 = vld [vmem:[#allocation33_spill] sm:$0xff] }
  0xaa   : > { %v1556_v1 = vadd.f32 %v1540_v5, %v1492_v55  ;;  %v1557_v33 = vadd.f32 %v1541_v0, %v1493_v62  ;;  %v956_v27 = vmul.f32 %v5831_v46, %v6027_v8  ;;  %v957_v51 = vmul.f32 %v5831_v46, %v8658_v29  ;;  %v415_v55 = vld [vmem:[#allocation2 + $0xb0] sm:$0xff] }
  0xab   : > { %v791_v63 = vadd.f32 %v775_v47, %v755_v32  ;;  %v792_v48 = vadd.f32 %v776_v59, %v756_v49  ;;  %v1020_v31 = vmul.f32 %v6208_v39, %v8659_v35  ;;  %v1021_v14 = vmul.f32 %v8660_v22, %v5727_v18  ;;  %v8666_v49 = vld [vmem:[#allocation34_spill] sm:$0xff] }
  0xac   : > { %v1571_v58 = vpack.c.bf16 %v1557_v33, %v1556_v1  ;;  %v741_v3 = vmul.f32 %v6055_v50, %v5740_v23  ;;  %v742_v42 = vmul.f32 %v6051_v34, %v5709_v7  ;;  %v777_v17 = vmul.f32 %v5809_v38, %v6027_v8  ;;  %v8664_v50 = vld [vmem:[#allocation30_spill] sm:$0xff]  ;;  %v8665_v8 = vld [vmem:[#allocation35_spill] sm:$0xff]  ;;  %v416_v1 = vld [vmem:[#allocation2 + $0xb8] sm:$0xff] }
  0xad   : > { %v855_v41 = vadd.f32 %v8661_v9, %v791_v63  ;;  %v856_v16 = vadd.f32 %v8662_v43, %v792_v48  ;;  %v778_v10 = vmul.f32 %v5809_v38, %v8658_v29  ;;  %v841_v26 = vmul.f32 %v8659_v35, %v5744_v24  ;;  %v8667_v33 = vld [vmem:[#allocation26_spill] sm:$0xff] }
  0xae   : > { %5145 = vmatmul.mubr.bf16.vlgmr.msra.gmra.mrb[0].mxu1 %v1571_v58  ;;  %v757_v45 = vadd.f32 %v741_v3, %v8663_v30  ;;  %v758_v5 = vadd.f32 %v742_v42, %v8664_v50  ;;  %v842_v34 = vmul.f32 %v8660_v22, %v5770_v40  ;;  %v922_v0 = vmul.f32 %v8665_v8, %v5790_v13 }
  0xaf   : > { %v936_v62 = vadd.f32 %v920_v11, %v855_v41  ;;  %v937_v32 = vadd.f32 %v921_v53, %v856_v16  ;;  %v923_v47 = vmul.f32 %v8666_v49, %v5748_v25  ;;  %v958_v59 = vmul.f32 %v5831_v46, %v6031_v12  ;;  %5161 = vmatpush3.bf16.msra.mxu1 %v8667_v33 }
  0xb0   : > { %v793_v29 = vadd.f32 %v777_v17, %v757_v45  ;;  %v794_v63 = vadd.f32 %v778_v10, %v758_v5  ;;  %v959_v48 = vmul.f32 %v5831_v46, %v6033_v37  ;;  %v1022_v35 = vmul.f32 %v6208_v39, %v6083_v20 }
  0xb1   : > { %v972_v22 = vadd.f32 %v956_v27, %v936_v62  ;;  %v973_v11 = vadd.f32 %v957_v51, %v937_v32  ;;  %v1023_v53 = vmul.f32 %v6087_v56, %v5727_v18  ;;  %v6261_v58 = vmax.f32 %v415_v55, 0.0 }
  0xb2   : > { %v857_v3 = vadd.f32 %v841_v26, %v793_v29  ;;  %v858_v12 = vadd.f32 %v842_v34, %v794_v63  ;;  %v6263_v42 = vmax.f32 %v416_v1, 0.0  ;;  %v1301_v17 = vmul.f32 %v5809_v38, %v6039_v28 }
  0xb3   : > { %v1036_v9 = vadd.f32 %v1020_v31, %v972_v22  ;;  %v1037_v41 = vadd.f32 %v1021_v14, %v973_v11  ;;  %v1077_v37 = vrot.slane %v6261_v58, 7  ;;  %v1129_v20 = vmul.f32 %v5735_v21, %v6261_v58 }
  0xb4   : > { %v938_v27 = vadd.f32 %v922_v0, %v857_v3  ;;  %v939_v51 = vadd.f32 %v923_v47, %v858_v12  ;;  %v1085_v56 = vrot.slane %v6263_v42, 7  ;;  %v1130_v43 = vmul.f32 %v5735_v21, %v6263_v42  ;;  %v418_v3 = vld [vmem:[#allocation2 + $0xc8] sm:$0xff] }
  0xb5   : > { %v1046_v16 = vpack.c.bf16 %v1037_v41, %v1036_v9  ;;  %v1157_v10 = vrot.slane %v6261_v58, 1  ;;  %v1165_v26 = vrot.slane %v6263_v42, 1  ;;  %v1302_v28 = vmul.f32 %v5809_v38, %v6041_v4 }
  0xb6   : > { %v974_v31 = vadd.f32 %v958_v59, %v938_v27  ;;  %v975_v14 = vadd.f32 %v959_v48, %v939_v51  ;;  %v1093_v30 = vsel %vm545_vm2, %v1077_v37, %v1085_v56  ;;  %v1101_v45 = vsel %vm545_vm2, %v1085_v56, %v1077_v37  ;;  %v417_v48 = vld [vmem:[#allocation2 + $0xc0] sm:$0xff] }
  0xb7   : > { %5140 = vmatprep.mubr.bf16.mxu0 %v1046_v16  ;;  %v1113_v50 = vmul.f32 %v1101_v45, %v5693_v2  ;;  %v1114_v5 = vmul.f32 %v1093_v30, %v5665_v54  ;;  %v1173_v34 = vsel %vm630_vm3, %v1157_v10, %v1165_v26  ;;  %v1181_v8 = vsel %vm630_vm3, %v1165_v26, %v1157_v10 }
  0xb8   : > { %v1038_v4 = vadd.f32 %v1022_v35, %v974_v31  ;;  %v1039_v0 = vadd.f32 %v1023_v53, %v975_v14  ;;  %v1193_v55 = vmul.f32 %v1173_v34, %v5673_v57  ;;  %v1194_v62 = vmul.f32 %v1181_v8, %v5705_v6 }
  0xb9   : > { %v1145_v32 = vadd.f32 %v1129_v20, %v1113_v50  ;;  %v1146_v49 = vadd.f32 %v1130_v43, %v1114_v5  ;;  %v1271_v47 = vmul.f32 %v1101_v45, %v5740_v23  ;;  %v1272_v59 = vmul.f32 %v1093_v30, %v5709_v7 }
  0xba   : > { %v1047_v1 = vpack.c.bf16 %v1039_v0, %v1038_v4  ;;  %v1317_v33 = vadd.f32 %v1301_v17, %v6149_v61  ;;  %v1318_v29 = vadd.f32 %v1302_v28, %v6153_v44  ;;  %v1367_v63 = vmul.f32 %v1173_v34, %v5744_v24  ;;  %v5358_v17 = vld [vmem:[%s5592_s6 + $0x48] sm:$0xff]  }
  0xbb   : > { %v6294_v35 = vadd.f32 %v1193_v55, %v1145_v32  ;;  %v6296_v22 = vadd.f32 %v1194_v62, %v1146_v49  ;;  %v1368_v11 = vmul.f32 %v1181_v8, %v5770_v40  ;;  %v1446_v53 = vmul.f32 %v1101_v45, %v5790_v13  ;;  %5162 = vmatprep.subr.bf16.mxu1 %v5358_v17 }
  0xbc   : > { %5141 = vmatmul.mubr.bf16.gmra.mrb[12].mxu0 %v1047_v1  ;;  %v1381_v12 = vadd.f32 %v6196_v19, %v1317_v33  ;;  %v1382_v9 = vadd.f32 %v6199_v15, %v1318_v29  ;;  %v1447_v61 = vmul.f32 %v1093_v30, %v5748_v25  ;;  %v1478_v44 = vmul.f32 %v5831_v46, %v6261_v58 }
  0xbd   : > { %v1479_v41 = vmul.f32 %v5831_v46, %v6263_v42  ;;  %v1542_v37 = vmul.f32 %v6208_v39, %v1173_v34  ;;  %v1543_v20 = vmul.f32 %v1181_v8, %v5727_v18  ;;  %v433_v27 = vmax.f32 %v417_v48, 0.0  ;;  %5163 = vmatpush3.bf16.msra.mxu1 %v5358_v17  ;;  %v5359_v48 = vld [vmem:[%s5592_s6 + $0x50] sm:$0xff]  }
  0xbe   : > { %v1462_v51 = vadd.f32 %v1446_v53, %v1381_v12  ;;  %v1463_v56 = vadd.f32 %v1447_v61, %v1382_v9  ;;  %v434_v43 = vmax.f32 %v418_v3, 0.0  ;;  %v1287_v19 = vadd.f32 %v1271_v47, %v6203_v60  ;;  %v419_v61 = vld [vmem:[#allocation2 + $0xd0] sm:$0xff]  ;;  %5164 = vmatprep.subr.bf16.mxu1 %v5359_v48 }
  0xbf   : > { %v1078_v15 = vrot.slane %v433_v27, 7  ;;  %v1131_v16 = vmul.f32 %v5735_v21, %v433_v27  ;;  %v1158_v10 = vrot.slane %v433_v27, 1  ;;  %v1288_v26 = vadd.f32 %v1272_v59, %v6205_v52 }
  0xc0   : > { %v1494_v28 = vadd.f32 %v1478_v44, %v1462_v51  ;;  %v1495_v31 = vadd.f32 %v1479_v41, %v1463_v56  ;;  %v1086_v14 = vrot.slane %v434_v43, 7  ;;  %v1132_v30 = vmul.f32 %v5735_v21, %v434_v43  ;;  %v420_v44 = vld [vmem:[#allocation2 + $0xd8] sm:$0xff] }
  0xc1   : > { %v1166_v45 = vrot.slane %v434_v43, 1  ;;  %v1303_v50 = vmul.f32 %v5809_v38, %v6261_v58  ;;  %v1304_v60 = vmul.f32 %v5809_v38, %v6263_v42  ;;  %v1480_v5 = vmul.f32 %v5831_v46, %v433_v27  ;;  %5165 = vmatpush3.bf16.msra.mxu1 %v5359_v48 }
  0xc2   : > { %v1558_v34 = vadd.f32 %v1542_v37, %v1494_v28  ;;  %v1559_v8 = vadd.f32 %v1543_v20, %v1495_v31  ;;  %v1094_v52 = vsel %vm545_vm2, %v1078_v15, %v1086_v14  ;;  %v1102_v4 = vsel %vm545_vm2, %v1086_v14, %v1078_v15 }
  0xc3   : > { %v1115_v0 = vmul.f32 %v1102_v4, %v5693_v2  ;;  %v1116_v55 = vmul.f32 %v1094_v52, %v5665_v54  ;;  %v1174_v58 = vsel %vm630_vm3, %v1158_v10, %v1166_v45  ;;  %v1182_v42 = vsel %vm630_vm3, %v1166_v45, %v1158_v10 }
  0xc4   : > { %v1572_v62 = vpack.c.bf16 %v1559_v8, %v1558_v34  ;;  %v1195_v32 = vmul.f32 %v1174_v58, %v5673_v57  ;;  %v1196_v49 = vmul.f32 %v1182_v42, %v5705_v6  ;;  %v1273_v47 = vmul.f32 %v1102_v4, %v5740_v23 }
  0xc5   : > { %v1147_v59 = vadd.f32 %v1131_v16, %v1115_v0  ;;  %v1148_v1 = vadd.f32 %v1132_v30, %v1116_v55  ;;  %v1274_v33 = vmul.f32 %v1094_v52, %v5709_v7  ;;  %v1319_v29 = vadd.f32 %v1303_v50, %v1287_v19 }
  0xc6   : > { %5148 = vmatprep.mubr.bf16.mxu1 %v1572_v62  ;;  %v1320_v53 = vadd.f32 %v1304_v60, %v1288_v26  ;;  %v1369_v3 = vmul.f32 %v1174_v58, %v5744_v24  ;;  %v1370_v12 = vmul.f32 %v1182_v42, %v5770_v40  ;;  %v1448_v9 = vmul.f32 %v1102_v4, %v5790_v13 }
  0xc7   : > { %v6337_v17 = vadd.f32 %v1195_v32, %v1147_v59  ;;  %v6339_v41 = vadd.f32 %v1196_v49, %v1148_v1  ;;  %v1383_v37 = vadd.f32 %v1367_v63, %v1319_v29  ;;  %v1449_v20 = vmul.f32 %v1094_v52, %v5748_v25 }
  0xc8   : > { %v1384_v51 = vadd.f32 %v1368_v11, %v1320_v53  ;;  %v1481_v56 = vmul.f32 %v5831_v46, %v434_v43  ;;  %v1544_v19 = vmul.f32 %v6208_v39, %v1174_v58  ;;  %v1545_v15 = vmul.f32 %v1182_v42, %v5727_v18 }
  0xc9   : > { %v1464_v16 = vadd.f32 %v1448_v9, %v1383_v37  ;;  %v435_v10 = vmax.f32 %v419_v61, 0.0  ;;  %v6345_v26 = vmax.f32 %v420_v44, 0.0  ;;  %v1289_v28 = vadd.f32 %v1273_v47, %v6294_v35  ;;  %v421_v61 = vld [vmem:[#allocation2 + $0xe0] sm:$0xff]  ;;  %v422_v44 = vld [vmem:[#allocation2 + $0xe8] sm:$0xff] }
  0xca   : > { %v1465_v31 = vadd.f32 %v1449_v20, %v1384_v51  ;;  %v1290_v63 = vadd.f32 %v1274_v33, %v6296_v22  ;;  %v1305_v14 = vmul.f32 %v5809_v38, %v433_v27  ;;  %v1306_v11 = vmul.f32 %v5809_v38, %v434_v43 }
  0xcb   : > { %v1496_v30 = vadd.f32 %v1480_v5, %v1464_v16  ;;  %v1079_v45 = vrot.slane %v435_v10, 7  ;;  %v1087_v50 = vrot.slane %v6345_v26, 7  ;;  %v1133_v60 = vmul.f32 %v5735_v21, %v435_v10 }
  0xcc   : > { %v1497_v34 = vadd.f32 %v1481_v56, %v1465_v31  ;;  %v1134_v8 = vmul.f32 %v5735_v21, %v6345_v26  ;;  %v1159_v52 = vrot.slane %v435_v10, 1  ;;  %v1167_v35 = vrot.slane %v6345_v26, 1 }
  0xcd   : > { %v1560_v4 = vadd.f32 %v1544_v19, %v1496_v30  ;;  %v1095_v22 = vsel %vm545_vm2, %v1079_v45, %v1087_v50  ;;  %v1103_v27 = vsel %vm545_vm2, %v1087_v50, %v1079_v45  ;;  %v1321_v43 = vadd.f32 %v1305_v14, %v1289_v28 }
  0xce   : > { %v1561_v5 = vadd.f32 %v1545_v15, %v1497_v34  ;;  %v1117_v0 = vmul.f32 %v1103_v27, %v5693_v2  ;;  %v1118_v55 = vmul.f32 %v1095_v22, %v5665_v54  ;;  %v1175_v58 = vsel %vm630_vm3, %v1159_v52, %v1167_v35 }
  0xcf   : > { %v1183_v42 = vsel %vm630_vm3, %v1167_v35, %v1159_v52  ;;  %v1197_v62 = vmul.f32 %v1175_v58, %v5673_v57  ;;  %v1275_v32 = vmul.f32 %v1103_v27, %v5740_v23  ;;  %v1276_v49 = vmul.f32 %v1095_v22, %v5709_v7 }
  0xd0   : > { %v1573_v47 = vpack.c.bf16 %v1561_v5, %v1560_v4  ;;  %v1149_v59 = vadd.f32 %v1133_v60, %v1117_v0  ;;  %v1150_v1 = vadd.f32 %v1134_v8, %v1118_v55  ;;  %v1198_v33 = vmul.f32 %v1183_v42, %v5705_v6 }
  0xd1   : > { %v1322_v29 = vadd.f32 %v1306_v11, %v1290_v63  ;;  %v1371_v48 = vmul.f32 %v1175_v58, %v5744_v24  ;;  %v1372_v53 = vmul.f32 %v1183_v42, %v5770_v40  ;;  %v1385_v9 = vadd.f32 %v1369_v3, %v1321_v43  ;;  %v5360_v3 = vld [vmem:[%s5592_s6 + $0x58] sm:$0xff]  }
  0xd2   : > { %5149 = vmatmul.mubr.bf16.gmra.mrb[4].mxu1 %v1573_v47  ;;  %v6372_v37 = vadd.f32 %v1197_v62, %v1149_v59  ;;  %v6374_v20 = vadd.f32 %v1198_v33, %v1150_v1  ;;  %v1450_v51 = vmul.f32 %v1103_v27, %v5790_v13  ;;  %v1451_v56 = vmul.f32 %v1095_v22, %v5748_v25 }
  0xd3   : > { %v1386_v19 = vadd.f32 %v1370_v12, %v1322_v29  ;;  %v1482_v15 = vmul.f32 %v5831_v46, %v435_v10  ;;  %v1483_v16 = vmul.f32 %v5831_v46, %v6345_v26  ;;  %v1546_v28 = vmul.f32 %v6208_v39, %v1175_v58  ;;  %5166 = vmatprep.subr.bf16.mxu1 %v5360_v3 }
  0xd4   : > { %v1466_v31 = vadd.f32 %v1450_v51, %v1385_v9  ;;  %v1547_v63 = vmul.f32 %v1183_v42, %v5727_v18  ;;  %v437_v14 = vmax.f32 %v421_v61, 0.0  ;;  %v438_v11 = vmax.f32 %v422_v44, 0.0  ;;  %5167 = vmatpush3.bf16.msra.mxu1 %v5360_v3  ;;  %v423_v9 = vld [vmem:[#allocation2 + $0xf0] sm:$0xff]  ;;  %v424_v61 = vld [vmem:[#allocation2 + $0xf8] sm:$0xff] }
  0xd5   : > { %v1467_v30 = vadd.f32 %v1451_v56, %v1386_v19  ;;  %v1291_v45 = vadd.f32 %v1275_v32, %v6337_v17  ;;  %v1292_v50 = vadd.f32 %v1276_v49, %v6339_v41  ;;  %v1307_v12 = vmul.f32 %v5809_v38, %v435_v10 }
  0xd6   : > { %v1498_v60 = vadd.f32 %v1482_v15, %v1466_v31  ;;  %v1080_v34 = vrot.slane %v437_v14, 7  ;;  %v1088_v8 = vrot.slane %v438_v11, 7  ;;  %v1135_v52 = vmul.f32 %v5735_v21, %v437_v14 }
  0xd7   : > { %v1499_v35 = vadd.f32 %v1483_v16, %v1467_v30  ;;  %v1136_v4 = vmul.f32 %v5735_v21, %v438_v11  ;;  %v1160_v22 = vrot.slane %v437_v14, 1  ;;  %v1168_v27 = vrot.slane %v438_v11, 1 }
  0xd8   : > { %v1562_v43 = vadd.f32 %v1546_v28, %v1498_v60  ;;  %v1096_v17 = vsel %vm545_vm2, %v1080_v34, %v1088_v8  ;;  %v1104_v41 = vsel %vm545_vm2, %v1088_v8, %v1080_v34  ;;  %v1308_v10 = vmul.f32 %v5809_v38, %v6345_v26 }
  0xd9   : > { %v1563_v5 = vadd.f32 %v1547_v63, %v1499_v35  ;;  %v1119_v0 = vmul.f32 %v1104_v41, %v5693_v2  ;;  %v1120_v55 = vmul.f32 %v1096_v17, %v5665_v54  ;;  %v1176_v21 = vsel %vm630_vm3, %v1160_v22, %v1168_v27  ;;  %v5361_v2 = vld [vmem:[%s5592_s6 + $0x60] sm:$0xff]  }
  0xda   : > { %v1184_v58 = vsel %vm630_vm3, %v1168_v27, %v1160_v22  ;;  %v1199_v42 = vmul.f32 %v1176_v21, %v5673_v57  ;;  %v1277_v62 = vmul.f32 %v1104_v41, %v5740_v23  ;;  %v1278_v32 = vmul.f32 %v1096_v17, %v5709_v7  ;;  %5168 = vmatprep.subr.bf16.mxu1 %v5361_v2 }
  0xdb   : > { %v1574_v49 = vpack.c.bf16 %v1563_v5, %v1562_v43  ;;  %v1151_v47 = vadd.f32 %v1135_v52, %v1119_v0  ;;  %v1152_v26 = vadd.f32 %v1136_v4, %v1120_v55  ;;  %v1200_v59 = vmul.f32 %v1184_v58, %v5705_v6  ;;  %5169 = vmatpush3.bf16.msra.mxu1 %v5361_v2 }
  0xdc   : > { %v1323_v1 = vadd.f32 %v1307_v12, %v1291_v45  ;;  %v1324_v54 = vadd.f32 %v1308_v10, %v1292_v50  ;;  %v1373_v33 = vmul.f32 %v1176_v21, %v5744_v24  ;;  %v1374_v29 = vmul.f32 %v1184_v58, %v5770_v40 }
  0xdd   : > { %5152 = vmatprep.mubr.bf16.mxu1 %v1574_v49  ;;  %v1215_v57 = vadd.f32 %v1199_v42, %v1151_v47  ;;  %v1216_v44 = vadd.f32 %v1200_v59, %v1152_v26  ;;  %v1452_v51 = vmul.f32 %v1104_v41, %v5790_v13  ;;  %v1453_v56 = vmul.f32 %v1096_v17, %v5748_v25 }
  0xde   : > { %v1387_v19 = vadd.f32 %v1371_v48, %v1323_v1  ;;  %v1388_v15 = vadd.f32 %v1372_v53, %v1324_v54  ;;  %v1484_v6 = vmul.f32 %v5831_v46, %v437_v14  ;;  %v1485_v16 = vmul.f32 %v5831_v46, %v438_v11  ;;  %v8668_v54 = vld [vmem:[#allocation19_spill] sm:$0xff] }
  0xdf   : > { %v1548_v28 = vmul.f32 %v6208_v39, %v1176_v21  ;;  %v1549_v3 = vmul.f32 %v1184_v58, %v5727_v18  ;;  %v439_v31 = vmax.f32 %v423_v9, 0.0  ;;  %v440_v63 = vmax.f32 %v424_v61, 0.0 }
  0xe0   : > { %v1468_v30 = vadd.f32 %v1452_v51, %v1387_v19  ;;  %v1469_v45 = vadd.f32 %v1453_v56, %v1388_v15  ;;  %v1293_v50 = vadd.f32 %v1277_v62, %v6372_v37  ;;  %v1294_v12 = vadd.f32 %v1278_v32, %v6374_v20 }
  0xe1   : > { %v1240_v48 = vrot.slane %v439_v31, 7  ;;  %v1248_v53 = vrot.slane %v440_v63, 7  ;;  %v1309_v60 = vmul.f32 %v5809_v38, %v437_v14  ;;  %v1310_v34 = vmul.f32 %v5809_v38, %v438_v11 }
  0xe2   : > { %v1500_v8 = vadd.f32 %v1484_v6, %v1468_v30  ;;  %v1501_v52 = vadd.f32 %v1485_v16, %v1469_v45  ;;  %v1336_v35 = vrot.slane %v439_v31, 1  ;;  %v1344_v4 = vrot.slane %v440_v63, 1 }
  0xe3   : > { %v1256_v22 = vsel %vm545_vm2, %v1240_v48, %v1248_v53  ;;  %v1264_v27 = vsel %vm545_vm2, %v1248_v53, %v1240_v48  ;;  %v1325_v43 = vadd.f32 %v1309_v60, %v1293_v50  ;;  %v1326_v37 = vadd.f32 %v1310_v34, %v1294_v12  ;;  %v4974_v12 = vld [vmem:[%s5587_s30 + $0x10] sm:$0xff]  ;;  %v5364_v53 = vld [vmem:[%s5592_s6 + $0x78] sm:$0xff]   ;;  %v8671_v60 = vld [vmem:[#allocation15_spill] sm:$0xff] }
  0xe4   : > { %v1564_v17 = vadd.f32 %v1548_v28, %v1500_v8  ;;  %v1565_v20 = vadd.f32 %v1549_v3, %v1501_v52  ;;  %v1279_v41 = vmul.f32 %v1264_v27, %v5740_v23  ;;  %v1280_v14 = vmul.f32 %v1256_v22, %v5709_v7  ;;  %v8673_v52 = vld [vmem:[#allocation23_spill] sm:$0xff] }
  0xe5   : > { %v1352_v11 = vsel %vm630_vm3, %v1336_v35, %v1344_v4  ;;  %v1360_v10 = vsel %vm630_vm3, %v1344_v4, %v1336_v35  ;;  %v1389_v5 = vadd.f32 %v1373_v33, %v1325_v43  ;;  %v1390_v0 = vadd.f32 %v1374_v29, %v1326_v37  ;;  %v5362_v29 = vld [vmem:[%s5592_s6 + $0x68] sm:$0xff]   ;;  %v8674_v4 = vld [vmem:[#allocation17_spill] sm:$0xff]  ;;  %v6472_v37 = vld [vmem:[%s5597_s5] ss:$0 sm:$0xff] }
  0xe6   : > { %v1575_v55 = vpack.c.bf16 %v1565_v20, %v1564_v17  ;;  %v1375_v21 = vmul.f32 %v1352_v11, %v5744_v24  ;;  %v1454_v58 = vmul.f32 %v1264_v27, %v5790_v13  ;;  %v1376_v42 = vmul.f32 %v1360_v10, %v5770_v40  ;;  %5170 = vmatprep.subr.bf16.mxu1 %v5362_v29  ;;  %v8675_v20 = vld [vmem:[#allocation18_spill] sm:$0xff] }
  0xe7   : > { %v1455_v23 = vmul.f32 %v1256_v22, %v5748_v25  ;;  %v1486_v7 = vmul.f32 %v5831_v46, %v439_v31  ;;  %v1487_v62 = vmul.f32 %v5831_v46, %v440_v63  ;;  %v1550_v49 = vmul.f32 %v6208_v39, %v1352_v11  ;;  %5171 = vmatpush3.bf16.msra.mxu1 %v5362_v29 }
  0xe8   : > { %5153 = vmatmul.mubr.bf16.gmra.mrb[8].mxu1 %v1575_v55  ;;  %v1470_v32 = vadd.f32 %v1454_v58, %v1389_v5  ;;  %v1295_v47 = vadd.f32 %v1279_v41, %v1215_v57  ;;  %v1296_v26 = vadd.f32 %v1280_v14, %v1216_v44  ;;  %v1551_v24 = vmul.f32 %v1360_v10, %v5727_v18  ;;  %v8676_v14 = vld [vmem:[#allocation20_spill] sm:$0xff]  ;;  %v8677_v5 = vld [vmem:[#allocation21_spill] sm:$0xff] }
  0xe9   : > { %v1471_v59 = vadd.f32 %v1455_v23, %v1390_v0  ;;  %v1311_v2 = vmul.f32 %v5809_v38, %v439_v31  ;;  %v1312_v1 = vmul.f32 %v5809_v38, %v440_v63  ;;  %v1456_v33 = vmul.f32 %v8668_v54, %v5790_v13  ;;  %v8669_v38 = vld [vmem:[#allocation22_spill] sm:$0xff] }
  0xea   : > { %v1502_v40 = vadd.f32 %v1486_v7, %v1470_v32  ;;  %v1457_v56 = vmul.f32 %v8668_v54, %v5748_v25  ;;  %v1488_v6 = vmul.f32 0.0, %v5831_v46  ;;  %v1552_v13 = vmul.f32 %v6208_v39, %v8669_v38  ;;  %v5363_v46 = vld [vmem:[%s5592_s6 + $0x70] sm:$0xff]   ;;  %v8670_v39 = vld [vmem:[#allocation14_spill] sm:$0xff] }
  0xeb   : > { %v1503_v9 = vadd.f32 %v1487_v62, %v1471_v59  ;;  %v1327_v61 = vadd.f32 %v1311_v2, %v1295_v47  ;;  %v1328_v51 = vadd.f32 %v1312_v1, %v1296_v26  ;;  %v1553_v25 = vmul.f32 %v8669_v38, %v5727_v18  ;;  %5172 = vmatprep.subr.bf16.mxu1 %v5363_v46  ;;  %v8672_v18 = vld [vmem:[#allocation16_spill] sm:$0xff]  ;;  %v6498_v2 = vld [vmem:[%s5587_s30 + $0x18] ss:$0 sm:$0xff] }
  0xec   : > { %v1566_v57 = vadd.f32 %v1550_v49, %v1502_v40  ;;  %5173 = vmatpush3.bf16.msra.mxu1 %v5363_v46  ;;  %v6451_v48 = vrot.slane %v4974_v12, %v8670_v39  ;;  %v6455_v34 = vrot.slane %v4974_v12, %v8671_v60  ;;  %v6462_v35 = vrot.slane %v4974_v12, %v8673_v52  ;;  %v8678_v49 = vld [vmem:[#allocation24_spill] sm:$0xff] }
  0xed   : > { %v1567_v44 = vadd.f32 %v1551_v24, %v1503_v9  ;;  %v1391_v19 = vadd.f32 %v1375_v21, %v1327_v61  ;;  %v1392_v15 = vadd.f32 %v1376_v42, %v1328_v51  ;;  %5174 = vmatprep.subr.bf16.mxu1 %v5364_v53  ;;  %v6477_v41 = vrot.slane %v4974_v12, %v8675_v20  ;;  %v8679_v61 = vld [vmem:[#allocation25_spill] sm:$0xff] }
  0xee   : > { %v6459_v8 = vmul.f32 %v8672_v18, %v6451_v48  ;;  %v6466_v22 = vmul.f32 %v8674_v4, %v6455_v34  ;;  %v1990_v27 = vmul.f32 %v6451_v48, %v8668_v54  ;;  %v2009_v43 = vmul.f32 0.0, %v6462_v35 }
  0xef   : > { %v1576_v16 = vpack.c.bf16 %v1567_v44, %v1566_v57  ;;  %v1472_v28 = vadd.f32 %v1456_v33, %v1391_v19  ;;  %v1473_v3 = vadd.f32 %v1457_v56, %v1392_v15  ;;  %v6480_v11 = vrot.slane %v4974_v12, %v8676_v14 }
  0xf0   : > { %5175 = vmatpush3.bf16.msra.mxu1 %v5364_v53  ;;  %v1989_v17 = vmul.f32 %v6459_v8, %v8668_v54  ;;  %v6483_v0 = vrot.slane %v4974_v12, %v8677_v5  ;;  %v2026_v58 = vadd.f32 %v2009_v43, %v1990_v27  ;;  %v2074_v42 = vmul.f32 %v6466_v22, %v8669_v38 }
  0xf1   : > { %5156 = vmatprep.mubr.bf16.mxu1 %v1576_v16  ;;  %v1504_v31 = vadd.f32 %v1488_v6, %v1472_v28  ;;  %v1505_v63 = vadd.f32 %v1488_v6, %v1473_v3  ;;  %v2073_v32 = vmul.f32 %v6455_v34, %v8669_v38  ;;  %v6492_v47 = vrot.slane %v4974_v12, %v8678_v49 }
  0xf2   : > { %v2025_v62 = vadd.f32 %v2009_v43, %v1989_v17  ;;  %v6502_v1 = vmul.f32 %v8672_v18, %v6477_v41  ;;  %v6507_v29 = vmul.f32 %v8674_v4, %v6480_v11  ;;  %v6511_v9 = vmul.f32 %v8672_v18, %v6483_v0 }
  0xf3   : > { %v1568_v30 = vadd.f32 %v1552_v13, %v1504_v31  ;;  %v1569_v45 = vadd.f32 %v1553_v25, %v1505_v63  ;;  %v6514_v51 = vrot.slane %v4974_v12, %v8679_v61  ;;  %v2090_v56 = vadd.f32 %v2074_v42, %v2026_v58 }
  0xf4   : > { %v6521_v19 = vmul.f32 %v6498_v2, %v8674_v4  ;;  %v2089_v15 = vadd.f32 %v2073_v32, %v2025_v62 }
  0xf5   : > { %v1577_v50 = vpack.c.bf16 %v1569_v45, %v1568_v30 }
  0xf7   : > { %5157 = vmatmul.mubr.bf16.gmra.mrb[12].mxu1 %v1577_v50 }
 0x133   : > { %v5130_v10 = vpop.f32.mrb[0].mxu0 }
 0x134   : > { %v1699_v55 = vadd.f32 %v5130_v10, %v6472_v37  ;;  %v1690_v21 = vpop.f32.mrb[1].mxu0 }
 0x135   : > { %v1691_v23 = vadd.f32 %v6472_v37, %v1690_v21  ;;  %v5131_v7 = vpop.f32.mrb[2].mxu0 }
 0x136   : > { %v6494_v26 = vmax.f32 %v1699_v55, 0.0  ;;  %v1702_v59 = vadd.f32 %v5131_v7, %v6472_v37  ;;  %v1693_v24 = vpop.f32.mrb[3].mxu0 }
 0x137   : > { %v1817_v40 = vmax.f32 %v1691_v23, 0.0  ;;  %v1694_v33 = vadd.f32 %v6472_v37, %v1693_v24 }
 0x138   : > { %v1959_v57 = vrot.slane %v6494_v26, 7  ;;  %v2013_v44 = vmul.f32 %v6462_v35, %v6494_v26  ;;  %v2043_v6 = vrot.slane %v6494_v26, 1  ;;  %v2191_v13 = vmul.f32 %v6492_v47, %v6494_v26 }
 0x139   : > { %v1820_v16 = vmax.f32 %v1702_v59, 0.0  ;;  %v1818_v28 = vmax.f32 %v1694_v33, 0.0  ;;  %v1958_v3 = vrot.slane %v1817_v40, 7  ;;  %v2011_v25 = vmul.f32 %v6462_v35, %v1817_v40 }
 0x13a   : > { %v2042_v31 = vrot.slane %v1817_v40, 1  ;;  %v2189_v63 = vmul.f32 %v6492_v47, %v1817_v40 }
 0x13b   : > { %v1967_v30 = vrot.slane %v1820_v16, 7  ;;  %v2014_v45 = vmul.f32 %v6462_v35, %v1820_v16  ;;  %v2051_v50 = vrot.slane %v1820_v16, 1  ;;  %v2192_v46 = vmul.f32 %v6492_v47, %v1820_v16 }
 0x13c   : > { %v1966_v12 = vrot.slane %v1818_v28, 7  ;;  %v2012_v53 = vmul.f32 %v6462_v35, %v1818_v28  ;;  %v2050_v27 = vrot.slane %v1818_v28, 1  ;;  %v2190_v43 = vmul.f32 %v6492_v47, %v1818_v28 }
 0x13d   : > { %v1975_v17 = vsel %vm545_vm2, %v1959_v57, %v1967_v30  ;;  %v1983_v10 = vsel %vm545_vm2, %v1967_v30, %v1959_v57  ;;  %v2059_v55 = vsel %vm630_vm3, %v2043_v6, %v2051_v50  ;;  %v2067_v21 = vsel %vm630_vm3, %v2051_v50, %v2043_v6 }
 0x13e   : > { %v1974_v58 = vsel %vm545_vm2, %v1958_v3, %v1966_v12  ;;  %v1982_v42 = vsel %vm545_vm2, %v1966_v12, %v1958_v3  ;;  %v2058_v23 = vsel %vm630_vm3, %v2042_v31, %v2050_v27  ;;  %v2066_v7 = vsel %vm630_vm3, %v2050_v27, %v2042_v31 }
 0x13f   : > { %v1991_v62 = vmul.f32 %v1982_v42, %v6459_v8  ;;  %v1992_v32 = vmul.f32 %v1974_v58, %v6451_v48  ;;  %v2075_v59 = vmul.f32 %v2058_v23, %v6455_v34  ;;  %v2076_v24 = vmul.f32 %v2066_v7, %v6466_v22 }
 0x140   : > { %v2153_v40 = vmul.f32 %v1982_v42, %v6502_v1  ;;  %v2154_v33 = vmul.f32 %v1974_v58, %v6477_v41  ;;  %v1993_v57 = vmul.f32 %v1983_v10, %v6459_v8  ;;  %v1994_v6 = vmul.f32 %v1975_v17, %v6451_v48 }
 0x141   : > { %v2027_v28 = vadd.f32 %v2011_v25, %v1991_v62  ;;  %v2028_v3 = vadd.f32 %v2012_v53, %v1992_v32  ;;  %v2077_v31 = vmul.f32 %v2059_v55, %v6455_v34  ;;  %v2078_v30 = vmul.f32 %v2067_v21, %v6466_v22 }
 0x142   : > { %v2170_v50 = vadd.f32 %v2154_v33, %v2090_v56  ;;  %v2029_v12 = vadd.f32 %v2013_v44, %v1993_v57  ;;  %v2030_v27 = vadd.f32 %v2014_v45, %v1994_v6  ;;  %v2155_v61 = vmul.f32 %v1983_v10, %v6502_v1 }
 0x143   : > { %v2091_v49 = vadd.f32 %v2075_v59, %v2027_v28  ;;  %v2092_v5 = vadd.f32 %v2076_v24, %v2028_v3  ;;  %v2156_v42 = vmul.f32 %v1975_v17, %v6477_v41  ;;  %v2169_v58 = vadd.f32 %v2153_v40, %v2089_v15 }
 0x144   : > { %v2206_v14 = vadd.f32 %v2190_v43, %v2170_v50  ;;  %v6560_v20 = vadd.f32 %v2077_v31, %v2029_v12  ;;  %v6562_v4 = vadd.f32 %v2078_v30, %v2030_v27  ;;  %v2253_v25 = vmul.f32 %v2058_v23, %v6480_v11 }
 0x145   : > { %v2171_v53 = vadd.f32 %v2155_v61, %v2091_v49  ;;  %v2172_v62 = vadd.f32 %v2156_v42, %v2092_v5  ;;  %v2205_v32 = vadd.f32 %v2189_v63, %v2169_v58  ;;  %v2254_v56 = vmul.f32 %v2066_v7, %v6507_v29 }
 0x146   : > { %v2255_v44 = vmul.f32 %v2059_v55, %v6480_v11  ;;  %v2256_v45 = vmul.f32 %v2067_v21, %v6507_v29  ;;  %v2334_v59 = vmul.f32 %v1983_v10, %v6511_v9  ;;  %v2335_v15 = vmul.f32 %v1975_v17, %v6483_v0 }
 0x147   : > { %v2207_v43 = vadd.f32 %v2191_v13, %v2171_v53  ;;  %v2208_v24 = vadd.f32 %v2192_v46, %v2172_v62  ;;  %v2269_v40 = vadd.f32 %v2253_v25, %v2205_v32  ;;  %v2270_v33 = vadd.f32 %v2254_v56, %v2206_v14 }
 0x148   : > { %v2370_v23 = vmul.f32 %v6514_v51, %v6494_v26  ;;  %v2371_v5 = vmul.f32 %v6514_v51, %v1820_v16  ;;  %v2434_v10 = vmul.f32 %v6498_v2, %v2059_v55  ;;  %v2435_v3 = vmul.f32 %v2067_v21, %v6521_v19 }
 0x149   : > { %v2271_v61 = vadd.f32 %v2255_v44, %v2207_v43  ;;  %v2272_v63 = vadd.f32 %v2256_v45, %v2208_v24  ;;  %v2350_v7 = vadd.f32 %v2334_v59, %v2269_v40  ;;  %v2351_v57 = vadd.f32 %v2335_v15, %v2270_v33 }
 0x14a   : > { %v5134_v49 = vpop.f32.mrb[4].mxu0 }
 0x14b   : > { %v1715_v6 = vadd.f32 %v5134_v49, %v6472_v37  ;;  %v1706_v28 = vpop.f32.mrb[5].mxu0  ;;  %v2386_v17 = vadd.f32 %v2370_v23, %v2350_v7  ;;  %v2387_v14 = vadd.f32 %v2371_v5, %v2351_v57 }
 0x14c   : > { %v1707_v13 = vadd.f32 %v6472_v37, %v1706_v28  ;;  %v5135_v46 = vpop.f32.mrb[6].mxu0 }
 0x14d   : > { %v1718_v26 = vadd.f32 %v5135_v46, %v6472_v37  ;;  %v1709_v16 = vpop.f32.mrb[7].mxu0  ;;  %v6578_v31 = vmax.f32 %v1715_v6, 0.0  ;;  %v2450_v50 = vadd.f32 %v2434_v10, %v2386_v17  ;;  %v2451_v12 = vadd.f32 %v2435_v3, %v2387_v14 }
 0x14e   : > { %v1710_v30 = vadd.f32 %v6472_v37, %v1709_v16  ;;  %v1821_v27 = vmax.f32 %v1707_v13, 0.0 }
 0x14f   : > { %v6581_v42 = vmax.f32 %v1718_v26, 0.0  ;;  %v2466_v58 = vpack.c.bf16 %v2451_v12, %v2450_v50  ;;  %v1961_v25 = vrot.slane %v6578_v31, 7  ;;  %v2017_v53 = vmul.f32 %v6462_v35, %v6578_v31 }
 0x150   : > { %v1822_v55 = vmax.f32 %v1710_v30, 0.0  ;;  %v2045_v21 = vrot.slane %v6578_v31, 1  ;;  %v1960_v62 = vrot.slane %v1821_v27, 7  ;;  %v2044_v32 = vrot.slane %v1821_v27, 1 }
 0x151   : > { %v1969_v56 = vrot.slane %v6581_v42, 7  ;;  %v2053_v44 = vrot.slane %v6581_v42, 1  ;;  %5176 = vmatprep.mubr.bf16.mxu1 %v2466_v58  ;;  %v2193_v45 = vmul.f32 %v6492_v47, %v1821_v27  ;;  %v2372_v59 = vmul.f32 %v6514_v51, %v1821_v27 }
 0x152   : > { %v1968_v15 = vrot.slane %v1822_v55, 7  ;;  %v2052_v43 = vrot.slane %v1822_v55, 1  ;;  %v2018_v24 = vmul.f32 %v6462_v35, %v6581_v42  ;;  %v2016_v28 = vmul.f32 %v6462_v35, %v1822_v55 }
 0x153   : > { %v1977_v40 = vsel %vm545_vm2, %v1961_v25, %v1969_v56  ;;  %v6597_v33 = vsel %vm545_vm2, %v1969_v56, %v1961_v25  ;;  %v6601_v23 = vsel %vm630_vm3, %v2045_v21, %v2053_v44  ;;  %v2373_v10 = vmul.f32 %v6514_v51, %v1822_v55 }
 0x154   : > { %v1976_v5 = vsel %vm545_vm2, %v1960_v62, %v1968_v15  ;;  %v1984_v49 = vsel %vm545_vm2, %v1968_v15, %v1960_v62  ;;  %v2060_v7 = vsel %vm630_vm3, %v2044_v32, %v2052_v43  ;;  %v2068_v57 = vsel %vm630_vm3, %v2052_v43, %v2044_v32 }
 0x155   : > { %v1996_v6 = vmul.f32 %v1976_v5, %v6451_v48  ;;  %v2336_v13 = vmul.f32 %v1984_v49, %v6511_v9  ;;  %v2080_v46 = vmul.f32 %v2068_v57, %v6466_v22  ;;  %v2337_v17 = vmul.f32 %v1976_v5, %v6483_v0 }
 0x156   : > { %v2436_v14 = vmul.f32 %v6498_v2, %v2060_v7  ;;  %v1997_v3 = vmul.f32 %v6597_v33, %v6459_v8  ;;  %v1998_v30 = vmul.f32 %v1977_v40, %v6451_v48  ;;  %v2069_v50 = vsel %vm630_vm3, %v2053_v44, %v2045_v21 }
 0x157   : > { %v2032_v26 = vadd.f32 %v2016_v28, %v1996_v6  ;;  %v2352_v16 = vadd.f32 %v2336_v13, %v2271_v61  ;;  %v2353_v12 = vadd.f32 %v2337_v17, %v2272_v63  ;;  %v2081_v25 = vmul.f32 %v6601_v23, %v6455_v34 }
 0x158   : > { %v2033_v58 = vadd.f32 %v2017_v53, %v1997_v3  ;;  %v2082_v62 = vmul.f32 %v2069_v50, %v6466_v22  ;;  %v2034_v15 = vadd.f32 %v2018_v24, %v1998_v30  ;;  %v2157_v43 = vmul.f32 %v1984_v49, %v6502_v1 }
 0x159   : > { %v2096_v32 = vadd.f32 %v2080_v46, %v2032_v26  ;;  %v2388_v56 = vadd.f32 %v2372_v59, %v2352_v16  ;;  %v2389_v52 = vadd.f32 %v2373_v10, %v2353_v12  ;;  %v2437_v61 = vmul.f32 %v2068_v57, %v6521_v19 }
 0x15a   : > { %v6628_v6 = vadd.f32 %v2081_v25, %v2033_v58  ;;  %v2158_v28 = vmul.f32 %v1976_v5, %v6477_v41  ;;  %v1995_v63 = vmul.f32 %v1984_v49, %v6459_v8  ;;  %v6632_v21 = vadd.f32 %v2082_v62, %v2034_v15 }
 0x15b   : > { %v2452_v53 = vadd.f32 %v2436_v14, %v2388_v56  ;;  %v2173_v44 = vadd.f32 %v2157_v43, %v6560_v20  ;;  %v2194_v13 = vmul.f32 %v6492_v47, %v1822_v55  ;;  %v2453_v59 = vadd.f32 %v2437_v61, %v2389_v52 }
 0x15c   : > { %v2174_v24 = vadd.f32 %v2158_v28, %v6562_v4  ;;  %v2015_v10 = vmul.f32 %v6462_v35, %v1821_v27  ;;  %v2257_v17 = vmul.f32 %v2060_v7, %v6480_v11  ;;  %v2160_v5 = vmul.f32 %v1977_v40, %v6477_v41 }
 0x15d   : > { %v2209_v46 = vadd.f32 %v2193_v45, %v2173_v44  ;;  %v2467_v3 = vpack.c.bf16 %v2453_v59, %v2452_v53  ;;  %v2258_v49 = vmul.f32 %v2068_v57, %v6507_v29  ;;  %v2338_v20 = vmul.f32 %v6597_v33, %v6511_v9 }
 0x15e   : > { %v2210_v26 = vadd.f32 %v2194_v13, %v2174_v24  ;;  %v2339_v52 = vmul.f32 %v1977_v40, %v6483_v0  ;;  %v2031_v55 = vadd.f32 %v2015_v10, %v1995_v63  ;;  %v2079_v30 = vmul.f32 %v2060_v7, %v6455_v34 }
 0x15f   : > { %v2273_v16 = vadd.f32 %v2257_v17, %v2209_v46  ;;  %5177 = vmatmul.mubr.bf16.vlgmr.msra.gmra.mrb[16].mxu1 %v2467_v3  ;;  %v2176_v12 = vadd.f32 %v2160_v5, %v2096_v32  ;;  %v2196_v58 = vmul.f32 %v6492_v47, %v6581_v42  ;;  %v2374_v56 = vmul.f32 %v6514_v51, %v6578_v31 }
 0x160   : > { %v2274_v45 = vadd.f32 %v2258_v49, %v2210_v26  ;;  %v2095_v28 = vadd.f32 %v2079_v30, %v2031_v55  ;;  %v2195_v7 = vmul.f32 %v6492_v47, %v6578_v31  ;;  %v2159_v13 = vmul.f32 %v6597_v33, %v6502_v1 }
 0x161   : > { %v5138_v14 = vpop.f32.mrb[8].mxu0  ;;  %v2354_v62 = vadd.f32 %v2338_v20, %v2273_v16  ;;  %v2212_v53 = vadd.f32 %v2196_v58, %v2176_v12  ;;  %v2375_v59 = vmul.f32 %v6514_v51, %v6581_v42  ;;  %v2438_v24 = vmul.f32 %v6498_v2, %v6601_v23 }
 0x162   : > { %v1731_v4 = vadd.f32 %v5138_v14, %v6472_v37  ;;  %v1722_v27 = vpop.f32.mrb[9].mxu0  ;;  %v2355_v61 = vadd.f32 %v2339_v52, %v2274_v45  ;;  %v2259_v46 = vmul.f32 %v6601_v23, %v6480_v11  ;;  %v2260_v31 = vmul.f32 %v2069_v50, %v6507_v29 }
 0x163   : > { %v1723_v57 = vadd.f32 %v6472_v37, %v1722_v27  ;;  %v5139_v25 = vpop.f32.mrb[10].mxu0  ;;  %v2390_v63 = vadd.f32 %v2374_v56, %v2354_v62  ;;  %v2439_v17 = vmul.f32 %v2069_v50, %v6521_v19  ;;  %v2175_v14 = vadd.f32 %v2159_v13, %v2095_v28 }
 0x164   : > { %v6651_v40 = vmax.f32 %v1731_v4, 0.0  ;;  %v1734_v15 = vadd.f32 %v5139_v25, %v6472_v37  ;;  %v1725_v43 = vpop.f32.mrb[11].mxu0  ;;  %v2391_v26 = vadd.f32 %v2375_v59, %v2355_v61  ;;  %v2276_v16 = vadd.f32 %v2260_v31, %v2212_v53 }
 0x165   : > { %v1726_v32 = vadd.f32 %v6472_v37, %v1725_v43  ;;  %v1825_v44 = vmax.f32 %v1723_v57, 0.0  ;;  %v2454_v33 = vadd.f32 %v2438_v24, %v2390_v63  ;;  %v2211_v58 = vadd.f32 %v2195_v7, %v2175_v14 }
 0x166   : > { %v1963_v10 = vrot.slane %v6651_v40, 7  ;;  %v6668_v3 = vmax.f32 %v1734_v15, 0.0  ;;  %v2021_v42 = vmul.f32 %v6462_v35, %v6651_v40  ;;  %v2047_v49 = vrot.slane %v6651_v40, 1 }
 0x167   : > { %v1826_v5 = vmax.f32 %v1726_v32, 0.0  ;;  %v1962_v20 = vrot.slane %v1825_v44, 7  ;;  %v2019_v52 = vmul.f32 %v6462_v35, %v1825_v44  ;;  %v2046_v23 = vrot.slane %v1825_v44, 1 }
 0x168   : > { %v1971_v55 = vrot.slane %v6668_v3, 7  ;;  %v2197_v50 = vmul.f32 %v6492_v47, %v1825_v44  ;;  %v2376_v45 = vmul.f32 %v6514_v51, %v1825_v44  ;;  %v2022_v30 = vmul.f32 %v6462_v35, %v6668_v3 }
 0x169   : > { %v1970_v4 = vrot.slane %v1826_v5, 7  ;;  %v2054_v27 = vrot.slane %v1826_v5, 1  ;;  %v2455_v12 = vadd.f32 %v2439_v17, %v2391_v26  ;;  %v2020_v43 = vmul.f32 %v6462_v35, %v1826_v5 }
 0x16a   : > { %v1979_v57 = vsel %vm545_vm2, %v1963_v10, %v1971_v55  ;;  %v2055_v32 = vrot.slane %v6668_v3, 1  ;;  %v2377_v44 = vmul.f32 %v6514_v51, %v1826_v5  ;;  %v2275_v31 = vadd.f32 %v2259_v46, %v2211_v58 }
 0x16b   : > { %v1978_v25 = vsel %vm545_vm2, %v1962_v20, %v1970_v4  ;;  %v1986_v62 = vsel %vm545_vm2, %v1970_v4, %v1962_v20  ;;  %v2062_v56 = vsel %vm630_vm3, %v2046_v23, %v2054_v27  ;;  %v2070_v15 = vsel %vm630_vm3, %v2054_v27, %v2046_v23 }
 0x16c   : > { %v2468_v61 = vpack.c.bf16 %v2455_v12, %v2454_v33  ;;  %v1999_v28 = vmul.f32 %v1986_v62, %v6459_v8  ;;  %v2000_v7 = vmul.f32 %v1978_v25, %v6451_v48  ;;  %v2083_v63 = vmul.f32 %v2062_v56, %v6455_v34 }
 0x16d   : > { %v2084_v53 = vmul.f32 %v2070_v15, %v6466_v22  ;;  %v2161_v24 = vmul.f32 %v1986_v62, %v6502_v1  ;;  %v2162_v17 = vmul.f32 %v1978_v25, %v6477_v41  ;;  %v2340_v26 = vmul.f32 %v1986_v62, %v6511_v9 }
 0x16e   : > { %5180 = vmatprep.mubr.bf16.mxu1 %v2468_v61  ;;  %v2035_v13 = vadd.f32 %v2019_v52, %v1999_v28  ;;  %v2036_v59 = vadd.f32 %v2020_v43, %v2000_v7  ;;  %v2341_v33 = vmul.f32 %v1978_v25, %v6483_v0  ;;  %v2440_v14 = vmul.f32 %v6498_v2, %v2062_v56 }
 0x16f   : > { %v1987_v4 = vsel %vm545_vm2, %v1971_v55, %v1963_v10  ;;  %v2002_v27 = vmul.f32 %v1979_v57, %v6451_v48  ;;  %v2356_v52 = vadd.f32 %v2340_v26, %v2275_v31  ;;  %v2063_v46 = vsel %vm630_vm3, %v2047_v49, %v2055_v32 }
 0x170   : > { %v2099_v20 = vadd.f32 %v2083_v63, %v2035_v13  ;;  %v2100_v23 = vadd.f32 %v2084_v53, %v2036_v59  ;;  %v2357_v12 = vadd.f32 %v2341_v33, %v2276_v16  ;;  %v2001_v43 = vmul.f32 %v1987_v4, %v6459_v8 }
 0x171   : > { %v2441_v58 = vmul.f32 %v2070_v15, %v6521_v19  ;;  %v2038_v62 = vadd.f32 %v2022_v30, %v2002_v27  ;;  %v2071_v25 = vsel %vm630_vm3, %v2055_v32, %v2047_v49  ;;  %v2085_v61 = vmul.f32 %v2063_v46, %v6455_v34 }
 0x172   : > { %v2392_v28 = vadd.f32 %v2376_v45, %v2356_v52  ;;  %v2393_v7 = vadd.f32 %v2377_v44, %v2357_v12  ;;  %v2037_v10 = vadd.f32 %v2021_v42, %v2001_v43  ;;  %v2086_v55 = vmul.f32 %v2071_v25, %v6466_v22 }
 0x173   : > { %v2198_v16 = vmul.f32 %v6492_v47, %v1826_v5  ;;  %v2261_v63 = vmul.f32 %v2062_v56, %v6480_v11  ;;  %v2177_v53 = vadd.f32 %v2161_v24, %v6628_v6  ;;  %v2178_v13 = vadd.f32 %v2162_v17, %v6632_v21 }
 0x174   : > { %v2456_v59 = vadd.f32 %v2440_v14, %v2392_v28  ;;  %v2457_v30 = vadd.f32 %v2441_v58, %v2393_v7  ;;  %v6716_v31 = vadd.f32 %v2085_v61, %v2037_v10  ;;  %v6718_v49 = vadd.f32 %v2086_v55, %v2038_v62 }
 0x175   : > { %v2262_v45 = vmul.f32 %v2070_v15, %v6507_v29  ;;  %v2163_v42 = vmul.f32 %v1987_v4, %v6502_v1  ;;  %v2213_v32 = vadd.f32 %v2197_v50, %v2177_v53  ;;  %v2214_v44 = vadd.f32 %v2198_v16, %v2178_v13 }
 0x176   : > { %v2199_v5 = vmul.f32 %v6492_v47, %v6651_v40  ;;  %v2469_v56 = vpack.c.bf16 %v2457_v30, %v2456_v59  ;;  %v2164_v6 = vmul.f32 %v1979_v57, %v6477_v41  ;;  %v2342_v21 = vmul.f32 %v1987_v4, %v6511_v9 }
 0x177   : > { %v2277_v24 = vadd.f32 %v2261_v63, %v2213_v32  ;;  %v2278_v17 = vadd.f32 %v2262_v45, %v2214_v44  ;;  %v2343_v26 = vmul.f32 %v1979_v57, %v6483_v0  ;;  %v2179_v33 = vadd.f32 %v2163_v42, %v2099_v20 }
 0x178   : > { %v2200_v15 = vmul.f32 %v6492_v47, %v6668_v3  ;;  %5181 = vmatmul.mubr.bf16.gmra.mrb[20].mxu1 %v2469_v56  ;;  %v2263_v50 = vmul.f32 %v2063_v46, %v6480_v11  ;;  %v2378_v14 = vmul.f32 %v6514_v51, %v6651_v40  ;;  %v2180_v27 = vadd.f32 %v2164_v6, %v2100_v23 }
 0x179   : > { %v2358_v52 = vadd.f32 %v2342_v21, %v2277_v24  ;;  %v2359_v12 = vadd.f32 %v2343_v26, %v2278_v17  ;;  %v2379_v4 = vmul.f32 %v6514_v51, %v6668_v3  ;;  %v2215_v43 = vadd.f32 %v2199_v5, %v2179_v33 }
 0x17a   : > { %v2264_v58 = vmul.f32 %v2071_v25, %v6507_v29  ;;  %v2442_v57 = vmul.f32 %v6498_v2, %v2063_v46  ;;  %v2216_v20 = vadd.f32 %v2200_v15, %v2180_v27  ;;  %v2443_v28 = vmul.f32 %v2071_v25, %v6521_v19  ;;  %v5365_v46 = vld [vmem:[%s5592_s6 + $0x80] sm:$0xff]  }
 0x17b   : > { %v2394_v62 = vadd.f32 %v2378_v14, %v2358_v52  ;;  %v2395_v61 = vadd.f32 %v2379_v4, %v2359_v12  ;;  %v6737_v7 = vadd.f32 %v2263_v50, %v2215_v43  ;;  %5208 = vmatprep.subr.bf16.mxu0 %v5365_v46 }
 0x17c   : > { %v6739_v40 = vadd.f32 %v2264_v58, %v2216_v20  ;;  %5209 = vmatpush3.bf16.msra.mxu0 %v5365_v46 }
 0x17d   : > { %v2458_v23 = vadd.f32 %v2442_v57, %v2394_v62  ;;  %v2459_v10 = vadd.f32 %v2443_v28, %v2395_v61 }
 0x17f   : > { %v2470_v63 = vpack.c.bf16 %v2459_v10, %v2458_v23 }
 0x181   : > { %v5146_v55 = vpop.f32.mrb[0].mxu1  ;;  %5184 = vmatprep.mubr.bf16.mxu1 %v2470_v63 }
 0x182   : > { %v1763_v3 = vadd.f32 %v5146_v55, %v6472_v37  ;;  %v1754_v16 = vpop.f32.mrb[1].mxu1 }
 0x183   : > { %v1755_v53 = vadd.f32 %v6472_v37, %v1754_v16  ;;  %v5147_v13 = vpop.f32.mrb[2].mxu1 }
 0x184   : > { %v6744_v59 = vmax.f32 %v1763_v3, 0.0  ;;  %v1766_v30 = vadd.f32 %v5147_v13, %v6472_v37  ;;  %v1757_v25 = vpop.f32.mrb[3].mxu1 }
 0x185   : > { %v1850_v45 = vmax.f32 %v1755_v53, 0.0  ;;  %v1758_v42 = vadd.f32 %v6472_v37, %v1757_v25 }
 0x186   : > { %v2501_v32 = vrot.slane %v6744_v59, 7  ;;  %v6751_v44 = vmul.f32 %v6462_v35, %v6744_v59  ;;  %v8611_v5 = vrot.slane %v6744_v59, 1  ;;  %v6756_v56 = vmul.f32 %v6492_v47, %v6744_v59 }
 0x187   : > { %v2309_v6 = vrot.slane %v1850_v45, 7  ;;  %v2409_v21 = vrot.slane %v1850_v45, 1  ;;  %v6758_v24 = vmax.f32 %v1766_v30, 0.0  ;;  %v1851_v17 = vmax.f32 %v1758_v42, 0.0 }
 0x188   : > { %8680 = vst [vmem:[#allocation31_spill] sm:$0xff] %v6756_v56  ;;  %v2549_v26 = vmul.f32 %v6462_v35, %v1850_v45  ;;  %v6762_v33 = vmul.f32 %v6492_v47, %v1850_v45  ;;  %v6765_v15 = vmul.f32 %v6514_v51, %v1850_v45  ;;  %v6769_v50 = vmul.f32 %v6514_v51, %v6744_v59 }
 0x189   : > { %8681 = vst [vmem:[#allocation32_spill] sm:$0xff] %v6758_v24  ;;  %v2509_v14 = vrot.slane %v6758_v24, 7  ;;  %v2552_v27 = vmul.f32 %v6462_v35, %v6758_v24  ;;  %v2589_v52 = vrot.slane %v6758_v24, 1  ;;  %v6777_v12 = vmul.f32 %v6492_v47, %v6758_v24 }
 0x18a   : > { %8682 = vst [vmem:[#allocation33_spill] sm:$0xff] %v6762_v33  ;;  %8683 = vst [vmem:[#allocation27_spill] sm:$0xff] %v6765_v15  ;;  %v2317_v4 = vrot.slane %v1851_v17, 7  ;;  %v2417_v43 = vrot.slane %v1851_v17, 1  ;;  %v2550_v58 = vmul.f32 %v6462_v35, %v1851_v17  ;;  %v6781_v57 = vmul.f32 %v6492_v47, %v1851_v17 }
 0x18b   : > { %8684 = vst [vmem:[#allocation28_spill] sm:$0xff] %v6769_v50  ;;  %8685 = vst [vmem:[#allocation29_spill] sm:$0xff] %v6777_v12  ;;  %v6784_v20 = vmul.f32 %v6514_v51, %v1851_v17  ;;  %v6788_v62 = vsel %vm545_vm2, %v2501_v32, %v2509_v14  ;;  %v6792_v61 = vsel %vm545_vm2, %v2509_v14, %v2501_v32 }
 0x18c   : > { %8686 = vst [vmem:[#allocation30_spill] sm:$0xff] %v6781_v57  ;;  %8688 = vst [vmem:[#allocation34_spill] sm:$0xff] %v6788_v62  ;;  %v6798_v28 = vsel %vm630_vm3, %v8611_v5, %v2589_v52  ;;  %v2325_v23 = vsel %vm545_vm2, %v2309_v6, %v2317_v4  ;;  %v2333_v10 = vsel %vm545_vm2, %v2317_v4, %v2309_v6 }
 0x18d   : > { %8687 = vst [vmem:[#allocation35_spill] sm:$0xff] %v6784_v20  ;;  %8689 = vst [vmem:[#allocation26_spill] sm:$0xff] %v6792_v61  ;;  %v2425_v55 = vsel %vm630_vm3, %v2409_v21, %v2417_v43  ;;  %v2433_v3 = vsel %vm630_vm3, %v2417_v43, %v2409_v21  ;;  %v6809_v16 = vmul.f32 %v2333_v10, %v6511_v9 }
 0x18e   : > { %8690 = vst [vmem:[#allocation36_spill] sm:$0xff] %v6798_v28  ;;  %v6812_v63 = vmul.f32 %v2325_v23, %v6483_v0  ;;  %v6815_v53 = vmul.f32 %v6498_v2, %v2425_v55  ;;  %v6818_v13 = vmul.f32 %v2433_v3, %v6521_v19  ;;  %v2533_v30 = vmul.f32 %v2333_v10, %v6459_v8 }
 0x18f   : > { %8691 = vst [vmem:[#allocation37_spill] sm:$0xff] %v6809_v16  ;;  %v5142_v46 = vpop.f32.mrb[12].mxu0  ;;  %v2534_v25 = vmul.f32 %v2325_v23, %v6451_v48  ;;  %v2613_v45 = vmul.f32 %v2425_v55, %v6455_v34  ;;  %v2614_v42 = vmul.f32 %v2433_v3, %v6466_v22  ;;  %v6826_v21 = vmul.f32 %v2333_v10, %v6502_v1 }
 0x190   : > { %8692 = vst [vmem:[#allocation38_spill] sm:$0xff] %v6812_v63  ;;  %8693 = vst [vmem:[#allocation39_spill] sm:$0xff] %v6815_v53  ;;  %v1747_v32 = vadd.f32 %v5142_v46, %v6472_v37  ;;  %v1738_v6 = vpop.f32.mrb[13].mxu0  ;;  %v6829_v17 = vmul.f32 %v2325_v23, %v6477_v41  ;;  %v6832_v14 = vmul.f32 %v2425_v55, %v6480_v11 }
 0x191   : > { %8694 = vst [vmem:[#allocation40_spill] sm:$0xff] %v6818_v13  ;;  %8695 = vst [vmem:[#allocation41_spill] sm:$0xff] %v6826_v21  ;;  %v1739_v4 = vadd.f32 %v6472_v37, %v1738_v6  ;;  %v5143_v43 = vpop.f32.mrb[14].mxu0  ;;  %v2565_v5 = vadd.f32 %v2549_v26, %v2533_v30  ;;  %v2566_v18 = vadd.f32 %v2550_v58, %v2534_v25 }
 0x192   : > { %8696 = vst [vmem:[#allocation42_spill] sm:$0xff] %v6829_v17  ;;  %8697 = vst [vmem:[#allocation43_spill] sm:$0xff] %v6832_v14  ;;  %v6836_v60 = vmul.f32 %v2433_v3, %v6507_v29  ;;  %v6838_v39 = vmax.f32 %v1747_v32, 0.0  ;;  %v1750_v46 = vadd.f32 %v5143_v43, %v6472_v37  ;;  %v1741_v10 = vpop.f32.mrb[15].mxu0  ;;  %v2535_v23 = vmul.f32 %v6792_v61, %v6459_v8 }
 0x193   : > { %v2536_v55 = vmul.f32 %v6788_v62, %v6451_v48  ;;  %v1829_v38 = vmax.f32 %v1739_v4, 0.0  ;;  %v1742_v6 = vadd.f32 %v6472_v37, %v1741_v10  ;;  %v6846_v54 = vadd.f32 %v2613_v45, %v2565_v5 }
 0x194   : > { %8698 = vst [vmem:[#allocation44_spill] sm:$0xff] %v6836_v60  ;;  %v6848_v26 = vadd.f32 %v2614_v42, %v2566_v18  ;;  %v2128_v58 = vrot.slane %v6838_v39, 7  ;;  %v6853_v3 = vmul.f32 %v6492_v47, %v6838_v39  ;;  %v2228_v30 = vrot.slane %v6838_v39, 1 }
 0x195   : > { %8699 = vst [vmem:[#allocation45_spill] sm:$0xff] %v6846_v54  ;;  %v6858_v25 = vmul.f32 %v6462_v35, %v6838_v39  ;;  %v1964_v32 = vrot.slane %v1829_v38, 7  ;;  %v2023_v4 = vmul.f32 %v6462_v35, %v1829_v38  ;;  %v2048_v43 = vrot.slane %v1829_v38, 1 }
 0x196   : > { %8700 = vst [vmem:[#allocation46_spill] sm:$0xff] %v6848_v26  ;;  %v2201_v5 = vmul.f32 %v6492_v47, %v1829_v38  ;;  %v1832_v18 = vmax.f32 %v1750_v46, 0.0  ;;  %v1830_v45 = vmax.f32 %v1742_v6, 0.0  ;;  %v2380_v42 = vmul.f32 %v6514_v51, %v1829_v38 }
 0x197   : > { %v6865_v10 = vmul.f32 %v6514_v51, %v6838_v39  ;;  %v6868_v12 = vadd.f32 %v6751_v44, %v2535_v23  ;;  %v6870_v56 = vadd.f32 %v2552_v27, %v2536_v55  ;;  %v8702_v26 = vrot.slane %v6744_v59, 1 }
 0x198   : > { %v6880_v46 = vmul.f32 %v6798_v28, %v6455_v34  ;;  %v2136_v38 = vrot.slane %v1832_v18, 7  ;;  %v6883_v6 = vmul.f32 %v6492_v47, %v1832_v18  ;;  %v2236_v39 = vrot.slane %v1832_v18, 1 }
 0x199   : > { %8701 = vst [vmem:[#allocation47_spill] sm:$0xff] %v6870_v56  ;;  %v6876_v54 = vsel %vm630_vm3, %v2589_v52, %v8702_v26  ;;  %v6886_v44 = vmul.f32 %v6462_v35, %v1832_v18  ;;  %v1972_v27 = vrot.slane %v1830_v45, 7  ;;  %v2024_v23 = vmul.f32 %v6462_v35, %v1830_v45 }
 0x19a   : > { %8703 = vst [vmem:[#allocation48_spill] sm:$0xff] %v6880_v46  ;;  %v2056_v59 = vrot.slane %v1830_v45, 1  ;;  %v2202_v55 = vmul.f32 %v6492_v47, %v1830_v45  ;;  %v2381_v52 = vmul.f32 %v6514_v51, %v1830_v45  ;;  %v2144_v26 = vsel %vm545_vm2, %v2128_v58, %v2136_v38 }
 0x19b   : > { %v2152_v50 = vsel %vm545_vm2, %v2136_v38, %v2128_v58  ;;  %v2244_v13 = vsel %vm630_vm3, %v2228_v30, %v2236_v39  ;;  %v1980_v60 = vsel %vm545_vm2, %v1964_v32, %v1972_v27  ;;  %v1988_v53 = vsel %vm545_vm2, %v1972_v27, %v1964_v32 }
 0x19c   : > { %v2064_v20 = vsel %vm630_vm3, %v2048_v43, %v2056_v59  ;;  %v2072_v45 = vsel %vm630_vm3, %v2056_v59, %v2048_v43  ;;  %v2003_v24 = vmul.f32 %v1988_v53, %v6459_v8  ;;  %v2004_v14 = vmul.f32 %v1980_v60, %v6451_v48 }
 0x19d   : > { %v2087_v58 = vmul.f32 %v2064_v20, %v6455_v34  ;;  %v2088_v38 = vmul.f32 %v2072_v45, %v6466_v22  ;;  %v2165_v57 = vmul.f32 %v1988_v53, %v6502_v1  ;;  %v2166_v15 = vmul.f32 %v1980_v60, %v6477_v41 }
 0x19e   : > { %v2265_v32 = vmul.f32 %v2064_v20, %v6480_v11  ;;  %v2266_v27 = vmul.f32 %v2072_v45, %v6507_v29  ;;  %v2039_v63 = vadd.f32 %v2023_v4, %v2003_v24  ;;  %v2040_v28 = vadd.f32 %v2024_v23, %v2004_v14 }
 0x19f   : > { %v2344_v43 = vmul.f32 %v1988_v53, %v6511_v9  ;;  %v2345_v59 = vmul.f32 %v1980_v60, %v6483_v0  ;;  %v2444_v33 = vmul.f32 %v6498_v2, %v2064_v20  ;;  %v2445_v17 = vmul.f32 %v2072_v45, %v6521_v19 }
 0x1a0   : > { %v2167_v56 = vmul.f32 %v2152_v50, %v6502_v1  ;;  %v2168_v16 = vmul.f32 %v2144_v26, %v6477_v41  ;;  %v2103_v21 = vadd.f32 %v2087_v58, %v2039_v63  ;;  %v2104_v62 = vadd.f32 %v2088_v38, %v2040_v28 }
 0x1a1   : > { %v2360_v61 = vadd.f32 %v2344_v43, %v6737_v7  ;;  %v2361_v46 = vadd.f32 %v2345_v59, %v6739_v40  ;;  %v2181_v24 = vadd.f32 %v2165_v57, %v6716_v31  ;;  %v2182_v53 = vadd.f32 %v2166_v15, %v6718_v49 }
 0x1a2   : > { %v2252_v60 = vsel %vm630_vm3, %v2236_v39, %v2228_v30  ;;  %v6926_v20 = vmul.f32 %v2244_v13, %v6480_v11  ;;  %v2346_v28 = vmul.f32 %v2152_v50, %v6511_v9  ;;  %v2347_v40 = vmul.f32 %v2144_v26, %v6483_v0 }
 0x1a3   : > { %v2396_v14 = vadd.f32 %v2380_v42, %v2360_v61  ;;  %v2397_v4 = vadd.f32 %v2381_v52, %v2361_v46  ;;  %v6929_v23 = vmul.f32 %v2252_v60, %v6507_v29  ;;  %v2217_v7 = vadd.f32 %v2201_v5, %v2181_v24 }
 0x1a4   : > { %v2218_v63 = vadd.f32 %v2202_v55, %v2182_v53  ;;  %v2383_v31 = vmul.f32 %v6514_v51, %v1832_v18  ;;  %v2446_v57 = vmul.f32 %v6498_v2, %v2244_v13  ;;  %v2447_v30 = vmul.f32 %v2252_v60, %v6521_v19 }
 0x1a5   : > { %v2460_v49 = vadd.f32 %v2444_v33, %v2396_v14  ;;  %v2461_v15 = vadd.f32 %v2445_v17, %v2397_v4  ;;  %v5150_v39 = vpop.f32.mrb[4].mxu1  ;;  %v2281_v61 = vadd.f32 %v2265_v32, %v2217_v7  ;;  %v2531_v46 = vmul.f32 %v2152_v50, %v6459_v8 }
 0x1a6   : > { %v2282_v42 = vadd.f32 %v2266_v27, %v2218_v63  ;;  %v2532_v52 = vmul.f32 %v2144_v26, %v6451_v48  ;;  %v1779_v5 = vadd.f32 %v5150_v39, %v6472_v37  ;;  %v1770_v55 = vpop.f32.mrb[5].mxu1  ;;  %v2611_v58 = vmul.f32 %v2244_v13, %v6455_v34 }
 0x1a7   : > { %v2471_v45 = vpack.c.bf16 %v2461_v15, %v2460_v49  ;;  %v2612_v33 = vmul.f32 %v2252_v60, %v6466_v22  ;;  %v1771_v17 = vadd.f32 %v6472_v37, %v1770_v55  ;;  %v5151_v18 = vpop.f32.mrb[6].mxu1  ;;  %v2362_v38 = vadd.f32 %v2346_v28, %v2281_v61 }
 0x1a8   : > { %v2363_v43 = vadd.f32 %v2347_v40, %v2282_v42  ;;  %v2563_v32 = vadd.f32 %v6858_v25, %v2531_v46  ;;  %v6943_v27 = vmax.f32 %v1779_v5, 0.0  ;;  %v1782_v50 = vadd.f32 %v5151_v18, %v6472_v37  ;;  %v1773_v26 = vpop.f32.mrb[7].mxu1  ;;  %v8705_v18 = vld [vmem:[#allocation26_spill] sm:$0xff] }
 0x1a9   : > { %5185 = vmatmul.mubr.bf16.gmra.mrb[24].mxu1 %v2471_v45  ;;  %v2564_v59 = vadd.f32 %v6886_v44, %v2532_v52  ;;  %v2183_v24 = vadd.f32 %v2167_v56, %v2103_v21  ;;  %v6947_v53 = vmax.f32 %v1771_v17, 0.0  ;;  %v1774_v13 = vadd.f32 %v6472_v37, %v1773_v26 }
 0x1aa   : > { %v2398_v60 = vadd.f32 %v6865_v10, %v2362_v38  ;;  %v2399_v14 = vadd.f32 %v2383_v31, %v2363_v43  ;;  %v2503_v4 = vrot.slane %v6943_v27, 7  ;;  %v6954_v25 = vmul.f32 %v6462_v35, %v6943_v27  ;;  %v8706_v43 = vld [vmem:[#allocation34_spill] sm:$0xff] }
 0x1ab   : > { %v2583_v28 = vrot.slane %v6943_v27, 1  ;;  %v6959_v7 = vmul.f32 %v6492_v47, %v6943_v27  ;;  %v2502_v56 = vrot.slane %v6947_v53, 7  ;;  %v2553_v37 = vmul.f32 %v6462_v35, %v6947_v53 }
 0x1ac   : > { %v2582_v21 = vrot.slane %v6947_v53, 1  ;;  %v6967_v10 = vmul.f32 %v6492_v47, %v6947_v53  ;;  %v6969_v44 = vmax.f32 %v1782_v50, 0.0  ;;  %v6971_v63 = vmax.f32 %v1774_v13, 0.0  ;;  %v8707_v50 = vld [vmem:[#allocation41_spill] sm:$0xff] }
 0x1ad   : > { %v2462_v40 = vadd.f32 %v2446_v57, %v2398_v60  ;;  %v2463_v31 = vadd.f32 %v2447_v30, %v2399_v14  ;;  %v2627_v49 = vadd.f32 %v2611_v58, %v2563_v32  ;;  %v2628_v15 = vadd.f32 %v2612_v33, %v2564_v59  ;;  %v8704_v33 = vld [vmem:[#allocation48_spill] sm:$0xff]  ;;  %v8708_v59 = vld [vmem:[#allocation37_spill] sm:$0xff]  ;;  %v8710_v60 = vld [vmem:[#allocation42_spill] sm:$0xff] }
 0x1ae   : > { %v2184_v39 = vadd.f32 %v2168_v16, %v2104_v62  ;;  %v2219_v61 = vadd.f32 %v6853_v3, %v2183_v24  ;;  %v2511_v42 = vrot.slane %v6969_v44, 7  ;;  %v6977_v46 = vmul.f32 %v6462_v35, %v6969_v44  ;;  %v8709_v24 = vld [vmem:[#allocation47_spill] sm:$0xff] }
 0x1af   : > { %v2591_v52 = vrot.slane %v6969_v44, 1  ;;  %v6982_v5 = vmul.f32 %v6492_v47, %v6969_v44  ;;  %v2510_v57 = vrot.slane %v6971_v63, 7  ;;  %v2554_v30 = vmul.f32 %v6462_v35, %v6971_v63 }
 0x1b0   : > { %v2590_v62 = vrot.slane %v6971_v63, 1  ;;  %v6990_v16 = vmul.f32 %v6492_v47, %v6971_v63  ;;  %v2472_v3 = vpack.c.bf16 %v2463_v31, %v2462_v40  ;;  %v2220_v55 = vadd.f32 %v6883_v6, %v2184_v39  ;;  %v8712_v31 = vld [vmem:[#allocation36_spill] sm:$0xff] }
 0x1b1   : > { %v2283_v45 = vadd.f32 %v6926_v20, %v2219_v61  ;;  %v2616_v58 = vmul.f32 %v6876_v54, %v6466_v22  ;;  %v6998_v17 = vadd.f32 %v8704_v33, %v6868_v12  ;;  %v2693_v38 = vmul.f32 %v8705_v18, %v6502_v1  ;;  %v8711_v12 = vld [vmem:[#allocation33_spill] sm:$0xff] }
 0x1b2   : > { %v2694_v32 = vmul.f32 %v8706_v43, %v6477_v41  ;;  %v2707_v26 = vadd.f32 %v8707_v50, %v2627_v49  ;;  %5188 = vmatprep.mubr.bf16.mxu1 %v2472_v3  ;;  %v2284_v6 = vadd.f32 %v6929_v23, %v2220_v55  ;;  %v2708_v14 = vadd.f32 %v8710_v60, %v2628_v15  ;;  %v8713_v23 = vld [vmem:[#allocation38_spill] sm:$0xff]  ;;  %v8714_v55 = vld [vmem:[#allocation27_spill] sm:$0xff] }
 0x1b3   : > { %v2364_v20 = vadd.f32 %v8708_v59, %v2283_v45  ;;  %v7008_v13 = vadd.f32 %v2616_v58, %v8709_v24  ;;  %v2789_v39 = vmul.f32 %v8712_v31, %v6480_v11  ;;  %v7016_v61 = vmul.f32 %v6876_v54, %v6507_v29  ;;  %v8715_v58 = vld [vmem:[#allocation30_spill] sm:$0xff]  ;;  %v8716_v50 = vld [vmem:[#allocation43_spill] sm:$0xff]  ;;  %v8717_v59 = vld [vmem:[#allocation32_spill] sm:$0xff] }
 0x1b4   : > { %v2739_v40 = vadd.f32 %v8711_v12, %v2707_v26  ;;  %v2868_v49 = vmul.f32 %v8705_v18, %v6511_v9  ;;  %v2365_v3 = vadd.f32 %v8713_v23, %v2284_v6  ;;  %v2740_v33 = vadd.f32 %v8715_v58, %v2708_v14  ;;  %v8718_v12 = vld [vmem:[#allocation35_spill] sm:$0xff] }
 0x1b5   : > { %v2400_v45 = vadd.f32 %v8714_v55, %v2364_v20  ;;  %v2869_v15 = vmul.f32 %v8706_v43, %v6483_v0  ;;  %v2901_v24 = vmul.f32 %v6514_v51, %v8717_v59  ;;  %v2964_v60 = vmul.f32 %v6498_v2, %v8712_v31  ;;  %v8719_v23 = vld [vmem:[#allocation39_spill] sm:$0xff]  ;;  %v8720_v55 = vld [vmem:[#allocation44_spill] sm:$0xff] }
 0x1b6   : > { %v2803_v26 = vadd.f32 %v8716_v50, %v2739_v40  ;;  %v2965_v18 = vmul.f32 %v6876_v54, %v6521_v19  ;;  %v2401_v6 = vadd.f32 %v8718_v12, %v2365_v3  ;;  %v2804_v14 = vadd.f32 %v8720_v55, %v2740_v33  ;;  %v8721_v31 = vld [vmem:[#allocation40_spill] sm:$0xff] }
 0x1b7   : > { %v2464_v20 = vadd.f32 %v8719_v23, %v2400_v45  ;;  %v2518_v43 = vsel %vm545_vm2, %v2502_v56, %v2510_v57  ;;  %v2526_v40 = vsel %vm545_vm2, %v2510_v57, %v2502_v56  ;;  %v2598_v2 = vsel %vm630_vm3, %v2582_v21, %v2590_v62  ;;  %v8722_v33 = vld [vmem:[#allocation28_spill] sm:$0xff] }
 0x1b8   : > { %v2884_v58 = vadd.f32 %v2868_v49, %v2803_v26  ;;  %v2538_v50 = vmul.f32 %v2518_v43, %v6451_v48  ;;  %v2465_v54 = vadd.f32 %v8721_v31, %v2401_v6  ;;  %v2885_v59 = vadd.f32 %v2869_v15, %v2804_v14 }
 0x1b9   : > { %v2537_v3 = vmul.f32 %v2526_v40, %v6459_v8  ;;  %v7046_v45 = vsel %vm630_vm3, %v2590_v62, %v2582_v21  ;;  %v2617_v56 = vmul.f32 %v2598_v2, %v6455_v34  ;;  %v7053_v15 = vmul.f32 %v2526_v40, %v6502_v1  ;;  %v8723_v62 = vld [vmem:[#allocation45_spill] sm:$0xff] }
 0x1ba   : > { %v2916_v49 = vadd.f32 %v8722_v33, %v2884_v58  ;;  %v2570_v26 = vadd.f32 %v2554_v30, %v2538_v50  ;;  %v2618_v57 = vmul.f32 %v7046_v45, %v6466_v22  ;;  %v2473_v12 = vpack.c.bf16 %v2465_v54, %v2464_v20  ;;  %v7062_v58 = vld [vmem:[%s5597_s5] ss:$0 sm:$0xff]  ;;  %v8725_v33 = vld [vmem:[#allocation31_spill] sm:$0xff] }
 0x1bb   : > { %v2917_v23 = vadd.f32 %v2901_v24, %v2885_v59  ;;  %v2569_v55 = vadd.f32 %v2553_v37, %v2537_v3  ;;  %v5154_v6 = vpop.f32.mrb[8].mxu1  ;;  %v7058_v21 = vmul.f32 %v2518_v43, %v6477_v41  ;;  %v2709_v30 = vadd.f32 %v2693_v38, %v8723_v62  ;;  %v8724_v54 = vld [vmem:[#allocation46_spill] sm:$0xff] }
 0x1bc   : > { %v2980_v14 = vadd.f32 %v2964_v60, %v2916_v49  ;;  %v7055_v31 = vadd.f32 %v2618_v57, %v2570_v26  ;;  %v1795_v50 = vadd.f32 %v7062_v58, %v5154_v6  ;;  %v1786_v20 = vpop.f32.mrb[9].mxu1  ;;  %5189 = vmatmul.mubr.bf16.gmra.mrb[28].mxu1 %v2473_v12  ;;  %v2710_v59 = vadd.f32 %v2694_v32, %v8724_v54  ;;  %v7117_v54 = vld [vmem:[%s5587_s30 + $0x18] ss:$0 sm:$0xff] }
 0x1bd   : > { %v2981_v37 = vadd.f32 %v2965_v18, %v2917_v23  ;;  %v7065_v24 = vadd.f32 %v2617_v56, %v2569_v55  ;;  %v1787_v60 = vadd.f32 %v7062_v58, %v1786_v20  ;;  %v5155_v3 = vpop.f32.mrb[10].mxu1  ;;  %v2741_v49 = vadd.f32 %v8725_v33, %v2709_v30  ;;  %v8726_v23 = vld [vmem:[#allocation29_spill] sm:$0xff]  ;;  %v5366_v55 = vld [vmem:[%s5592_s6 + $0x88] sm:$0xff]  }
 0x1be   : > { %v7071_v26 = vmul.f32 %v2598_v2, %v6480_v11  ;;  %v7075_v38 = vmul.f32 %v7046_v45, %v6507_v29  ;;  %v7077_v57 = vmax.f32 %v1795_v50, 0.0  ;;  %v1798_v18 = vadd.f32 %v7062_v58, %v5155_v3  ;;  %v1789_v56 = vpop.f32.mrb[11].mxu1  ;;  %5210 = vmatprep.subr.bf16.mxu0 %v5366_v55 }
 0x1bf   : > { %v2996_v12 = vpack.c.bf16 %v2981_v37, %v2980_v14  ;;  %v2742_v32 = vadd.f32 %v8726_v23, %v2710_v59  ;;  %v7082_v6 = vmax.f32 %v1787_v60, 0.0  ;;  %v1790_v62 = vadd.f32 %v7062_v58, %v1789_v56  ;;  %5211 = vmatpush3.bf16.msra.mxu0 %v5366_v55 }
 0x1c0   : > { %v2805_v30 = vadd.f32 %v2789_v39, %v2741_v49  ;;  %v2870_v20 = vmul.f32 %v2526_v40, %v6511_v9  ;;  %v7089_v50 = vmul.f32 %v6462_v35, %v7077_v57  ;;  %v7094_v14 = vmul.f32 %v6492_v47, %v7077_v57 }
 0x1c1   : > { %5192 = vmatprep.mubr.bf16.mxu1 %v2996_v12  ;;  %v7099_v39 = vmul.f32 %v6462_v35, %v7082_v6  ;;  %v7104_v59 = vmul.f32 %v6492_v47, %v7082_v6  ;;  %v7106_v60 = vmax.f32 %v1798_v18, 0.0  ;;  %v7108_v33 = vmax.f32 %v1790_v62, 0.0 }
 0x1c2   : > { %8727 = vst [vmem:[#allocation48_spill] sm:$0xff] %v7094_v14  ;;  %v2806_v49 = vadd.f32 %v7016_v61, %v2742_v32  ;;  %v2871_v56 = vmul.f32 %v2518_v43, %v6483_v0  ;;  %v2886_v12 = vadd.f32 %v2870_v20, %v2805_v30  ;;  %v2902_v23 = vmul.f32 %v6514_v51, %v6947_v53 }
 0x1c3   : > { %8728 = vst [vmem:[#allocation26_spill] sm:$0xff] %v7104_v59  ;;  %v2903_v3 = vmul.f32 %v6514_v51, %v6971_v63  ;;  %v2966_v40 = vmul.f32 %v7117_v54, %v2598_v2  ;;  %v7123_v55 = vmul.f32 %v6462_v35, %v7106_v60  ;;  %v7128_v43 = vmul.f32 %v6492_v47, %v7106_v60 }
 0x1c4   : > { %v7133_v63 = vmul.f32 %v6462_v35, %v7108_v33  ;;  %v7138_v32 = vmul.f32 %v6492_v47, %v7108_v33  ;;  %v2887_v62 = vadd.f32 %v2871_v56, %v2806_v49  ;;  %v2918_v30 = vadd.f32 %v2902_v23, %v2886_v12  ;;  %v5367_v12 = vld [vmem:[%s5592_s6 + $0x90] sm:$0xff]  }
 0x1c5   : > { %8729 = vst [vmem:[#allocation34_spill] sm:$0xff] %v7128_v43  ;;  %v2967_v20 = vmul.f32 %v7046_v45, %v6521_v19  ;;  %v2519_v61 = vsel %vm545_vm2, %v2503_v4, %v2511_v42  ;;  %v2527_v18 = vsel %vm545_vm2, %v2511_v42, %v2503_v4  ;;  %v2599_v45 = vsel %vm630_vm3, %v2583_v28, %v2591_v52 }
 0x1c6   : > { %8730 = vst [vmem:[#allocation41_spill] sm:$0xff] %v7138_v32  ;;  %v2540_v49 = vmul.f32 %v2519_v61, %v6451_v48  ;;  %v2607_v56 = vsel %vm630_vm3, %v2591_v52, %v2583_v28  ;;  %v2919_v23 = vadd.f32 %v2903_v3, %v2887_v62  ;;  %v2982_v2 = vadd.f32 %v2966_v40, %v2918_v30 }
 0x1c7   : > { %v2539_v4 = vmul.f32 %v2527_v18, %v6459_v8  ;;  %v2619_v42 = vmul.f32 %v2599_v45, %v6455_v34  ;;  %v2620_v53 = vmul.f32 %v2607_v56, %v6466_v22  ;;  %v7173_v43 = vmul.f32 %v2527_v18, %v6502_v1  ;;  %5212 = vmatprep.subr.bf16.mxu0 %v5367_v12 }
 0x1c8   : > { %v2572_v37 = vadd.f32 %v6977_v46, %v2540_v49  ;;  %v7176_v14 = vmul.f32 %v2519_v61, %v6477_v41  ;;  %v2983_v28 = vadd.f32 %v2967_v20, %v2919_v23  ;;  %v2711_v3 = vadd.f32 %v7053_v15, %v6998_v17  ;;  %5213 = vmatpush3.bf16.msra.mxu0 %v5367_v12 }
 0x1c9   : > { %v2571_v52 = vadd.f32 %v6954_v25, %v2539_v4  ;;  %v2712_v40 = vadd.f32 %v7058_v21, %v7008_v13  ;;  %v7187_v49 = vmul.f32 %v2599_v45, %v6480_v11  ;;  %v7190_v59 = vmul.f32 %v2607_v56, %v6507_v29 }
 0x1ca   : > { %v5158_v32 = vpop.f32.mrb[12].mxu1  ;;  %v7184_v30 = vadd.f32 %v2620_v53, %v2572_v37  ;;  %v2997_v23 = vpack.c.bf16 %v2983_v28, %v2982_v2  ;;  %v2743_v13 = vadd.f32 %v6967_v10, %v2711_v3 }
 0x1cb   : > { %v1811_v46 = vadd.f32 %v7062_v58, %v5158_v32  ;;  %v1802_v62 = vpop.f32.mrb[13].mxu1  ;;  %v7193_v17 = vadd.f32 %v2619_v42, %v2571_v52  ;;  %v2744_v53 = vadd.f32 %v6990_v16, %v2712_v40  ;;  %v2872_v32 = vmul.f32 %v2527_v18, %v6511_v9 }
 0x1cc   : > { %v1803_v25 = vadd.f32 %v7062_v58, %v1802_v62  ;;  %v5159_v20 = vpop.f32.mrb[14].mxu1  ;;  %5193 = vmatmul.mubr.bf16.gmra.mrb[32].mxu1 %v2997_v23  ;;  %v2807_v2 = vadd.f32 %v7071_v26, %v2743_v13  ;;  %v2873_v42 = vmul.f32 %v2519_v61, %v6483_v0  ;;  %v2968_v23 = vmul.f32 %v7117_v54, %v2599_v45 }
 0x1cd   : > { %v7196_v15 = vmax.f32 %v1811_v46, 0.0  ;;  %v1814_v21 = vadd.f32 %v7062_v58, %v5159_v20  ;;  %v1805_v37 = vpop.f32.mrb[15].mxu1  ;;  %v2808_v46 = vadd.f32 %v7075_v38, %v2744_v53  ;;  %v2905_v20 = vmul.f32 %v6514_v51, %v6969_v44 }
 0x1ce   : > { %v7201_v12 = vmax.f32 %v1803_v25, 0.0  ;;  %v1806_v4 = vadd.f32 %v7062_v58, %v1805_v37  ;;  %v2888_v62 = vadd.f32 %v2872_v32, %v2807_v2  ;;  %v2904_v25 = vmul.f32 %v6514_v51, %v6943_v27  ;;  %v5368_v27 = vld [vmem:[%s5592_s6 + $0x98] sm:$0xff]  }
 0x1cf   : > { %v7209_v28 = vmul.f32 %v6492_v47, %v7196_v15  ;;  %v7214_v16 = vmul.f32 %v6514_v51, %v7196_v15  ;;  %v7226_v3 = vmax.f32 %v1814_v21, 0.0  ;;  %v2969_v13 = vmul.f32 %v2607_v56, %v6521_v19  ;;  %5214 = vmatprep.subr.bf16.mxu0 %v5368_v27 }
 0x1d0   : > { %v7219_v58 = vmul.f32 %v6462_v35, %v7201_v12  ;;  %v7224_v61 = vmul.f32 %v6492_v47, %v7201_v12  ;;  %v7228_v40 = vmax.f32 %v1806_v4, 0.0  ;;  %v2889_v53 = vadd.f32 %v2873_v42, %v2808_v46  ;;  %5215 = vmatpush3.bf16.msra.mxu0 %v5368_v27 }
 0x1d1   : > { %8731 = vst [vmem:[#allocation37_spill] sm:$0xff] %v7209_v28  ;;  %8732 = vst [vmem:[#allocation47_spill] sm:$0xff] %v7214_v16  ;;  %v7240_v21 = vmul.f32 %v6492_v47, %v7226_v3  ;;  %v7245_v38 = vmul.f32 %v6514_v51, %v7226_v3  ;;  %v2920_v32 = vadd.f32 %v2904_v25, %v2888_v62  ;;  %v8735_v2 = vrot.slane %v7108_v33, 7 }
 0x1d2   : > { %v7250_v44 = vmul.f32 %v6462_v35, %v7228_v40  ;;  %v7255_v56 = vmul.f32 %v6492_v47, %v7228_v40  ;;  %v8736_v52 = vrot.slane %v7082_v6, 7  ;;  %v8739_v42 = vrot.slane %v7108_v33, 1 }
 0x1d3   : > { %8733 = vst [vmem:[#allocation42_spill] sm:$0xff] %v7240_v21  ;;  %8734 = vst [vmem:[#allocation33_spill] sm:$0xff] %v7245_v38  ;;  %v8738_v35 = vmov %v8735_v2  ;;  %v8740_v46 = vrot.slane %v7082_v6, 1  ;;  %v2921_v45 = vadd.f32 %v2905_v20, %v2889_v53  ;;  %v2713_v16 = vadd.f32 %v7173_v43, %v7065_v24 }
 0x1d4   : > { %v2520_v4 = vsel %vm545_vm2, %v8736_v52, %v8735_v2  ;;  %v8737_v10 = vmov %v8736_v52  ;;  %v8742_v25 = vmov %v8739_v42  ;;  %v2714_v20 = vadd.f32 %v7176_v14, %v7055_v31 }
 0x1d5   : > { %v2528_v37 = vsel %vm545_vm2, %v8738_v35, %v8737_v10  ;;  %v2542_v47 = vmul.f32 %v2520_v4, %v6451_v48  ;;  %v2600_v62 = vsel %vm630_vm3, %v8740_v46, %v8739_v42  ;;  %v8741_v52 = vmov %v8740_v46 }
 0x1d6   : > { %v2541_v26 = vmul.f32 %v2528_v37, %v6459_v8  ;;  %v2608_v2 = vsel %vm630_vm3, %v8742_v25, %v8741_v52  ;;  %v2984_v10 = vadd.f32 %v2968_v23, %v2920_v32  ;;  %v2621_v35 = vmul.f32 %v2600_v62, %v6455_v34 }
 0x1d7   : > { %v2622_v18 = vmul.f32 %v2608_v2, %v6466_v22  ;;  %v2574_v28 = vadd.f32 %v7133_v63, %v2542_v47  ;;  %v2699_v42 = vmul.f32 %v2528_v37, %v6502_v1  ;;  %v2700_v46 = vmul.f32 %v2520_v4, %v6477_v41 }
 0x1d8   : > { %v2573_v21 = vadd.f32 %v7099_v39, %v2541_v26  ;;  %v2985_v38 = vadd.f32 %v2969_v13, %v2921_v45  ;;  %v2795_v23 = vmul.f32 %v2600_v62, %v6480_v11  ;;  %v2796_v39 = vmul.f32 %v2608_v2, %v6507_v29 }
 0x1d9   : > { %v7297_v32 = vadd.f32 %v2622_v18, %v2574_v28  ;;  %v2874_v63 = vmul.f32 %v2528_v37, %v6511_v9  ;;  %v2745_v13 = vadd.f32 %v6959_v7, %v2713_v16  ;;  %v2746_v24 = vadd.f32 %v6982_v5, %v2714_v20  ;;  %v5369_v20 = vld [vmem:[%s5592_s6 + $0xa0] sm:$0xff]  }
 0x1da   : > { %v7295_v53 = vadd.f32 %v2621_v35, %v2573_v21  ;;  %v2998_v26 = vpack.c.bf16 %v2985_v38, %v2984_v10  ;;  %v2875_v43 = vmul.f32 %v2520_v4, %v6483_v0  ;;  %v2906_v31 = vmul.f32 %v6514_v51, %v7082_v6  ;;  %5216 = vmatprep.subr.bf16.mxu0 %v5369_v20 }
 0x1db   : > { %v2907_v14 = vmul.f32 %v6514_v51, %v7108_v33  ;;  %v2970_v28 = vmul.f32 %v7117_v54, %v2600_v62  ;;  %v2971_v18 = vmul.f32 %v2608_v2, %v6521_v19  ;;  %v2809_v37 = vadd.f32 %v7187_v49, %v2745_v13  ;;  %5217 = vmatpush3.bf16.msra.mxu0 %v5369_v20 }
 0x1dc   : > { %5196 = vmatprep.mubr.bf16.mxu1 %v2998_v26  ;;  %v2810_v7 = vadd.f32 %v7190_v59, %v2746_v24  ;;  %v8743_v5 = vrot.slane %v7106_v60, 7  ;;  %v8744_v16 = vrot.slane %v7077_v57, 7  ;;  %v8747_v59 = vrot.slane %v7106_v60, 1 }
 0x1dd   : > { %v8748_v27 = vrot.slane %v7077_v57, 1  ;;  %v2890_v25 = vadd.f32 %v2874_v63, %v2809_v37  ;;  %v2716_v63 = vadd.f32 %v2700_v46, %v7184_v30  ;;  %v2908_v30 = vmul.f32 %v6514_v51, %v7077_v57 }
 0x1de   : > { %v2521_v6 = vsel %vm545_vm2, %v8744_v16, %v8743_v5  ;;  %v8745_v21 = vmov %v8744_v16  ;;  %v8746_v33 = vmov %v8743_v5  ;;  %v8750_v62 = vmov %v8747_v59 }
 0x1df   : > { %v2529_v4 = vsel %vm545_vm2, %v8746_v33, %v8745_v21  ;;  %v2544_v49 = vmul.f32 %v2521_v6, %v6451_v48  ;;  %v2601_v45 = vsel %vm630_vm3, %v8748_v27, %v8747_v59  ;;  %v8749_v47 = vmov %v8748_v27  ;;  %v8752_v27 = vld [vmem:[#allocation41_spill] sm:$0xff] }
 0x1e0   : > { %v2543_v38 = vmul.f32 %v2529_v4, %v6459_v8  ;;  %v2609_v52 = vsel %vm630_vm3, %v8750_v62, %v8749_v47  ;;  %v2891_v2 = vadd.f32 %v2875_v43, %v2810_v7  ;;  %v2623_v10 = vmul.f32 %v2601_v45, %v6455_v34 }
 0x1e1   : > { %v2624_v35 = vmul.f32 %v2609_v52, %v6466_v22  ;;  %v2576_v13 = vadd.f32 %v7123_v55, %v2544_v49  ;;  %v2701_v24 = vmul.f32 %v2529_v4, %v6502_v1  ;;  %v2702_v5 = vmul.f32 %v2521_v6, %v6477_v41 }
 0x1e2   : > { %v2575_v26 = vadd.f32 %v7089_v50, %v2543_v38  ;;  %v2922_v16 = vadd.f32 %v2906_v31, %v2890_v25  ;;  %v2923_v21 = vadd.f32 %v2907_v14, %v2891_v2  ;;  %v2715_v33 = vadd.f32 %v2699_v42, %v7193_v17  ;;  %v8751_v38 = vld [vmem:[#allocation26_spill] sm:$0xff] }
 0x1e3   : > { %v2640_v37 = vadd.f32 %v2624_v35, %v2576_v13  ;;  %v2797_v7 = vmul.f32 %v2601_v45, %v6480_v11  ;;  %v2798_v59 = vmul.f32 %v2609_v52, %v6507_v29  ;;  %v2748_v47 = vadd.f32 %v8752_v27, %v2716_v63 }
 0x1e4   : > { %v2639_v43 = vadd.f32 %v2623_v10, %v2575_v26  ;;  %v2986_v50 = vadd.f32 %v2970_v28, %v2922_v16  ;;  %v2987_v55 = vadd.f32 %v2971_v18, %v2923_v21  ;;  %v2747_v49 = vadd.f32 %v8751_v38, %v2715_v33 }
 0x1e5   : > { %v2876_v31 = vmul.f32 %v2529_v4, %v6511_v9  ;;  %v2877_v17 = vmul.f32 %v2521_v6, %v6483_v0  ;;  %v2909_v42 = vmul.f32 %v6514_v51, %v7106_v60  ;;  %v2812_v62 = vadd.f32 %v2796_v39, %v2748_v47 }
 0x1e6   : > { %v2999_v46 = vpack.c.bf16 %v2987_v55, %v2986_v50  ;;  %v2811_v14 = vadd.f32 %v2795_v23, %v2747_v49  ;;  %v2972_v28 = vmul.f32 %v7117_v54, %v2601_v45  ;;  %v2973_v18 = vmul.f32 %v2609_v52, %v6521_v19 }
 0x1e7   : > { %v8753_v25 = vrot.slane %v7228_v40, 7  ;;  %v8754_v2 = vrot.slane %v7201_v12, 7  ;;  %v8757_v23 = vrot.slane %v7228_v40, 1  ;;  %v8758_v39 = vrot.slane %v7201_v12, 1 }
 0x1e8   : > { %5197 = vmatmul.mubr.bf16.gmra.mrb[36].mxu1 %v2999_v46  ;;  %v2892_v52 = vadd.f32 %v2876_v31, %v2811_v14  ;;  %v2893_v10 = vadd.f32 %v2877_v17, %v2812_v62  ;;  %v2717_v49 = vadd.f32 %v2701_v24, %v7295_v53  ;;  %v2718_v27 = vadd.f32 %v2702_v5, %v7297_v32  ;;  %v8762_v62 = vld [vmem:[#allocation34_spill] sm:$0xff] }
 0x1e9   : > { %v2522_v6 = vsel %vm545_vm2, %v8754_v2, %v8753_v25  ;;  %v8755_v4 = vmov %v8754_v2  ;;  %v8756_v57 = vmov %v8753_v25  ;;  %v2602_v45 = vsel %vm630_vm3, %v8758_v39, %v8757_v23 }
 0x1ea   : > { %v2530_v60 = vsel %vm545_vm2, %v8756_v57, %v8755_v4  ;;  %v2546_v20 = vmul.f32 %v2522_v6, %v6451_v48  ;;  %v8759_v26 = vmov %v8758_v39  ;;  %v8760_v13 = vmov %v8757_v23 }
 0x1eb   : > { %v2545_v35 = vmul.f32 %v2530_v60, %v6459_v8  ;;  %v2610_v16 = vsel %vm630_vm3, %v8760_v13, %v8759_v26  ;;  %v2625_v21 = vmul.f32 %v2602_v45, %v6455_v34  ;;  %v2703_v33 = vmul.f32 %v2530_v60, %v6502_v1 }
 0x1ec   : > { %v2704_v63 = vmul.f32 %v2522_v6, %v6477_v41  ;;  %v2924_v50 = vadd.f32 %v2908_v30, %v2892_v52  ;;  %v2925_v55 = vadd.f32 %v2909_v42, %v2893_v10  ;;  %v2578_v8 = vadd.f32 %v7250_v44, %v2546_v20  ;;  %v8761_v30 = vld [vmem:[#allocation48_spill] sm:$0xff] }
 0x1ed   : > { %v2577_v38 = vadd.f32 %v7219_v58, %v2545_v35  ;;  %v2626_v48 = vmul.f32 %v2610_v16, %v6466_v22  ;;  %v2799_v47 = vmul.f32 %v2602_v45, %v6480_v11  ;;  %v2800_v46 = vmul.f32 %v2610_v16, %v6507_v29 }
 0x1ee   : > { %v2988_v31 = vadd.f32 %v2972_v28, %v2924_v50  ;;  %v2989_v34 = vadd.f32 %v2973_v18, %v2925_v55  ;;  %v2749_v42 = vadd.f32 %v8761_v30, %v2717_v49  ;;  %v2750_v58 = vadd.f32 %v8762_v62, %v2718_v27 }
 0x1ef   : > { %v2641_v17 = vadd.f32 %v2625_v21, %v2577_v38  ;;  %v2642_v14 = vadd.f32 %v2626_v48, %v2578_v8  ;;  %v2878_v44 = vmul.f32 %v2530_v60, %v6511_v9  ;;  %v2879_v22 = vmul.f32 %v2522_v6, %v6483_v0 }
 0x1f0   : > { %v3000_v25 = vpack.c.bf16 %v2989_v34, %v2988_v31  ;;  %v2910_v53 = vmul.f32 %v6514_v51, %v7201_v12  ;;  %v2911_v32 = vmul.f32 %v6514_v51, %v7228_v40  ;;  %v2813_v24 = vadd.f32 %v2797_v7, %v2749_v42  ;;  %v8772_v31 = vld [vmem:[#allocation47_spill] sm:$0xff]  ;;  %v8774_v42 = vld [vmem:[#allocation37_spill] sm:$0xff] }
 0x1f1   : > { %v2814_v5 = vadd.f32 %v2798_v59, %v2750_v58  ;;  %v2974_v28 = vmul.f32 %v7117_v54, %v2602_v45  ;;  %v2975_v18 = vmul.f32 %v2610_v16, %v6521_v19  ;;  %v8763_v2 = vrot.slane %v7226_v3, 7  ;;  %v8775_v58 = vld [vmem:[#allocation42_spill] sm:$0xff] }
 0x1f2   : > { %5200 = vmatprep.mubr.bf16.mxu1 %v3000_v25  ;;  %v8764_v4 = vrot.slane %v7196_v15, 7  ;;  %v2719_v7 = vadd.f32 %v2703_v33, %v2639_v43  ;;  %v2720_v59 = vadd.f32 %v2704_v63, %v2640_v37  ;;  %v2894_v60 = vadd.f32 %v2878_v44, %v2813_v24 }
 0x1f3   : > { %v8766_v12 = vmov %v8763_v2  ;;  %v2895_v23 = vadd.f32 %v2879_v22, %v2814_v5  ;;  %v8767_v35 = vrot.slane %v7226_v3, 1  ;;  %v8768_v20 = vrot.slane %v7196_v15, 1 }
 0x1f4   : > { %v2682_v6 = vsel %vm545_vm2, %v8764_v4, %v8763_v2  ;;  %v8765_v57 = vmov %v8764_v4  ;;  %v2751_v52 = vadd.f32 %v7224_v61, %v2719_v7  ;;  %v2752_v10 = vadd.f32 %v7255_v56, %v2720_v59  ;;  %v8778_v59 = vld [vmem:[#allocation15_spill] sm:$0xff] }
 0x1f5   : > { %v2690_v40 = vsel %vm545_vm2, %v8766_v12, %v8765_v57  ;;  %v2706_v45 = vmul.f32 %v2682_v6, %v6477_v41  ;;  %v2778_v26 = vsel %vm630_vm3, %v8768_v20, %v8767_v35  ;;  %v8769_v43 = vmov %v8768_v20  ;;  %v5370_v57 = vld [vmem:[%s5592_s6 + $0xa8] sm:$0xff]   ;;  %v5371_v12 = vld [vmem:[%s5592_s6 + $0xb0] sm:$0xff]  }
 0x1f6   : > { %v2705_v39 = vmul.f32 %v2690_v40, %v6502_v1  ;;  %v8770_v37 = vmov %v8767_v35  ;;  %v2926_v13 = vadd.f32 %v2910_v53, %v2894_v60  ;;  %v2927_v41 = vadd.f32 %v2911_v32, %v2895_v23  ;;  %v8776_v53 = vld [vmem:[#allocation22_spill] sm:$0xff]  ;;  %5218 = vmatprep.subr.bf16.mxu0 %v5370_v57  ;;  %v8779_v23 = vld [vmem:[#allocation16_spill] sm:$0xff] }
 0x1f7   : > { %v2786_v1 = vsel %vm630_vm3, %v8770_v37, %v8769_v43  ;;  %v2801_v61 = vmul.f32 %v2778_v26, %v6480_v11  ;;  %v2815_v16 = vadd.f32 %v2799_v47, %v2751_v52  ;;  %v2816_v21 = vadd.f32 %v2800_v46, %v2752_v10  ;;  %v8771_v11 = vld [vmem:[#allocation19_spill] sm:$0xff]  ;;  %v8773_v46 = vld [vmem:[#allocation33_spill] sm:$0xff]  ;;  %5219 = vmatpush3.bf16.msra.mxu0 %v5370_v57  ;;  %v7477_v43 = vld [vmem:[%s5597_s5 + $0x1] ss:$0 sm:$0xff] }
 0x1f8   : > { %v2802_v56 = vmul.f32 %v2786_v1, %v6507_v29  ;;  %v2880_v33 = vmul.f32 %v2690_v40, %v6511_v9  ;;  %v2881_v63 = vmul.f32 %v2682_v6, %v6483_v0  ;;  %v2990_v50 = vadd.f32 %v2974_v28, %v2926_v13  ;;  %5220 = vmatprep.subr.bf16.mxu0 %v5371_v12  ;;  %v5003_v40 = vld [vmem:[%s5587_s30 + $0x20] sm:$0xff]  ;;  %v8781_v10 = vld [vmem:[#allocation17_spill] sm:$0xff] }
 0x1f9   : > { %v2991_v55 = vadd.f32 %v2975_v18, %v2927_v41  ;;  %v2976_v15 = vmul.f32 %v7117_v54, %v2778_v26  ;;  %v2977_v3 = vmul.f32 %v2786_v1, %v6521_v19  ;;  %v2721_v48 = vadd.f32 %v2705_v39, %v2641_v17  ;;  %v8782_v1 = vld [vmem:[#allocation18_spill] sm:$0xff]  ;;  %v8783_v41 = vld [vmem:[#allocation20_spill] sm:$0xff] }
 0x1fa   : > { %v2896_v38 = vadd.f32 %v2880_v33, %v2815_v16  ;;  %v2897_v8 = vadd.f32 %v2881_v63, %v2816_v21  ;;  %v2722_v49 = vadd.f32 %v2706_v45, %v2642_v14  ;;  %v2882_v29 = vmul.f32 %v6511_v9, %v8771_v11  ;;  %v8780_v45 = vld [vmem:[#allocation23_spill] sm:$0xff]  ;;  %v8784_v16 = vld [vmem:[#allocation21_spill] sm:$0xff] }
 0x1fb   : > { %v3001_v27 = vpack.c.bf16 %v2991_v55, %v2990_v50  ;;  %v2883_v47 = vmul.f32 %v6483_v0, %v8771_v11  ;;  %v2753_v62 = vadd.f32 %v8774_v42, %v2721_v48  ;;  %v2914_v25 = vmul.f32 0.0, %v6514_v51  ;;  %5221 = vmatpush3.bf16.msra.mxu0 %v5371_v12  ;;  %v8785_v48 = vld [vmem:[#allocation24_spill] sm:$0xff] }
 0x1fc   : > { %v2928_v34 = vadd.f32 %v8772_v31, %v2896_v38  ;;  %v2929_v30 = vadd.f32 %v8773_v46, %v2897_v8  ;;  %v2754_v44 = vadd.f32 %v8775_v58, %v2722_v49  ;;  %v2978_v0 = vmul.f32 %v7117_v54, %v8776_v53  ;;  %v5372_v54 = vld [vmem:[%s5592_s6 + $0xb8] sm:$0xff]   ;;  %v7503_v31 = vld [vmem:[%s5587_s30 + $0x28] ss:$0 sm:$0xff] }
 0x1fd   : > { %5201 = vmatmul.mubr.bf16.gmra.mrb[40].mxu1 %v3001_v27  ;;  %v2817_v22 = vadd.f32 %v2801_v61, %v2753_v62  ;;  %v2979_v28 = vmul.f32 %v6521_v19, %v8776_v53  ;;  %5222 = vmatprep.subr.bf16.mxu0 %v5372_v54  ;;  %v8777_v19 = vld [vmem:[#allocation14_spill] sm:$0xff]  ;;  %v7460_v60 = vrot.slane %v5003_v40, %v8778_v59  ;;  %v8786_v58 = vld [vmem:[#allocation25_spill] sm:$0xff] }
 0x1fe   : > { %v2992_v17 = vadd.f32 %v2976_v15, %v2928_v34  ;;  %v2993_v14 = vadd.f32 %v2977_v3, %v2929_v30  ;;  %v2818_v9 = vadd.f32 %v2802_v56, %v2754_v44  ;;  %v7457_v7 = vrot.slane %v5003_v40, %v8777_v19 }
 0x1ff   : > { %v2898_v24 = vadd.f32 %v2882_v29, %v2817_v22  ;;  %5223 = vmatpush3.bf16.msra.mxu0 %v5372_v54  ;;  %v7467_v52 = vrot.slane %v5003_v40, %v8780_v45  ;;  %v7471_v35 = vmul.f32 %v8781_v10, %v7460_v60  ;;  %v7482_v13 = vrot.slane %v5003_v40, %v8782_v1 }
 0x200   : > { %v3002_v32 = vpack.c.bf16 %v2993_v14, %v2992_v17  ;;  %v2899_v5 = vadd.f32 %v2883_v47, %v2818_v9  ;;  %v7464_v39 = vmul.f32 %v8779_v23, %v7457_v7  ;;  %v3414_v20 = vmul.f32 %v7457_v7, %v8771_v11 }
 0x201   : > { %v2930_v18 = vadd.f32 %v2914_v25, %v2898_v24  ;;  %v3433_v26 = vmul.f32 0.0, %v7467_v52  ;;  %v7485_v61 = vrot.slane %v5003_v40, %v8783_v41  ;;  %v7488_v21 = vrot.slane %v5003_v40, %v8784_v16 }
 0x202   : > { %5204 = vmatprep.mubr.bf16.mxu1 %v3002_v32  ;;  %v2931_v51 = vadd.f32 %v2914_v25, %v2899_v5  ;;  %v3413_v37 = vmul.f32 %v7464_v39, %v8771_v11  ;;  %v3498_v55 = vmul.f32 %v7471_v35, %v8776_v53  ;;  %v3497_v8 = vmul.f32 %v7460_v60, %v8776_v53 }
 0x203   : > { %v2994_v2 = vadd.f32 %v2978_v0, %v2930_v18  ;;  %v3450_v50 = vadd.f32 %v3433_v26, %v3414_v20  ;;  %v7497_v49 = vrot.slane %v5003_v40, %v8785_v48  ;;  %v7507_v34 = vmul.f32 %v8779_v23, %v7482_v13 }
 0x204   : > { %v2995_v4 = vadd.f32 %v2979_v28, %v2931_v51  ;;  %v3449_v38 = vadd.f32 %v3433_v26, %v3413_v37  ;;  %v7512_v42 = vmul.f32 %v8781_v10, %v7485_v61  ;;  %v7516_v62 = vmul.f32 %v8779_v23, %v7488_v21 }
 0x205   : > { %v7519_v44 = vrot.slane %v5003_v40, %v8786_v58  ;;  %v3514_v25 = vadd.f32 %v3498_v55, %v3450_v50  ;;  %v7526_v22 = vmul.f32 %v7503_v31, %v8781_v10 }
 0x206   : > { %v3003_v6 = vpack.c.bf16 %v2995_v4, %v2994_v2  ;;  %v3513_v9 = vadd.f32 %v3497_v8, %v3449_v38 }
 0x208   : > { %5205 = vmatmul.mubr.bf16.gmra.mrb[44].mxu1 %v3003_v6 }
 0x232   : > { %v5178_v56 = vpop.f32.mrb[16].mxu1 }
 0x233   : > { %v3125_v33 = vadd.f32 %v5178_v56, %v7477_v43  ;;  %v3116_v63 = vpop.f32.mrb[17].mxu1 }
 0x234   : > { %v3117_v15 = vadd.f32 %v7477_v43, %v3116_v63  ;;  %v5179_v3 = vpop.f32.mrb[18].mxu1 }
 0x235   : > { %v7499_v27 = vmax.f32 %v3125_v33, 0.0  ;;  %v3128_v29 = vadd.f32 %v5179_v3, %v7477_v43  ;;  %v3119_v47 = vpop.f32.mrb[19].mxu1 }
 0x236   : > { %v3243_v46 = vmax.f32 %v3117_v15, 0.0  ;;  %v3120_v30 = vadd.f32 %v7477_v43, %v3119_v47 }
 0x237   : > { %v3383_v17 = vrot.slane %v7499_v27, 7  ;;  %v3437_v14 = vmul.f32 %v7467_v52, %v7499_v27  ;;  %v3467_v0 = vrot.slane %v7499_v27, 1  ;;  %v3615_v32 = vmul.f32 %v7497_v49, %v7499_v27 }
 0x238   : > { %v3246_v24 = vmax.f32 %v3128_v29, 0.0  ;;  %v3244_v5 = vmax.f32 %v3120_v30, 0.0  ;;  %v3382_v28 = vrot.slane %v3243_v46, 7  ;;  %v3435_v18 = vmul.f32 %v7467_v52, %v3243_v46 }
 0x239   : > { %v3466_v51 = vrot.slane %v3243_v46, 1  ;;  %v3613_v2 = vmul.f32 %v7497_v49, %v3243_v46 }
 0x23a   : > { %v3391_v4 = vrot.slane %v3246_v24, 7  ;;  %v3438_v6 = vmul.f32 %v7467_v52, %v3246_v24  ;;  %v3475_v57 = vrot.slane %v3246_v24, 1  ;;  %v3616_v12 = vmul.f32 %v7497_v49, %v3246_v24 }
 0x23b   : > { %v3390_v54 = vrot.slane %v3244_v5, 7  ;;  %v3436_v40 = vmul.f32 %v7467_v52, %v3244_v5  ;;  %v3474_v19 = vrot.slane %v3244_v5, 1  ;;  %v3614_v59 = vmul.f32 %v7497_v49, %v3244_v5 }
 0x23c   : > { %v3399_v23 = vsel %vm545_vm2, %v3383_v17, %v3391_v4  ;;  %v3407_v45 = vsel %vm545_vm2, %v3391_v4, %v3383_v17  ;;  %v3483_v10 = vsel %vm630_vm3, %v3467_v0, %v3475_v57  ;;  %v3491_v20 = vsel %vm630_vm3, %v3475_v57, %v3467_v0 }
 0x23d   : > { %v3398_v26 = vsel %vm545_vm2, %v3382_v28, %v3390_v54  ;;  %v3406_v37 = vsel %vm545_vm2, %v3390_v54, %v3382_v28  ;;  %v3482_v1 = vsel %vm630_vm3, %v3466_v51, %v3474_v19  ;;  %v3490_v41 = vsel %vm630_vm3, %v3474_v19, %v3466_v51 }
 0x23e   : > { %v3415_v56 = vmul.f32 %v3406_v37, %v7464_v39  ;;  %v3416_v16 = vmul.f32 %v3398_v26, %v7457_v7  ;;  %v3499_v33 = vmul.f32 %v3482_v1, %v7460_v60  ;;  %v3500_v63 = vmul.f32 %v3490_v41, %v7471_v35 }
 0x23f   : > { %v3577_v50 = vmul.f32 %v3406_v37, %v7507_v34  ;;  %v3578_v55 = vmul.f32 %v3398_v26, %v7482_v13  ;;  %v3417_v15 = vmul.f32 %v3407_v45, %v7464_v39  ;;  %v3418_v3 = vmul.f32 %v3399_v23, %v7457_v7 }
 0x240   : > { %v3451_v38 = vadd.f32 %v3435_v18, %v3415_v56  ;;  %v3452_v8 = vadd.f32 %v3436_v40, %v3416_v16  ;;  %v3501_v48 = vmul.f32 %v3483_v10, %v7460_v60  ;;  %v3502_v29 = vmul.f32 %v3491_v20, %v7471_v35 }
 0x241   : > { %v3594_v47 = vadd.f32 %v3578_v55, %v3514_v25  ;;  %v3453_v46 = vadd.f32 %v3437_v14, %v3417_v15  ;;  %v3454_v30 = vadd.f32 %v3438_v6, %v3418_v3  ;;  %v3579_v58 = vmul.f32 %v3407_v45, %v7507_v34 }
 0x242   : > { %v3515_v17 = vadd.f32 %v3499_v33, %v3451_v38  ;;  %v3516_v0 = vadd.f32 %v3500_v63, %v3452_v8  ;;  %v3580_v5 = vmul.f32 %v3399_v23, %v7482_v13  ;;  %v3593_v28 = vadd.f32 %v3577_v50, %v3513_v9 }
 0x243   : > { %v3630_v51 = vadd.f32 %v3614_v59, %v3594_v47  ;;  %v7565_v4 = vadd.f32 %v3501_v48, %v3453_v46  ;;  %v7567_v57 = vadd.f32 %v3502_v29, %v3454_v30  ;;  %v3677_v18 = vmul.f32 %v3482_v1, %v7485_v61 }
 0x244   : > { %v3595_v54 = vadd.f32 %v3579_v58, %v3515_v17  ;;  %v3596_v40 = vadd.f32 %v3580_v5, %v3516_v0  ;;  %v3629_v19 = vadd.f32 %v3613_v2, %v3593_v28  ;;  %v3678_v25 = vmul.f32 %v3490_v41, %v7512_v42 }
 0x245   : > { %v3679_v14 = vmul.f32 %v3483_v10, %v7485_v61  ;;  %v3680_v6 = vmul.f32 %v3491_v20, %v7512_v42  ;;  %v3757_v26 = vmul.f32 %v3407_v45, %v7516_v62  ;;  %v3758_v9 = vmul.f32 %v3399_v23, %v7488_v21 }
 0x246   : > { %v3631_v59 = vadd.f32 %v3615_v32, %v3595_v54  ;;  %v3632_v37 = vadd.f32 %v3616_v12, %v3596_v40  ;;  %v3693_v56 = vadd.f32 %v3677_v18, %v3629_v19  ;;  %v3694_v16 = vadd.f32 %v3678_v25, %v3630_v51 }
 0x247   : > { %v3793_v1 = vmul.f32 %v7519_v44, %v7499_v27  ;;  %v3794_v33 = vmul.f32 %v7519_v44, %v3246_v24  ;;  %v3857_v45 = vmul.f32 %v7503_v31, %v3483_v10  ;;  %v3858_v23 = vmul.f32 %v3491_v20, %v7526_v22 }
 0x248   : > { %v3695_v2 = vadd.f32 %v3679_v14, %v3631_v59  ;;  %v3696_v63 = vadd.f32 %v3680_v6, %v3632_v37  ;;  %v3773_v41 = vadd.f32 %v3757_v26, %v3693_v56  ;;  %v3774_v50 = vadd.f32 %v3758_v9, %v3694_v16 }
 0x24a   : > { %v3809_v15 = vadd.f32 %v3793_v1, %v3773_v41  ;;  %v3810_v3 = vadd.f32 %v3794_v33, %v3774_v50 }
 0x24b   : > { %v5182_v55 = vpop.f32.mrb[20].mxu1 }
 0x24c   : > { %v3141_v32 = vadd.f32 %v5182_v55, %v7477_v43  ;;  %v3132_v12 = vpop.f32.mrb[21].mxu1  ;;  %v3873_v27 = vadd.f32 %v3857_v45, %v3809_v15  ;;  %v3874_v48 = vadd.f32 %v3858_v23, %v3810_v3 }
 0x24d   : > { %v3133_v38 = vadd.f32 %v7477_v43, %v3132_v12  ;;  %v5183_v8 = vpop.f32.mrb[22].mxu1 }
 0x24e   : > { %v3144_v24 = vadd.f32 %v5183_v8, %v7477_v43  ;;  %v3135_v29 = vpop.f32.mrb[23].mxu1  ;;  %v7583_v47 = vmax.f32 %v3141_v32, 0.0  ;;  %v3889_v30 = vpack.c.bf16 %v3874_v48, %v3873_v27 }
 0x24f   : > { %v3136_v46 = vadd.f32 %v7477_v43, %v3135_v29  ;;  %v3247_v58 = vmax.f32 %v3133_v38, 0.0 }
 0x250   : > { %5224 = vmatprep.mubr.bf16.mxu0 %v3889_v30  ;;  %v7586_v10 = vmax.f32 %v3144_v24, 0.0  ;;  %v3385_v17 = vrot.slane %v7583_v47, 7  ;;  %v3441_v0 = vmul.f32 %v7467_v52, %v7583_v47  ;;  %v3469_v5 = vrot.slane %v7583_v47, 1 }
 0x251   : > { %v3248_v20 = vmax.f32 %v3136_v46, 0.0  ;;  %v3384_v28 = vrot.slane %v3247_v58, 7  ;;  %v3468_v51 = vrot.slane %v3247_v58, 1  ;;  %v3617_v40 = vmul.f32 %v7497_v49, %v3247_v58 }
 0x252   : > { %v3393_v18 = vrot.slane %v7586_v10, 7  ;;  %v3477_v54 = vrot.slane %v7586_v10, 1  ;;  %v3795_v19 = vmul.f32 %v7519_v44, %v3247_v58  ;;  %v3442_v6 = vmul.f32 %v7467_v52, %v7586_v10 }
 0x253   : > { %v3392_v25 = vrot.slane %v3248_v20, 7  ;;  %v3476_v14 = vrot.slane %v3248_v20, 1  ;;  %v3440_v41 = vmul.f32 %v7467_v52, %v3248_v20  ;;  %v3796_v50 = vmul.f32 %v7519_v44, %v3248_v20 }
 0x254   : > { %v3401_v26 = vsel %vm545_vm2, %v3385_v17, %v3393_v18  ;;  %v3409_v9 = vsel %vm545_vm2, %v3393_v18, %v3385_v17  ;;  %v7604_v59 = vsel %vm630_vm3, %v3469_v5, %v3477_v54  ;;  %v3493_v8 = vsel %vm630_vm3, %v3477_v54, %v3469_v5 }
 0x255   : > { %v3400_v37 = vsel %vm545_vm2, %v3384_v28, %v3392_v25  ;;  %v3408_v56 = vsel %vm545_vm2, %v3392_v25, %v3384_v28  ;;  %v3484_v16 = vsel %vm630_vm3, %v3468_v51, %v3476_v14  ;;  %v3492_v1 = vsel %vm630_vm3, %v3476_v14, %v3468_v51 }
 0x256   : > { %v3420_v33 = vmul.f32 %v3400_v37, %v7457_v7  ;;  %v3759_v55 = vmul.f32 %v3408_v56, %v7516_v62  ;;  %v3504_v15 = vmul.f32 %v3492_v1, %v7471_v35  ;;  %v3760_v3 = vmul.f32 %v3400_v37, %v7488_v21 }
 0x257   : > { %v3859_v45 = vmul.f32 %v7503_v31, %v3484_v16  ;;  %v3421_v23 = vmul.f32 %v3409_v9, %v7464_v39  ;;  %v3422_v38 = vmul.f32 %v3401_v26, %v7457_v7  ;;  %v3505_v24 = vmul.f32 %v7604_v59, %v7460_v60 }
 0x258   : > { %v3456_v32 = vadd.f32 %v3440_v41, %v3420_v33  ;;  %v3775_v12 = vadd.f32 %v3759_v55, %v3695_v2  ;;  %v3776_v27 = vadd.f32 %v3760_v3, %v3696_v63  ;;  %v3506_v29 = vmul.f32 %v3493_v8, %v7471_v35 }
 0x259   : > { %v3457_v48 = vadd.f32 %v3441_v0, %v3421_v23  ;;  %v3458_v17 = vadd.f32 %v3442_v6, %v3422_v38  ;;  %v3581_v28 = vmul.f32 %v3408_v56, %v7507_v34  ;;  %v3860_v2 = vmul.f32 %v3492_v1, %v7526_v22 }
 0x25a   : > { %v3520_v46 = vadd.f32 %v3504_v15, %v3456_v32  ;;  %v3811_v30 = vadd.f32 %v3795_v19, %v3775_v12  ;;  %v3812_v51 = vadd.f32 %v3796_v50, %v3776_v27  ;;  %v3582_v25 = vmul.f32 %v3400_v37, %v7482_v13 }
 0x25b   : > { %v7630_v18 = vadd.f32 %v3505_v24, %v3457_v48  ;;  %v3419_v63 = vmul.f32 %v3408_v56, %v7464_v39  ;;  %v7634_v5 = vadd.f32 %v3506_v29, %v3458_v17  ;;  %v3597_v54 = vadd.f32 %v3581_v28, %v7565_v4 }
 0x25c   : > { %v3875_v0 = vadd.f32 %v3859_v45, %v3811_v30  ;;  %v3618_v14 = vmul.f32 %v7497_v49, %v3248_v20  ;;  %v3876_v19 = vadd.f32 %v3860_v2, %v3812_v51  ;;  %v3598_v6 = vadd.f32 %v3582_v25, %v7567_v57 }
 0x25d   : > { %v3439_v33 = vmul.f32 %v7467_v52, %v3247_v58  ;;  %v3633_v41 = vadd.f32 %v3617_v40, %v3597_v54  ;;  %v3681_v50 = vmul.f32 %v3484_v16, %v7485_v61  ;;  %v3584_v37 = vmul.f32 %v3401_v26, %v7482_v13 }
 0x25e   : > { %v3890_v55 = vpack.c.bf16 %v3876_v19, %v3875_v0  ;;  %v3634_v15 = vadd.f32 %v3618_v14, %v3598_v6  ;;  %v3682_v56 = vmul.f32 %v3492_v1, %v7512_v42  ;;  %v3620_v3 = vmul.f32 %v7497_v49, %v7586_v10 }
 0x25f   : > { %v3697_v4 = vadd.f32 %v3681_v50, %v3633_v41  ;;  %v3761_v20 = vmul.f32 %v3409_v9, %v7516_v62  ;;  %v3455_v45 = vadd.f32 %v3439_v33, %v3419_v63  ;;  %v3762_v58 = vmul.f32 %v3401_v26, %v7488_v21 }
 0x260   : > { %5225 = vmatmul.mubr.bf16.vlgmr.msra.gmra.mrb[16].mxu0 %v3890_v55  ;;  %v3698_v57 = vadd.f32 %v3682_v56, %v3634_v15  ;;  %v3503_v40 = vmul.f32 %v3484_v16, %v7460_v60  ;;  %v3600_v23 = vadd.f32 %v3584_v37, %v3520_v46  ;;  %v3583_v32 = vmul.f32 %v3409_v9, %v7507_v34 }
 0x261   : > { %v3684_v12 = vmul.f32 %v3493_v8, %v7512_v42  ;;  %v3777_v38 = vadd.f32 %v3761_v20, %v3697_v4  ;;  %v3797_v1 = vmul.f32 %v7519_v44, %v7583_v47  ;;  %v3798_v48 = vmul.f32 %v7519_v44, %v7586_v10 }
 0x262   : > { %v3778_v27 = vadd.f32 %v3762_v58, %v3698_v57  ;;  %v3519_v24 = vadd.f32 %v3503_v40, %v3455_v45  ;;  %v3636_v29 = vadd.f32 %v3620_v3, %v3600_v23  ;;  %v3619_v26 = vmul.f32 %v7497_v49, %v7583_v47 }
 0x263   : > { %v3813_v30 = vadd.f32 %v3797_v1, %v3777_v38  ;;  %v3861_v16 = vmul.f32 %v7503_v31, %v7604_v59  ;;  %v3862_v46 = vmul.f32 %v3493_v8, %v7526_v22  ;;  %v3683_v2 = vmul.f32 %v7604_v59, %v7485_v61 }
 0x264   : > { %v3814_v9 = vadd.f32 %v3798_v48, %v3778_v27  ;;  %v3599_v17 = vadd.f32 %v3583_v32, %v3519_v24  ;;  %v3700_v28 = vadd.f32 %v3684_v12, %v3636_v29 }
 0x265   : > { %v3877_v51 = vadd.f32 %v3861_v16, %v3813_v30 }
 0x266   : > { %v3878_v25 = vadd.f32 %v3862_v46, %v3814_v9  ;;  %v3635_v10 = vadd.f32 %v3619_v26, %v3599_v17 }
 0x268   : > { %v3891_v63 = vpack.c.bf16 %v3878_v25, %v3877_v51  ;;  %v3699_v0 = vadd.f32 %v3683_v2, %v3635_v10 }
 0x26a   : > { %5228 = vmatprep.mubr.bf16.mxu0 %v3891_v63 }
 0x27c   : > { %v5186_v54 = vpop.f32.mrb[24].mxu1 }
 0x27d   : > { %v3157_v47 = vadd.f32 %v5186_v54, %v7477_v43  ;;  %v3148_v14 = vpop.f32.mrb[25].mxu1 }
 0x27e   : > { %v3149_v19 = vadd.f32 %v7477_v43, %v3148_v14  ;;  %v5187_v6 = vpop.f32.mrb[26].mxu1 }
 0x27f   : > { %v3253_v33 = vmax.f32 %v3157_v47, 0.0  ;;  %v3160_v8 = vadd.f32 %v5187_v6, %v7477_v43  ;;  %v3151_v41 = vpop.f32.mrb[27].mxu1 }
 0x280   : > { %v3251_v50 = vmax.f32 %v3149_v19, 0.0  ;;  %v3152_v55 = vadd.f32 %v7477_v43, %v3151_v41 }
 0x281   : > { %v3387_v59 = vrot.slane %v3253_v33, 7  ;;  %v3445_v37 = vmul.f32 %v7467_v52, %v3253_v33  ;;  %v3471_v15 = vrot.slane %v3253_v33, 1  ;;  %v7666_v56 = vmax.f32 %v3160_v8, 0.0 }
 0x282   : > { %v3252_v3 = vmax.f32 %v3152_v55, 0.0  ;;  %v7669_v4 = vmul.f32 %v7497_v49, %v3253_v33  ;;  %v3386_v20 = vrot.slane %v3251_v50, 7  ;;  %v3443_v45 = vmul.f32 %v7467_v52, %v3251_v50 }
 0x283   : > { %v3470_v57 = vrot.slane %v3251_v50, 1  ;;  %v3621_v58 = vmul.f32 %v7497_v49, %v3251_v50  ;;  %v3395_v40 = vrot.slane %v7666_v56, 7  ;;  %v3479_v23 = vrot.slane %v7666_v56, 1 }
 0x284   : > { %v3799_v32 = vmul.f32 %v7519_v44, %v3251_v50  ;;  %v3446_v12 = vmul.f32 %v7467_v52, %v7666_v56  ;;  %v3394_v38 = vrot.slane %v3252_v3, 7  ;;  %v3478_v1 = vrot.slane %v3252_v3, 1 }
 0x285   : > { %v7679_v27 = vmul.f32 %v7519_v44, %v3253_v33  ;;  %v7683_v48 = vmul.f32 %v7497_v49, %v7666_v56  ;;  %v7687_v24 = vsel %vm545_vm2, %v3387_v59, %v3395_v40  ;;  %v7691_v29 = vsel %vm545_vm2, %v3395_v40, %v3387_v59 }
 0x286   : > { %v7695_v26 = vsel %vm630_vm3, %v3471_v15, %v3479_v23  ;;  %v3402_v30 = vsel %vm545_vm2, %v3386_v20, %v3394_v38  ;;  %v3410_v16 = vsel %vm545_vm2, %v3394_v38, %v3386_v20  ;;  %v3486_v9 = vsel %vm630_vm3, %v3470_v57, %v3478_v1 }
 0x287   : > { %v3494_v46 = vsel %vm630_vm3, %v3478_v1, %v3470_v57  ;;  %v3444_v17 = vmul.f32 %v7467_v52, %v3252_v3  ;;  %v3622_v51 = vmul.f32 %v7497_v49, %v3252_v3  ;;  %v3423_v2 = vmul.f32 %v3410_v16, %v7464_v39 }
 0x288   : > { %v3424_v25 = vmul.f32 %v3402_v30, %v7457_v7  ;;  %v3507_v10 = vmul.f32 %v3486_v9, %v7460_v60  ;;  %v3508_v63 = vmul.f32 %v3494_v46, %v7471_v35  ;;  %v3585_v54 = vmul.f32 %v3410_v16, %v7507_v34 }
 0x289   : > { %v3800_v47 = vmul.f32 %v7519_v44, %v3252_v3  ;;  %v3459_v14 = vadd.f32 %v3443_v45, %v3423_v2  ;;  %v3763_v6 = vmul.f32 %v3410_v16, %v7516_v62  ;;  %v3764_v33 = vmul.f32 %v3402_v30, %v7488_v21 }
 0x28a   : > { %v3460_v19 = vadd.f32 %v3444_v17, %v3424_v25  ;;  %v3586_v8 = vmul.f32 %v3402_v30, %v7482_v13  ;;  %v3863_v41 = vmul.f32 %v7503_v31, %v3486_v9  ;;  %v3425_v50 = vmul.f32 %v7691_v29, %v7464_v39 }
 0x28b   : > { %v3426_v55 = vmul.f32 %v7687_v24, %v7457_v7  ;;  %v3523_v59 = vadd.f32 %v3507_v10, %v3459_v14  ;;  %v3779_v57 = vadd.f32 %v3763_v6, %v3699_v0  ;;  %v3780_v3 = vadd.f32 %v3764_v33, %v3700_v28 }
 0x28c   : > { %v3524_v20 = vadd.f32 %v3508_v63, %v3460_v19  ;;  %v3461_v45 = vadd.f32 %v3445_v37, %v3425_v50  ;;  %v3495_v38 = vsel %vm630_vm3, %v3479_v23, %v3471_v15  ;;  %v3509_v1 = vmul.f32 %v7695_v26, %v7460_v60 }
 0x28d   : > { %v3462_v40 = vadd.f32 %v3446_v12, %v3426_v55  ;;  %v3815_v30 = vadd.f32 %v3799_v32, %v3779_v57  ;;  %v3816_v16 = vadd.f32 %v3800_v47, %v3780_v3  ;;  %v3864_v17 = vmul.f32 %v3494_v46, %v7526_v22 }
 0x28e   : > { %v3510_v2 = vmul.f32 %v3495_v38, %v7471_v35  ;;  %v3685_v10 = vmul.f32 %v3486_v9, %v7485_v61  ;;  %v7728_v63 = vadd.f32 %v3509_v1, %v3461_v45  ;;  %v3601_v28 = vadd.f32 %v3585_v54, %v7630_v18 }
 0x28f   : > { %v5190_v25 = vpop.f32.mrb[28].mxu1  ;;  %v3602_v0 = vadd.f32 %v3586_v8, %v7634_v5  ;;  %v3879_v23 = vadd.f32 %v3863_v41, %v3815_v30  ;;  %v3880_v12 = vadd.f32 %v3864_v17, %v3816_v16  ;;  %v3686_v19 = vmul.f32 %v3494_v46, %v7512_v42 }
 0x290   : > { %v3173_v37 = vadd.f32 %v5190_v25, %v7477_v43  ;;  %v3164_v15 = vpop.f32.mrb[29].mxu1  ;;  %v7733_v32 = vadd.f32 %v3510_v2, %v3462_v40  ;;  %v3637_v6 = vadd.f32 %v3621_v58, %v3601_v28  ;;  %v3587_v8 = vmul.f32 %v7691_v29, %v7507_v34 }
 0x291   : > { %v3165_v47 = vadd.f32 %v7477_v43, %v3164_v15  ;;  %v5191_v14 = vpop.f32.mrb[30].mxu1  ;;  %v3638_v9 = vadd.f32 %v3622_v51, %v3602_v0  ;;  %v3892_v5 = vpack.c.bf16 %v3880_v12, %v3879_v23  ;;  %v3588_v58 = vmul.f32 %v7687_v24, %v7482_v13 }
 0x292   : > { %v7737_v33 = vmax.f32 %v3173_v37, 0.0  ;;  %v3176_v18 = vadd.f32 %v5191_v14, %v7477_v43  ;;  %v3167_v54 = vpop.f32.mrb[31].mxu1  ;;  %v3701_v55 = vadd.f32 %v3685_v10, %v3637_v6  ;;  %v3687_v46 = vmul.f32 %v7695_v26, %v7485_v61 }
 0x293   : > { %v7742_v41 = vmax.f32 %v3165_v47, 0.0  ;;  %v3168_v50 = vadd.f32 %v7477_v43, %v3167_v54  ;;  %v3702_v57 = vadd.f32 %v3686_v19, %v3638_v9  ;;  %5229 = vmatmul.mubr.bf16.gmra.mrb[20].mxu0 %v3892_v5  ;;  %v3688_v51 = vmul.f32 %v3495_v38, %v7512_v42 }
 0x294   : > { %v7753_v45 = vmul.f32 %v7497_v49, %v7737_v33  ;;  %v7758_v1 = vmul.f32 %v7467_v52, %v7737_v33  ;;  %v7764_v2 = vmax.f32 %v3176_v18, 0.0  ;;  %v3765_v28 = vmul.f32 %v7691_v29, %v7516_v62 }
 0x295   : > { %v3388_v30 = vrot.slane %v7742_v41, 7  ;;  %v3447_v16 = vmul.f32 %v7467_v52, %v7742_v41  ;;  %v3472_v17 = vrot.slane %v7742_v41, 1  ;;  %v3256_v25 = vmax.f32 %v3168_v50, 0.0 }
 0x296   : > { %v7768_v10 = vmul.f32 %v7497_v49, %v7742_v41  ;;  %v3766_v0 = vmul.f32 %v7687_v24, %v7488_v21  ;;  %v3603_v37 = vadd.f32 %v3587_v8, %v3523_v59  ;;  %v3560_v15 = vrot.slane %v7764_v2, 7 }
 0x297   : > { %v3802_v23 = vmul.f32 %v7519_v44, %v7666_v56  ;;  %v3865_v12 = vmul.f32 %v7503_v31, %v7695_v26  ;;  %v3866_v47 = vmul.f32 %v3495_v38, %v7526_v22  ;;  %v7782_v14 = vmul.f32 %v7497_v49, %v7764_v2 }
 0x298   : > { %v3396_v19 = vrot.slane %v3256_v25, 7  ;;  %v3448_v29 = vmul.f32 %v7467_v52, %v3256_v25  ;;  %v3480_v6 = vrot.slane %v3256_v25, 1  ;;  %v3781_v24 = vadd.f32 %v3765_v28, %v3701_v55 }
 0x299   : > { %v3782_v59 = vadd.f32 %v3766_v0, %v3702_v57  ;;  %v3604_v9 = vadd.f32 %v3588_v58, %v3524_v20  ;;  %v3639_v18 = vadd.f32 %v7669_v4, %v3603_v37  ;;  %v3660_v4 = vrot.slane %v7764_v2, 1 }
 0x29a   : > { %v3404_v56 = vsel %vm545_vm2, %v3388_v30, %v3396_v19  ;;  %v3412_v26 = vsel %vm545_vm2, %v3396_v19, %v3388_v30  ;;  %v3488_v38 = vsel %vm630_vm3, %v3472_v17, %v3480_v6  ;;  %v3496_v54 = vsel %vm630_vm3, %v3480_v6, %v3472_v17 }
 0x29b   : > { %v3817_v5 = vadd.f32 %v7679_v27, %v3781_v24  ;;  %v3818_v8 = vadd.f32 %v3802_v23, %v3782_v59  ;;  %v3427_v50 = vmul.f32 %v3412_v26, %v7464_v39  ;;  %v3428_v20 = vmul.f32 %v3404_v56, %v7457_v7 }
 0x29c   : > { %v7800_v55 = vmul.f32 %v7467_v52, %v7764_v2  ;;  %v3511_v57 = vmul.f32 %v3488_v38, %v7460_v60  ;;  %v3512_v58 = vmul.f32 %v3496_v54, %v7471_v35  ;;  %v3626_v27 = vmul.f32 %v7497_v49, %v3256_v25 }
 0x29d   : > { %v3881_v30 = vadd.f32 %v3865_v12, %v3817_v5  ;;  %v3882_v28 = vadd.f32 %v3866_v47, %v3818_v8  ;;  %v3463_v17 = vadd.f32 %v3447_v16, %v3427_v50  ;;  %v3464_v0 = vadd.f32 %v3448_v29, %v3428_v20 }
 0x29e   : > { %v3589_v37 = vmul.f32 %v3412_v26, %v7507_v34  ;;  %v3640_v23 = vadd.f32 %v7683_v48, %v3604_v9  ;;  %v3703_v19 = vadd.f32 %v3687_v46, %v3639_v18  ;;  %v3767_v40 = vmul.f32 %v3412_v26, %v7516_v62 }
 0x29f   : > { %v3893_v6 = vpack.c.bf16 %v3882_v28, %v3881_v30  ;;  %v7807_v24 = vadd.f32 %v3511_v57, %v3463_v17  ;;  %v7809_v59 = vadd.f32 %v3512_v58, %v3464_v0  ;;  %v5194_v3 = vpop.f32.mrb[32].mxu1  ;;  %v3590_v12 = vmul.f32 %v3404_v56, %v7482_v13 }
 0x2a0   : > { %v3689_v16 = vmul.f32 %v3488_v38, %v7485_v61  ;;  %v3704_v47 = vadd.f32 %v3688_v51, %v3640_v23  ;;  %v3768_v29 = vmul.f32 %v3404_v56, %v7488_v21  ;;  %v3189_v5 = vadd.f32 %v5194_v3, %v7477_v43  ;;  %v3180_v8 = vpop.f32.mrb[33].mxu1 }
 0x2a1   : > { %5232 = vmatprep.mubr.bf16.mxu0 %v3893_v6  ;;  %v3783_v48 = vadd.f32 %v3767_v40, %v3703_v19  ;;  %v3803_v46 = vmul.f32 %v7519_v44, %v7742_v41  ;;  %v3804_v9 = vmul.f32 %v7519_v44, %v3256_v25  ;;  %v3181_v18 = vadd.f32 %v7477_v43, %v3180_v8  ;;  %v5195_v26 = vpop.f32.mrb[34].mxu1 }
 0x2a2   : > { %v3784_v50 = vadd.f32 %v3768_v29, %v3704_v47  ;;  %v8787_v20 = vrot.slane %v7737_v33, 7  ;;  %v7828_v40 = vmax.f32 %v3189_v5, 0.0  ;;  %v3192_v41 = vadd.f32 %v5195_v26, %v7477_v43  ;;  %v3183_v57 = vpop.f32.mrb[35].mxu1 }
 0x2a3   : > { %v3690_v25 = vmul.f32 %v3496_v54, %v7512_v42  ;;  %v3819_v58 = vadd.f32 %v3803_v46, %v3783_v48  ;;  %v7832_v30 = vmax.f32 %v3181_v18, 0.0  ;;  %v3184_v28 = vadd.f32 %v7477_v43, %v3183_v57 }
 0x2a4   : > { %v3568_v51 = vsel %vm545_vm2, %v8787_v20, %v3560_v15  ;;  %v8788_v56 = vmov %v8787_v20  ;;  %v3820_v17 = vadd.f32 %v3804_v9, %v3784_v50  ;;  %v3867_v0 = vmul.f32 %v7503_v31, %v3488_v38 }
 0x2a5   : > { %v3576_v3 = vsel %vm545_vm2, %v3560_v15, %v8788_v56  ;;  %v3868_v19 = vmul.f32 %v3496_v54, %v7526_v22  ;;  %v3592_v6 = vmul.f32 %v3568_v51, %v7482_v13  ;;  %v7842_v47 = vmul.f32 %v7467_v52, %v7828_v40 }
 0x2a6   : > { %v3591_v15 = vmul.f32 %v3576_v3, %v7507_v34  ;;  %v7847_v5 = vmul.f32 %v7497_v49, %v7828_v40  ;;  %v3732_v38 = vrot.slane %v7832_v30, 7  ;;  %v7850_v8 = vmax.f32 %v3192_v41, 0.0 }
 0x2a7   : > { %v7852_v48 = vmax.f32 %v3184_v28, 0.0  ;;  %v3883_v54 = vadd.f32 %v3867_v0, %v3819_v58  ;;  %v3884_v46 = vadd.f32 %v3868_v19, %v3820_v17  ;;  %v3605_v9 = vadd.f32 %v3589_v37, %v7728_v63 }
 0x2a8   : > { %v3606_v18 = vadd.f32 %v3590_v12, %v7733_v32  ;;  %v8789_v26 = vrot.slane %v7737_v33, 1  ;;  %v3832_v41 = vrot.slane %v7832_v30, 1  ;;  %v3971_v57 = vmul.f32 %v7467_v52, %v7832_v30 }
 0x2a9   : > { %v7869_v63 = vmul.f32 %v7497_v49, %v7832_v30  ;;  %v7874_v37 = vmul.f32 %v7467_v52, %v7850_v8  ;;  %v3740_v58 = vrot.slane %v7852_v48, 7  ;;  %v3840_v28 = vrot.slane %v7852_v48, 1 }
 0x2aa   : > { %v3668_v50 = vsel %vm630_vm3, %v8789_v26, %v3660_v4  ;;  %v8790_v20 = vmov %v8789_v26  ;;  %v3894_v17 = vpack.c.bf16 %v3884_v46, %v3883_v54  ;;  %v3641_v0 = vadd.f32 %v7768_v10, %v3605_v9 }
 0x2ab   : > { %v3676_v56 = vsel %vm630_vm3, %v3660_v4, %v8790_v20  ;;  %v7879_v4 = vmul.f32 %v7497_v49, %v7850_v8  ;;  %v3642_v19 = vadd.f32 %v3626_v27, %v3606_v18  ;;  %v3691_v26 = vmul.f32 %v3668_v50, %v7485_v61 }
 0x2ac   : > { %v3769_v20 = vmul.f32 %v3576_v3, %v7516_v62  ;;  %v3770_v29 = vmul.f32 %v3568_v51, %v7488_v21  ;;  %v3805_v12 = vmul.f32 %v7519_v44, %v7737_v33  ;;  %5233 = vmatmul.mubr.bf16.gmra.mrb[24].mxu0 %v3894_v17  ;;  %v3705_v23 = vadd.f32 %v3689_v16, %v3641_v0 }
 0x2ad   : > { %v3706_v32 = vadd.f32 %v3690_v25, %v3642_v19  ;;  %v3806_v53 = vmul.f32 %v7519_v44, %v7764_v2  ;;  %v3869_v54 = vmul.f32 %v7503_v31, %v3668_v50  ;;  %v3870_v10 = vmul.f32 %v3676_v56, %v7526_v22 }
 0x2ae   : > { %v3953_v27 = vmul.f32 %v3576_v3, %v7464_v39  ;;  %v3954_v46 = vmul.f32 %v3568_v51, %v7457_v7  ;;  %v4033_v9 = vmul.f32 %v3668_v50, %v7460_v60  ;;  %v3785_v18 = vadd.f32 %v3769_v20, %v3705_v23 }
 0x2af   : > { %v3786_v11 = vadd.f32 %v3770_v29, %v3706_v32  ;;  %v4034_v33 = vmul.f32 %v3676_v56, %v7471_v35  ;;  %v3607_v16 = vadd.f32 %v3591_v15, %v7807_v24  ;;  %v3608_v17 = vadd.f32 %v3592_v6, %v7809_v59 }
 0x2b0   : > { %v3985_v25 = vadd.f32 %v7758_v1, %v3953_v27  ;;  %v3986_v2 = vadd.f32 %v7800_v55, %v3954_v46  ;;  %v3748_v0 = vsel %vm545_vm2, %v3732_v38, %v3740_v58  ;;  %v3821_v3 = vadd.f32 %v3805_v12, %v3785_v18 }
 0x2b1   : > { %v3822_v19 = vadd.f32 %v3806_v53, %v3786_v11  ;;  %v3643_v51 = vadd.f32 %v7753_v45, %v3607_v16  ;;  %v3756_v23 = vsel %vm545_vm2, %v3740_v58, %v3732_v38  ;;  %v3692_v29 = vmul.f32 %v3676_v56, %v7512_v42 }
 0x2b2   : > { %v7907_v50 = vadd.f32 %v4033_v9, %v3985_v25  ;;  %v7909_v24 = vadd.f32 %v4034_v33, %v3986_v2  ;;  %v3644_v1 = vadd.f32 %v7782_v14, %v3608_v17  ;;  %v3885_v55 = vadd.f32 %v3869_v54, %v3821_v3 }
 0x2b3   : > { %v3886_v59 = vadd.f32 %v3870_v10, %v3822_v19  ;;  %v3707_v15 = vadd.f32 %v3691_v26, %v3643_v51  ;;  %v3771_v6 = vmul.f32 %v3756_v23, %v7516_v62  ;;  %v3972_v11 = vmul.f32 %v7467_v52, %v7852_v48 }
 0x2b4   : > { %v3708_v53 = vadd.f32 %v3692_v29, %v3644_v1  ;;  %v3772_v45 = vmul.f32 %v3748_v0, %v7488_v21  ;;  %v3848_v38 = vsel %vm630_vm3, %v3832_v41, %v3840_v28  ;;  %v3807_v12 = vmul.f32 %v7519_v44, %v7832_v30 }
 0x2b5   : > { %v3895_v56 = vpack.c.bf16 %v3886_v59, %v3885_v55  ;;  %v3787_v32 = vadd.f32 %v3771_v6, %v3707_v15  ;;  %v3856_v14 = vsel %vm630_vm3, %v3840_v28, %v3832_v41  ;;  %v3808_v26 = vmul.f32 %v7519_v44, %v7852_v48 }
 0x2b6   : > { %v3788_v58 = vadd.f32 %v3772_v45, %v3708_v53  ;;  %v3955_v20 = vmul.f32 %v3756_v23, %v7464_v39  ;;  %v3956_v54 = vmul.f32 %v3748_v0, %v7457_v7  ;;  %v3871_v27 = vmul.f32 %v7503_v31, %v3848_v38 }
 0x2b7   : > { %5236 = vmatprep.mubr.bf16.mxu0 %v3895_v56  ;;  %v3823_v10 = vadd.f32 %v3807_v12, %v3787_v32  ;;  %v3872_v46 = vmul.f32 %v3856_v14, %v7526_v22  ;;  %v4035_v9 = vmul.f32 %v3848_v38, %v7460_v60  ;;  %v4036_v41 = vmul.f32 %v3856_v14, %v7471_v35 }
 0x2b8   : > { %v3824_v30 = vadd.f32 %v3808_v26, %v3788_v58  ;;  %v3987_v18 = vadd.f32 %v3971_v57, %v3955_v20  ;;  %v3988_v33 = vadd.f32 %v3972_v11, %v3956_v54  ;;  %v4146_v28 = vmul.f32 %v7497_v49, %v7852_v48 }
 0x2b9   : > { %v3887_v25 = vadd.f32 %v3871_v27, %v3823_v10  ;;  %v4113_v2 = vmul.f32 %v3756_v23, %v7507_v34  ;;  %v8791_v17 = vrot.slane %v7850_v8, 7  ;;  %v8792_v3 = vrot.slane %v7828_v40, 7 }
 0x2ba   : > { %v3888_v29 = vadd.f32 %v3872_v46, %v3824_v30  ;;  %v7940_v1 = vadd.f32 %v4035_v9, %v3987_v18  ;;  %v7942_v55 = vadd.f32 %v4036_v41, %v3988_v33  ;;  %v8795_v53 = vrot.slane %v7850_v8, 1 }
 0x2bb   : > { %v5198_v16 = vpop.f32.mrb[36].mxu1  ;;  %v3939_v19 = vsel %vm545_vm2, %v8792_v3, %v8791_v17  ;;  %v8793_v23 = vmov %v8792_v3  ;;  %v8794_v15 = vmov %v8791_v17  ;;  %v8796_v45 = vrot.slane %v7828_v40, 1 }
 0x2bc   : > { %v3205_v51 = vadd.f32 %v5198_v16, %v7477_v43  ;;  %v3196_v57 = vpop.f32.mrb[37].mxu1  ;;  %v3947_v6 = vsel %vm545_vm2, %v8794_v15, %v8793_v23  ;;  %v3958_v11 = vmul.f32 %v3939_v19, %v7457_v7  ;;  %v3896_v26 = vpack.c.bf16 %v3888_v29, %v3887_v25 }
 0x2bd   : > { %v3197_v48 = vadd.f32 %v7477_v43, %v3196_v57  ;;  %v5199_v59 = vpop.f32.mrb[38].mxu1  ;;  %v4019_v56 = vsel %vm630_vm3, %v8796_v45, %v8795_v53  ;;  %v3957_v20 = vmul.f32 %v3947_v6, %v7464_v39  ;;  %v8797_v46 = vmov %v8796_v45 }
 0x2be   : > { %v7958_v32 = vmax.f32 %v3205_v51, 0.0  ;;  %v3208_v12 = vadd.f32 %v5199_v59, %v7477_v43  ;;  %v3199_v58 = vpop.f32.mrb[39].mxu1  ;;  %v3990_v27 = vadd.f32 %v7874_v37, %v3958_v11  ;;  %v8798_v9 = vmov %v8795_v53  ;;  %5237 = vmatmul.mubr.bf16.gmra.mrb[28].mxu0 %v3896_v26 }
 0x2bf   : > { %v7962_v54 = vmax.f32 %v3197_v48, 0.0  ;;  %v3200_v10 = vadd.f32 %v7477_v43, %v3199_v58  ;;  %v7972_v30 = vsel %vm630_vm3, %v8798_v9, %v8797_v46  ;;  %v4114_v33 = vmul.f32 %v3748_v0, %v7482_v13 }
 0x2c0   : > { %v4209_v41 = vmul.f32 %v3848_v38, %v7485_v61  ;;  %v4210_v16 = vmul.f32 %v3856_v14, %v7512_v42  ;;  %v7980_v43 = vmul.f32 %v7467_v52, %v7958_v32  ;;  %v7985_v25 = vmul.f32 %v7497_v49, %v7958_v32 }
 0x2c1   : > { %v3924_v17 = vrot.slane %v7962_v54, 7  ;;  %v3975_v0 = vmul.f32 %v7467_v52, %v7962_v54  ;;  %v7990_v3 = vmax.f32 %v3208_v12, 0.0  ;;  %v7992_v38 = vmax.f32 %v3200_v10, 0.0 }
 0x2c2   : > { %v3989_v14 = vadd.f32 %v7842_v47, %v3957_v20  ;;  %v4004_v51 = vrot.slane %v7962_v54, 1  ;;  %v7998_v57 = vmul.f32 %v7497_v49, %v7962_v54  ;;  %v4037_v29 = vmul.f32 %v4019_v56, %v7460_v60 }
 0x2c3   : > { %v4129_v48 = vadd.f32 %v4113_v2, %v7907_v50  ;;  %v4038_v23 = vmul.f32 %v7972_v30, %v7471_v35  ;;  %v4115_v15 = vmul.f32 %v3947_v6, %v7507_v34  ;;  %v4116_v11 = vmul.f32 %v3939_v19, %v7482_v13 }
 0x2c4   : > { %v8009_v47 = vmul.f32 %v7467_v52, %v7990_v3  ;;  %v8014_v45 = vmul.f32 %v7497_v49, %v7990_v3  ;;  %v3932_v50 = vrot.slane %v7992_v38, 7  ;;  %v8017_v2 = vadd.f32 %v4037_v29, %v3989_v14 }
 0x2c5   : > { %v8019_v12 = vadd.f32 %v4038_v23, %v3990_v27  ;;  %v4130_v58 = vadd.f32 %v4114_v33, %v7909_v24  ;;  %v4161_v26 = vadd.f32 %v7869_v63, %v4129_v48  ;;  %v3976_v20 = vmul.f32 %v7467_v52, %v7992_v38 }
 0x2c6   : > { %v4012_v10 = vrot.slane %v7992_v38, 1  ;;  %v8028_v46 = vmul.f32 %v7497_v49, %v7992_v38  ;;  %v4211_v9 = vmul.f32 %v4019_v56, %v7485_v61  ;;  %v4289_v27 = vmul.f32 %v3947_v6, %v7516_v62 }
 0x2c7   : > { %v4162_v37 = vadd.f32 %v4146_v28, %v4130_v58  ;;  %v4225_v14 = vadd.f32 %v4209_v41, %v4161_v26  ;;  %v4290_v29 = vmul.f32 %v3939_v19, %v7488_v21  ;;  %v4321_v63 = vmul.f32 %v7519_v44, %v7828_v40 }
 0x2c8   : > { %v4322_v24 = vmul.f32 %v7519_v44, %v7850_v8  ;;  %v3940_v33 = vsel %vm545_vm2, %v3924_v17, %v3932_v50  ;;  %v3948_v48 = vsel %vm545_vm2, %v3932_v50, %v3924_v17  ;;  %v4385_v19 = vmul.f32 %v7503_v31, %v4019_v56 }
 0x2c9   : > { %v4226_v23 = vadd.f32 %v4210_v16, %v4162_v37  ;;  %v4305_v28 = vadd.f32 %v4289_v27, %v4225_v14  ;;  %v3959_v41 = vmul.f32 %v3948_v48, %v7464_v39  ;;  %v3960_v6 = vmul.f32 %v3940_v33, %v7457_v7  ;;  %v8053_v14 = vld [vmem:[%s5597_s5 + $0x1] ss:$0 sm:$0xff] }
 0x2ca   : > { %v4386_v40 = vmul.f32 %v7972_v30, %v7526_v22  ;;  %v4020_v8 = vsel %vm630_vm3, %v4004_v51, %v4012_v10  ;;  %v8050_v58 = vsel %vm630_vm3, %v4012_v10, %v4004_v51  ;;  %v4131_v18 = vadd.f32 %v4115_v15, %v7940_v1 }
 0x2cb   : > { %v4306_v17 = vadd.f32 %v4290_v29, %v4226_v23  ;;  %v4337_v16 = vadd.f32 %v4321_v63, %v4305_v28  ;;  %v3991_v37 = vadd.f32 %v3975_v0, %v3959_v41  ;;  %v3992_v50 = vadd.f32 %v3976_v20, %v3960_v6 }
 0x2cc   : > { %v4039_v56 = vmul.f32 %v4020_v8, %v7460_v60  ;;  %v4040_v53 = vmul.f32 %v8050_v58, %v7471_v35  ;;  %v4132_v0 = vadd.f32 %v4116_v11, %v7942_v55  ;;  %v4212_v55 = vmul.f32 %v7972_v30, %v7512_v42 }
 0x2cd   : > { %v4338_v59 = vadd.f32 %v4322_v24, %v4306_v17  ;;  %v4401_v29 = vadd.f32 %v4385_v19, %v4337_v16  ;;  %v8077_v11 = vmul.f32 %v3948_v48, %v7507_v34  ;;  %v8080_v19 = vmul.f32 %v3940_v33, %v7482_v13 }
 0x2ce   : > { %v8065_v28 = vadd.f32 %v4039_v56, %v3991_v37  ;;  %v8067_v41 = vadd.f32 %v4040_v53, %v3992_v50  ;;  %v4164_v16 = vadd.f32 %v7879_v4, %v4132_v0  ;;  %v8112_v4 = vmul.f32 %v8050_v58, %v7512_v42  ;;  %v8136_v56 = vld [vmem:[%s5587_s30 + $0x28] ss:$0 sm:$0xff] }
 0x2cf   : > { %v4402_v15 = vadd.f32 %v4386_v40, %v4338_v59  ;;  %v4324_v24 = vmul.f32 %v7519_v44, %v7992_v38  ;;  %v8802_v50 = vrot.slane %v7958_v32, 7 }
 0x2d0   : > { %v5202_v26 = vpop.f32.mrb[40].mxu1 }
 0x2d1   : > { %v3221_v27 = vadd.f32 %v8053_v14, %v5202_v26  ;;  %v3212_v31 = vpop.f32.mrb[41].mxu1  ;;  %v4163_v26 = vadd.f32 %v7847_v5, %v4131_v18  ;;  %v4417_v40 = vpack.c.bf16 %v4402_v15, %v4401_v29  ;;  %v4292_v15 = vmul.f32 %v3940_v33, %v7488_v21 }
 0x2d2   : > { %v3213_v51 = vadd.f32 %v8053_v14, %v3212_v31  ;;  %v5203_v10 = vpop.f32.mrb[42].mxu1 }
 0x2d3   : > { %v8062_v20 = vmax.f32 %v3221_v27, 0.0  ;;  %v3224_v63 = vadd.f32 %v8053_v14, %v5203_v10  ;;  %v3215_v23 = vpop.f32.mrb[43].mxu1  ;;  %v4227_v31 = vadd.f32 %v4211_v9, %v4163_v26  ;;  %5240 = vmatprep.mubr.bf16.mxu0 %v4417_v40  ;;  %v4291_v10 = vmul.f32 %v3948_v48, %v7516_v62 }
 0x2d4   : > { %v8069_v6 = vmax.f32 %v3213_v51, 0.0  ;;  %v3216_v1 = vadd.f32 %v8053_v14, %v3215_v23  ;;  %v8108_v51 = vmul.f32 %v4020_v8, %v7485_v61  ;;  %v4323_v48 = vmul.f32 %v7519_v44, %v7962_v54 }
 0x2d5   : > { %v8084_v53 = vmul.f32 %v7467_v52, %v8062_v20  ;;  %v8089_v5 = vmul.f32 %v7497_v49, %v8062_v20  ;;  %v8092_v59 = vmax.f32 %v3224_v63, 0.0  ;;  %v4307_v26 = vadd.f32 %v4291_v10, %v4227_v31 }
 0x2d6   : > { %v8094_v30 = vmax.f32 %v3216_v1, 0.0  ;;  %v8099_v37 = vmul.f32 %v7467_v52, %v8069_v6  ;;  %v8104_v27 = vmul.f32 %v7497_v49, %v8069_v6  ;;  %v4228_v1 = vadd.f32 %v4212_v55, %v4164_v16 }
 0x2d7   : > { %8799 = vst [vmem:[#allocation36_spill] sm:$0xff] %v8089_v5  ;;  %v8117_v29 = vmul.f32 %v7467_v52, %v8092_v59  ;;  %v8122_v9 = vmul.f32 %v7497_v49, %v8092_v59  ;;  %v4387_v55 = vmul.f32 %v8136_v56, %v4020_v8  ;;  %v4339_v10 = vadd.f32 %v4323_v48, %v4307_v26 }
 0x2d8   : > { %v8130_v40 = vmul.f32 %v7467_v52, %v8094_v30  ;;  %v4308_v31 = vadd.f32 %v4292_v15, %v4228_v1  ;;  %v8801_v54 = vrot.slane %v7990_v3, 7  ;;  %v4388_v5 = vmul.f32 %v8050_v58, %v7526_v22 }
 0x2d9   : > { %8800 = vst [vmem:[#allocation38_spill] sm:$0xff] %v8122_v9  ;;  %v8804_v9 = vmov %v8802_v50 }
 0x2da   : > { %v8805_v8 = vmov %v8801_v54  ;;  %v4340_v48 = vadd.f32 %v4324_v24, %v4308_v31 }
 0x2db   : > { %v5206_v23 = vpop.f32.mrb[44].mxu1 }
 0x2dc   : > { %v3237_v17 = vadd.f32 %v8053_v14, %v5206_v23  ;;  %v3228_v0 = vpop.f32.mrb[45].mxu1  ;;  %v3941_v23 = vsel %vm545_vm2, %v8802_v50, %v8801_v54  ;;  %v4403_v50 = vadd.f32 %v4387_v55, %v4339_v10  ;;  %v4404_v31 = vadd.f32 %v4388_v5, %v4340_v48 }
 0x2dd   : > { %v3229_v33 = vadd.f32 %v8053_v14, %v3228_v0  ;;  %v5207_v16 = vpop.f32.mrb[46].mxu1  ;;  %v3949_v0 = vsel %vm545_vm2, %v8805_v8, %v8804_v9  ;;  %v3962_v1 = vmul.f32 %v3941_v23, %v7457_v7  ;;  %v8811_v54 = vrot.slane %v7958_v32, 1 }
 0x2de   : > { %v8146_v18 = vmax.f32 %v3237_v17, 0.0  ;;  %v3240_v38 = vadd.f32 %v8053_v14, %v5207_v16  ;;  %v3231_v63 = vpop.f32.mrb[47].mxu1  ;;  %v4014_v17 = vrot.slane %v8094_v30, 1  ;;  %v8162_v16 = vmul.f32 %v7497_v49, %v8094_v30 }
 0x2df   : > { %v8156_v15 = vmax.f32 %v3229_v33, 0.0  ;;  %v3232_v26 = vadd.f32 %v8053_v14, %v3231_v63  ;;  %v3961_v10 = vmul.f32 %v3949_v0, %v7464_v39  ;;  %v3994_v8 = vadd.f32 %v8009_v47, %v3962_v1 }
 0x2e0   : > { %8803 = vst [vmem:[#allocation27_spill] sm:$0xff] %v8146_v18  ;;  %v8169_v9 = vmul.f32 %v7497_v49, %v8146_v18  ;;  %v8174_v14 = vmul.f32 %v7519_v44, %v8146_v18  ;;  %v8177_v63 = vmax.f32 %v3240_v38, 0.0  ;;  %v8810_v33 = vrot.slane %v7990_v3, 1 }
 0x2e1   : > { %v8179_v55 = vmax.f32 %v3232_v26, 0.0  ;;  %v8184_v58 = vmul.f32 %v7467_v52, %v8156_v15  ;;  %v8812_v38 = vmov %v8811_v54  ;;  %v4119_v1 = vmul.f32 %v3949_v0, %v7507_v34 }
 0x2e2   : > { %8806 = vst [vmem:[#allocation30_spill] sm:$0xff] %v8169_v9  ;;  %8807 = vst [vmem:[#allocation43_spill] sm:$0xff] %v8174_v14  ;;  %v4021_v24 = vsel %vm630_vm3, %v8811_v54, %v8810_v33  ;;  %v8813_v26 = vmov %v8810_v33  ;;  %v8202_v14 = vmul.f32 %v7497_v49, %v8156_v15  ;;  %v8208_v54 = vmul.f32 %v7497_v49, %v8177_v63 }
 0x2e3   : > { %8808 = vst [vmem:[#allocation32_spill] sm:$0xff] %v8177_v63  ;;  %8809 = vst [vmem:[#allocation35_spill] sm:$0xff] %v8184_v58  ;;  %v4029_v5 = vsel %vm630_vm3, %v8813_v26, %v8812_v38  ;;  %v8213_v9 = vmul.f32 %v7519_v44, %v8177_v63  ;;  %v4418_v26 = vpack.c.bf16 %v4404_v31, %v4403_v50 }
 0x2e4   : > { %8814 = vst [vmem:[#allocation39_spill] sm:$0xff] %v8202_v14  ;;  %8815 = vst [vmem:[#allocation44_spill] sm:$0xff] %v8208_v54  ;;  %v3993_v48 = vadd.f32 %v7980_v43, %v3961_v10  ;;  %v4041_v14 = vmul.f32 %v4021_v24, %v7460_v60  ;;  %v4042_v47 = vmul.f32 %v4029_v5, %v7471_v35 }
 0x2e5   : > { %8816 = vst [vmem:[#allocation40_spill] sm:$0xff] %v8213_v9  ;;  %v8221_v18 = vmul.f32 %v7467_v52, %v8179_v55  ;;  %v4133_v33 = vadd.f32 %v8077_v11, %v8017_v2  ;;  %v4134_v9 = vadd.f32 %v8080_v19, %v8019_v12  ;;  %v8230_v50 = vmul.f32 %v7497_v49, %v8179_v55 }
 0x2e6   : > { %5241 = vmatmul.mubr.bf16.gmra.mrb[32].mxu0 %v4418_v26  ;;  %v8232_v43 = vadd.f32 %v4041_v14, %v3993_v48  ;;  %v8234_v31 = vadd.f32 %v4042_v47, %v3994_v8  ;;  %v4120_v52 = vmul.f32 %v3941_v23, %v7482_v13  ;;  %v4215_v2 = vmul.f32 %v4021_v24, %v7485_v61 }
 0x2e7   : > { %8817 = vst [vmem:[#allocation28_spill] sm:$0xff] %v8230_v50  ;;  %v4165_v10 = vadd.f32 %v7998_v57, %v4133_v33  ;;  %v4166_v54 = vadd.f32 %v8028_v46, %v4134_v9  ;;  %v4216_v11 = vmul.f32 %v4029_v5, %v7512_v42  ;;  %v4293_v12 = vmul.f32 %v3949_v0, %v7516_v62 }
 0x2e8   : > { %v4294_v49 = vmul.f32 %v3941_v23, %v7488_v21  ;;  %v4325_v19 = vmul.f32 %v7519_v44, %v7958_v32  ;;  %v8818_v14 = vrot.slane %v8094_v30, 7  ;;  %v8819_v8 = vrot.slane %v8069_v6, 7 }
 0x2e9   : > { %v4229_v46 = vadd.f32 %v8108_v51, %v4165_v10  ;;  %v4230_v9 = vadd.f32 %v8112_v4, %v4166_v54  ;;  %v4326_v47 = vmul.f32 %v7519_v44, %v7990_v3  ;;  %v8822_v26 = vrot.slane %v8069_v6, 1 }
 0x2ea   : > { %v3942_v57 = vsel %vm545_vm2, %v8819_v8, %v8818_v14  ;;  %v8820_v48 = vmov %v8819_v8  ;;  %v8821_v0 = vmov %v8818_v14  ;;  %v4389_v8 = vmul.f32 %v8136_v56, %v4021_v24 }
 0x2eb   : > { %v3950_v23 = vsel %vm545_vm2, %v8821_v0, %v8820_v48  ;;  %v3964_v32 = vmul.f32 %v3942_v57, %v7457_v7  ;;  %v4022_v51 = vsel %vm630_vm3, %v8822_v26, %v4014_v17  ;;  %v8823_v4 = vmov %v8822_v26 }
 0x2ec   : > { %v3963_v33 = vmul.f32 %v3950_v23, %v7464_v39  ;;  %v4030_v54 = vsel %vm630_vm3, %v4014_v17, %v8823_v4  ;;  %v4309_v10 = vadd.f32 %v4293_v12, %v4229_v46  ;;  %v4310_v14 = vadd.f32 %v4294_v49, %v4230_v9 }
 0x2ed   : > { %v3996_v48 = vadd.f32 %v8130_v40, %v3964_v32  ;;  %v4043_v0 = vmul.f32 %v4022_v51, %v7460_v60  ;;  %v4044_v38 = vmul.f32 %v4030_v54, %v7471_v35  ;;  %v4135_v50 = vadd.f32 %v4119_v1, %v8065_v28 }
 0x2ee   : > { %v3995_v3 = vadd.f32 %v8099_v37, %v3963_v33  ;;  %v4341_v26 = vadd.f32 %v4325_v19, %v4309_v10  ;;  %v4342_v63 = vadd.f32 %v4326_v47, %v4310_v14  ;;  %v4390_v58 = vmul.f32 %v4029_v5, %v7526_v22 }
 0x2ef   : > { %v4136_v17 = vadd.f32 %v4120_v52, %v8067_v41  ;;  %v8281_v49 = vadd.f32 %v4044_v38, %v3996_v48  ;;  %v4121_v40 = vmul.f32 %v3950_v23, %v7507_v34  ;;  %v4167_v37 = vadd.f32 %v7985_v25, %v4135_v50 }
 0x2f0   : > { %v8279_v12 = vadd.f32 %v4043_v0, %v3995_v3  ;;  %v4405_v24 = vadd.f32 %v4389_v8, %v4341_v26  ;;  %v4406_v46 = vadd.f32 %v4390_v58, %v4342_v63  ;;  %v4122_v9 = vmul.f32 %v3942_v57, %v7482_v13 }
 0x2f1   : > { %v4168_v28 = vadd.f32 %v8014_v45, %v4136_v17  ;;  %v4217_v1 = vmul.f32 %v4022_v51, %v7485_v61  ;;  %v4231_v19 = vadd.f32 %v4215_v2, %v4167_v37  ;;  %v4295_v5 = vmul.f32 %v3950_v23, %v7516_v62 }
 0x2f2   : > { %v4296_v41 = vmul.f32 %v3942_v57, %v7488_v21  ;;  %v4419_v52 = vpack.c.bf16 %v4406_v46, %v4405_v24  ;;  %v4327_v32 = vmul.f32 %v7519_v44, %v8069_v6  ;;  %v4328_v25 = vmul.f32 %v7519_v44, %v8094_v30 }
 0x2f3   : > { %v4232_v38 = vadd.f32 %v4216_v11, %v4168_v28  ;;  %v4311_v63 = vadd.f32 %v4295_v5, %v4231_v19  ;;  %v8824_v58 = vrot.slane %v8092_v59, 7  ;;  %v8825_v45 = vrot.slane %v8062_v20, 7 }
 0x2f4   : > { %v8828_v6 = vrot.slane %v8092_v59, 1  ;;  %v8829_v23 = vrot.slane %v8062_v20, 1  ;;  %5244 = vmatprep.mubr.bf16.mxu0 %v4419_v52  ;;  %v4391_v3 = vmul.f32 %v8136_v56, %v4022_v51  ;;  %v4392_v0 = vmul.f32 %v4030_v54, %v7526_v22 }
 0x2f5   : > { %v3943_v50 = vsel %vm545_vm2, %v8825_v45, %v8824_v58  ;;  %v8826_v2 = vmov %v8825_v45  ;;  %v8827_v57 = vmov %v8824_v58  ;;  %v4312_v47 = vadd.f32 %v4296_v41, %v4232_v38 }
 0x2f6   : > { %v3951_v11 = vsel %vm545_vm2, %v8827_v57, %v8826_v2  ;;  %v4023_v30 = vsel %vm630_vm3, %v8829_v23, %v8828_v6  ;;  %v3966_v4 = vmul.f32 %v3943_v50, %v7457_v7  ;;  %v8830_v10 = vmov %v8829_v23 }
 0x2f7   : > { %v3965_v33 = vmul.f32 %v3951_v11, %v7464_v39  ;;  %v8831_v14 = vmov %v8828_v6  ;;  %v4343_v48 = vadd.f32 %v4327_v32, %v4311_v63  ;;  %v4045_v26 = vmul.f32 %v4023_v30, %v7460_v60 }
 0x2f8   : > { %v4031_v8 = vsel %vm630_vm3, %v8831_v14, %v8830_v10  ;;  %v4344_v17 = vadd.f32 %v4328_v25, %v4312_v47  ;;  %v3998_v24 = vadd.f32 %v8117_v29, %v3966_v4  ;;  %v4218_v28 = vmul.f32 %v4030_v54, %v7512_v42 }
 0x2f9   : > { %v3997_v37 = vadd.f32 %v8084_v53, %v3965_v33  ;;  %v4046_v46 = vmul.f32 %v4031_v8, %v7471_v35  ;;  %v4407_v19 = vadd.f32 %v4391_v3, %v4343_v48  ;;  %v4137_v5 = vadd.f32 %v4121_v40, %v8232_v43 }
 0x2fa   : > { %v4138_v41 = vadd.f32 %v4122_v9, %v8234_v31  ;;  %v4408_v52 = vadd.f32 %v4392_v0, %v4344_v17  ;;  %v4123_v32 = vmul.f32 %v3951_v11, %v7507_v34  ;;  %v4124_v25 = vmul.f32 %v3943_v50, %v7482_v13 }
 0x2fb   : > { %v4061_v51 = vadd.f32 %v4045_v26, %v3997_v37  ;;  %v4062_v38 = vadd.f32 %v4046_v46, %v3998_v24  ;;  %v4169_v53 = vadd.f32 %v8104_v27, %v4137_v5  ;;  %v4219_v63 = vmul.f32 %v4023_v30, %v7485_v61  ;;  %v8840_v24 = vld [vmem:[#allocation35_spill] sm:$0xff] }
 0x2fc   : > { %v4170_v29 = vadd.f32 %v8162_v16, %v4138_v41  ;;  %v4420_v58 = vpack.c.bf16 %v4408_v52, %v4407_v19  ;;  %v4297_v54 = vmul.f32 %v3951_v11, %v7516_v62  ;;  %v4298_v43 = vmul.f32 %v3943_v50, %v7488_v21 }
 0x2fd   : > { %v4329_v31 = vmul.f32 %v7519_v44, %v8062_v20  ;;  %v4233_v40 = vadd.f32 %v4217_v1, %v4169_v53  ;;  %v4330_v45 = vmul.f32 %v7519_v44, %v8092_v59  ;;  %v8832_v2 = vrot.slane %v8179_v55, 7  ;;  %v8841_v53 = vld [vmem:[#allocation36_spill] sm:$0xff] }
 0x2fe   : > { %v4234_v9 = vadd.f32 %v4218_v28, %v4170_v29  ;;  %v8833_v27 = vrot.slane %v8156_v15, 7  ;;  %5245 = vmatmul.mubr.bf16.gmra.mrb[36].mxu0 %v4420_v58  ;;  %v8836_v11 = vrot.slane %v8179_v55, 1  ;;  %v8837_v59 = vrot.slane %v8156_v15, 1  ;;  %v8842_v29 = vld [vmem:[#allocation38_spill] sm:$0xff] }
 0x2ff   : > { %v8835_v50 = vmov %v8832_v2  ;;  %v4313_v4 = vadd.f32 %v4297_v54, %v4233_v40  ;;  %v4393_v14 = vmul.f32 %v8136_v56, %v4023_v30  ;;  %v4394_v48 = vmul.f32 %v4031_v8, %v7526_v22  ;;  %v8843_v40 = vld [vmem:[#allocation32_spill] sm:$0xff] }
 0x300   : > { %v3944_v16 = vsel %vm545_vm2, %v8833_v27, %v8832_v2  ;;  %v8834_v57 = vmov %v8833_v27  ;;  %v4024_v6 = vsel %vm630_vm3, %v8837_v59, %v8836_v11  ;;  %v8838_v23 = vmov %v8837_v59 }
 0x301   : > { %v3952_v20 = vsel %vm545_vm2, %v8835_v50, %v8834_v57  ;;  %v3968_v1 = vmul.f32 %v3944_v16, %v7457_v7  ;;  %v8839_v47 = vmov %v8836_v11  ;;  %v4314_v10 = vadd.f32 %v4298_v43, %v4234_v9 }
 0x302   : > { %v4032_v33 = vsel %vm630_vm3, %v8839_v47, %v8838_v23  ;;  %v3967_v7 = vmul.f32 %v3952_v20, %v7464_v39  ;;  %v4047_v0 = vmul.f32 %v4024_v6, %v7460_v60  ;;  %v4345_v17 = vadd.f32 %v4329_v31, %v4313_v4 }
 0x303   : > { %v4000_v3 = vadd.f32 %v8221_v18, %v3968_v1  ;;  %v4048_v26 = vmul.f32 %v4032_v33, %v7471_v35  ;;  %v4346_v37 = vadd.f32 %v4330_v45, %v4314_v10  ;;  %v4139_v28 = vadd.f32 %v4123_v32, %v8279_v12  ;;  %v8845_v45 = vld [vmem:[#allocation27_spill] sm:$0xff] }
 0x304   : > { %v3999_v46 = vadd.f32 %v8840_v24, %v3967_v7  ;;  %v4220_v19 = vmul.f32 %v4031_v8, %v7512_v42  ;;  %v4125_v30 = vmul.f32 %v3952_v20, %v7507_v34  ;;  %v4140_v39 = vadd.f32 %v4124_v25, %v8281_v49 }
 0x305   : > { %v4064_v5 = vadd.f32 %v4048_v26, %v4000_v3  ;;  %v4409_v41 = vadd.f32 %v4393_v14, %v4345_v17  ;;  %v4410_v52 = vadd.f32 %v4394_v48, %v4346_v37  ;;  %v4171_v60 = vadd.f32 %v8841_v53, %v4139_v28  ;;  %v8854_v26 = vld [vmem:[#allocation28_spill] sm:$0xff] }
 0x306   : > { %v4063_v18 = vadd.f32 %v4047_v0, %v3999_v46  ;;  %v4126_v35 = vmul.f32 %v3944_v16, %v7482_v13  ;;  %v4172_v58 = vadd.f32 %v8842_v29, %v4140_v39  ;;  %v4221_v54 = vmul.f32 %v4024_v6, %v7485_v61 }
 0x307   : > { %v4222_v12 = vmul.f32 %v4032_v33, %v7512_v42  ;;  %v4421_v32 = vpack.c.bf16 %v4410_v52, %v4409_v41  ;;  %v4235_v8 = vadd.f32 %v4219_v63, %v4171_v60  ;;  %v4299_v43 = vmul.f32 %v3952_v20, %v7516_v62  ;;  %v8855_v52 = vld [vmem:[#allocation19_spill] sm:$0xff] }
 0x308   : > { %v4300_v31 = vmul.f32 %v3944_v16, %v7488_v21  ;;  %v4236_v49 = vadd.f32 %v4220_v19, %v4172_v58  ;;  %v4331_v25 = vmul.f32 %v7519_v44, %v8156_v15  ;;  %v8844_v9 = vrot.slane %v8843_v40, 7  ;;  %v8857_v58 = vld [vmem:[#allocation44_spill] sm:$0xff] }
 0x309   : > { %v8846_v2 = vrot.slane %v8845_v45, 7  ;;  %5248 = vmatprep.mubr.bf16.mxu0 %v4421_v32  ;;  %v4315_v16 = vadd.f32 %v4299_v43, %v4235_v8  ;;  %v4332_v20 = vmul.f32 %v7519_v44, %v8179_v55  ;;  %v4395_v15 = vmul.f32 %v8136_v56, %v4024_v6  ;;  %v8858_v32 = vld [vmem:[#allocation43_spill] sm:$0xff] }
 0x30a   : > { %v8848_v50 = vmov %v8844_v9  ;;  %v4141_v1 = vadd.f32 %v4125_v30, %v4061_v51  ;;  %v4316_v11 = vadd.f32 %v4300_v31, %v4236_v49  ;;  %v4142_v59 = vadd.f32 %v4126_v35, %v4062_v38  ;;  %v8853_v38 = vld [vmem:[#allocation39_spill] sm:$0xff]  ;;  %v8856_v35 = vld [vmem:[#allocation30_spill] sm:$0xff] }
 0x30b   : > { %v4104_v27 = vsel %vm545_vm2, %v8846_v2, %v8844_v9  ;;  %v8847_v57 = vmov %v8846_v2  ;;  %v8849_v23 = vrot.slane %v8843_v40, 1  ;;  %v8850_v47 = vrot.slane %v8845_v45, 1  ;;  %v8860_v49 = vld [vmem:[#allocation22_spill] sm:$0xff] }
 0x30c   : > { %v4112_v63 = vsel %vm545_vm2, %v8848_v50, %v8847_v57  ;;  %v4347_v55 = vadd.f32 %v4331_v25, %v4315_v16  ;;  %v4396_v6 = vmul.f32 %v4032_v33, %v7526_v22  ;;  %v4173_v48 = vadd.f32 %v8853_v38, %v4141_v1  ;;  %v4666_v1 = vld [vmem:[#allocation2 + $0x10] sm:$0xff] }
 0x30d   : > { %v4200_v4 = vsel %vm630_vm3, %v8850_v47, %v8849_v23  ;;  %v8851_v10 = vmov %v8850_v47  ;;  %v8852_v14 = vmov %v8849_v23  ;;  %v4127_v51 = vmul.f32 %v4112_v63, %v7507_v34 }
 0x30e   : > { %v4208_v7 = vsel %vm630_vm3, %v8852_v14, %v8851_v10  ;;  %v4348_v3 = vadd.f32 %v4332_v20, %v4316_v11  ;;  %v4128_v0 = vmul.f32 %v4104_v27, %v7482_v13  ;;  %v4174_v17 = vadd.f32 %v8854_v26, %v4142_v59  ;;  %v4664_v59 = vld [vmem:[#allocation2] sm:$0xff] }
 0x30f   : > { %v4223_v37 = vmul.f32 %v4200_v4, %v7485_v61  ;;  %v4411_v24 = vadd.f32 %v4395_v15, %v4347_v55  ;;  %v4237_v46 = vadd.f32 %v4221_v54, %v4173_v48  ;;  %v4301_v28 = vmul.f32 %v4112_v63, %v7516_v62  ;;  %v8437_v15 = vld [vmem:[%s5597_s5 + $0x2] ss:$0 sm:$0xff] }
 0x310   : > { %v4302_v36 = vmul.f32 %v4104_v27, %v7488_v21  ;;  %v4412_v19 = vadd.f32 %v4396_v6, %v4348_v3  ;;  %v4238_v30 = vadd.f32 %v4222_v12, %v4174_v17  ;;  %v4143_v33 = vadd.f32 %v4127_v51, %v4063_v18  ;;  %v4670_v3 = vld [vmem:[#allocation2 + $0x30] sm:$0xff]  ;;  %v4668_v17 = vld [vmem:[#allocation2 + $0x20] sm:$0xff] }
 0x311   : > { %v4144_v39 = vadd.f32 %v4128_v0, %v4064_v5  ;;  %v4224_v34 = vmul.f32 %v4208_v7, %v7512_v42  ;;  %v4317_v41 = vadd.f32 %v4301_v28, %v4237_v46  ;;  %v4303_v13 = vmul.f32 %v7516_v62, %v8855_v52  ;;  %v8859_v42 = vld [vmem:[#allocation40_spill] sm:$0xff]  ;;  %v4671_v46 = vld [vmem:[#allocation2 + $0x38] sm:$0xff] }
 0x312   : > { %v4304_v53 = vmul.f32 %v7488_v21, %v8855_v52  ;;  %v4422_v61 = vpack.c.bf16 %v4412_v19, %v4411_v24  ;;  %v4318_v60 = vadd.f32 %v4302_v36, %v4238_v30  ;;  %v4175_v29 = vadd.f32 %v8856_v35, %v4143_v33  ;;  %v4669_v30 = vld [vmem:[#allocation2 + $0x28] sm:$0xff] }
 0x313   : > { %v4176_v54 = vadd.f32 %v8857_v58, %v4144_v39  ;;  %v4349_v8 = vadd.f32 %v8858_v32, %v4317_v41  ;;  %v4397_v18 = vmul.f32 %v8136_v56, %v4200_v4  ;;  %v4398_v5 = vmul.f32 %v4208_v7, %v7526_v22  ;;  %v4665_v7 = vld [vmem:[#allocation2 + $0x8] sm:$0xff]  ;;  %v4675_v58 = vld [vmem:[#allocation2 + $0x58] sm:$0xff] }
 0x314   : > { %5249 = vmatmul.mubr.bf16.gmra.mrb[40].mxu0 %v4422_v61  ;;  %v4350_v12 = vadd.f32 %v8859_v42, %v4318_v60  ;;  %v4239_v43 = vadd.f32 %v4223_v37, %v4175_v29  ;;  %v4335_v21 = vmul.f32 0.0, %v7519_v44  ;;  %v4399_v25 = vmul.f32 %v8136_v56, %v8860_v49  ;;  %v4672_v60 = vld [vmem:[#allocation2 + $0x40] sm:$0xff] }
 0x315   : > { %v4240_v62 = vadd.f32 %v4224_v34, %v4176_v54  ;;  %v4413_v31 = vadd.f32 %v4397_v18, %v4349_v8  ;;  %v4400_v2 = vmul.f32 %v7526_v22, %v8860_v49  ;;  %v4667_v22 = vld [vmem:[#allocation2 + $0x18] sm:$0xff]  ;;  %v4673_v18 = vld [vmem:[#allocation2 + $0x48] sm:$0xff] }
 0x316   : > { %v4414_v40 = vadd.f32 %v4398_v5, %v4350_v12  ;;  %v4319_v9 = vadd.f32 %v4303_v13, %v4239_v43  ;;  %v4674_v13 = vld [vmem:[#allocation2 + $0x50] sm:$0xff] }
 0x317   : > { %v4320_v45 = vadd.f32 %v4304_v53, %v4240_v62 }
 0x318   : > { %v4423_v27 = vpack.c.bf16 %v4414_v40, %v4413_v31  ;;  %v4351_v57 = vadd.f32 %v4335_v21, %v4319_v9 }
 0x319   : > { %v4352_v50 = vadd.f32 %v4335_v21, %v4320_v45  ;;  %v4678_v21 = vld [vmem:[#allocation2 + $0x70] sm:$0xff]  ;;  %v4679_v45 = vld [vmem:[#allocation2 + $0x78] sm:$0xff] }
 0x31a   : > { %5252 = vmatprep.mubr.bf16.mxu0 %v4423_v27  ;;  %v4415_v63 = vadd.f32 %v4399_v25, %v4351_v57  ;;  %v4676_v25 = vld [vmem:[#allocation2 + $0x60] sm:$0xff] }
 0x31b   : > { %v4416_v16 = vadd.f32 %v4400_v2, %v4352_v50  ;;  %v4677_v50 = vld [vmem:[#allocation2 + $0x68] sm:$0xff] }
 0x31d   : > { %v4424_v20 = vpack.c.bf16 %v4416_v16, %v4415_v63 }
 0x31f   : > { %5253 = vmatmul.mubr.bf16.gmra.mrb[44].mxu0 %v4424_v20 }
 0x333   : > { %v5226_v44 = vpop.f32.mrb[16].mxu0 }
 0x334   : > { %v4546_v56 = vadd.f32 %v5226_v44, %v8437_v15  ;;  %v4537_v11 = vpop.f32.mrb[17].mxu0 }
 0x335   : > { %v4538_v23 = vadd.f32 %v8437_v15, %v4537_v11  ;;  %v5227_v47 = vpop.f32.mrb[18].mxu0 }
 0x336   : > { %v4682_v4 = vadd.f32 %v4666_v1, %v4546_v56  ;;  %v4549_v10 = vadd.f32 %v5227_v47, %v8437_v15  ;;  %v4540_v14 = vpop.f32.mrb[19].mxu0  ;;  %v4714_v56 = vld [vmem:[#allocation2 + $0x90] sm:$0xff] }
 0x337   : > { %v4680_v55 = vadd.f32 %v4664_v59, %v4538_v23  ;;  %v4541_v6 = vadd.f32 %v8437_v15, %v4540_v14  ;;  %v4712_v23 = vld [vmem:[#allocation2 + $0x80] sm:$0xff] }
 0x338   : > { %4698 = vst [vmem:[#allocation2 + $0x10] sm:$0xff] %v4682_v4  ;;  %v4683_v51 = vadd.f32 %v4667_v22, %v4549_v10  ;;  %v4715_v4 = vld [vmem:[#allocation2 + $0x98] sm:$0xff] }
 0x339   : > { %4696 = vst [vmem:[#allocation2] sm:$0xff] %v4680_v55  ;;  %v4681_v38 = vadd.f32 %v4665_v7, %v4541_v6  ;;  %v4713_v55 = vld [vmem:[#allocation2 + $0x88] sm:$0xff] }
 0x33a   : > { %4699 = vst [vmem:[#allocation2 + $0x18] sm:$0xff] %v4683_v51 }
 0x33b   : > { %4697 = vst [vmem:[#allocation2 + $0x8] sm:$0xff] %v4681_v38 }
 0x366   : > { %v5230_v48 = vpop.f32.mrb[20].mxu0 }
 0x367   : > { %v4562_v0 = vadd.f32 %v5230_v48, %v8437_v15  ;;  %v4553_v26 = vpop.f32.mrb[21].mxu0 }
 0x368   : > { %v4554_v37 = vadd.f32 %v8437_v15, %v4553_v26  ;;  %v5231_v24 = vpop.f32.mrb[22].mxu0 }
 0x369   : > { %v4686_v28 = vadd.f32 %v4670_v3, %v4562_v0  ;;  %v4565_v36 = vadd.f32 %v5231_v24, %v8437_v15  ;;  %v4556_v19 = vpop.f32.mrb[23].mxu0  ;;  %v4718_v0 = vld [vmem:[#allocation2 + $0xb0] sm:$0xff] }
 0x36a   : > { %v4684_v33 = vadd.f32 %v4668_v17, %v4554_v37  ;;  %v4557_v39 = vadd.f32 %v8437_v15, %v4556_v19  ;;  %v4716_v37 = vld [vmem:[#allocation2 + $0xa0] sm:$0xff] }
 0x36b   : > { %4702 = vst [vmem:[#allocation2 + $0x30] sm:$0xff] %v4686_v28  ;;  %v4687_v34 = vadd.f32 %v4671_v46, %v4565_v36  ;;  %v4719_v28 = vld [vmem:[#allocation2 + $0xb8] sm:$0xff] }
 0x36c   : > { %4700 = vst [vmem:[#allocation2 + $0x20] sm:$0xff] %v4684_v33  ;;  %v4685_v41 = vadd.f32 %v4669_v30, %v4557_v39  ;;  %v4717_v33 = vld [vmem:[#allocation2 + $0xa8] sm:$0xff] }
 0x36d   : > { %4703 = vst [vmem:[#allocation2 + $0x38] sm:$0xff] %v4687_v34 }
 0x36e   : > { %4701 = vst [vmem:[#allocation2 + $0x28] sm:$0xff] %v4685_v41 }
 0x37f   : > { %v5234_v52 = vpop.f32.mrb[24].mxu0 }
 0x380   : > { %v4578_v53 = vadd.f32 %v5234_v52, %v8437_v15  ;;  %v4569_v61 = vpop.f32.mrb[25].mxu0 }
 0x381   : > { %v4570_v35 = vadd.f32 %v8437_v15, %v4569_v61  ;;  %v5235_v29 = vpop.f32.mrb[26].mxu0 }
 0x382   : > { %v4690_v54 = vadd.f32 %v4674_v13, %v4578_v53  ;;  %v4581_v32 = vadd.f32 %v5235_v29, %v8437_v15  ;;  %v4572_v8 = vpop.f32.mrb[27].mxu0  ;;  %v4722_v53 = vld [vmem:[#allocation2 + $0xd0] sm:$0xff] }
 0x383   : > { %v4688_v5 = vadd.f32 %v4672_v60, %v4570_v35  ;;  %v4573_v42 = vadd.f32 %v8437_v15, %v4572_v8  ;;  %v4720_v35 = vld [vmem:[#allocation2 + $0xc0] sm:$0xff] }
 0x384   : > { %4706 = vst [vmem:[#allocation2 + $0x50] sm:$0xff] %v4690_v54  ;;  %v4691_v12 = vadd.f32 %v4675_v58, %v4581_v32  ;;  %v4723_v54 = vld [vmem:[#allocation2 + $0xd8] sm:$0xff] }
 0x385   : > { %4704 = vst [vmem:[#allocation2 + $0x40] sm:$0xff] %v4688_v5  ;;  %v4689_v43 = vadd.f32 %v4673_v18, %v4573_v42  ;;  %v4721_v5 = vld [vmem:[#allocation2 + $0xc8] sm:$0xff] }
 0x386   : > { %4707 = vst [vmem:[#allocation2 + $0x58] sm:$0xff] %v4691_v12 }
 0x387   : > { %4705 = vst [vmem:[#allocation2 + $0x48] sm:$0xff] %v4689_v43 }
 0x391   : > { %v5238_v62 = vpop.f32.mrb[28].mxu0 }
 0x392   : > { %v4594_v31 = vadd.f32 %v5238_v62, %v8437_v15  ;;  %v4585_v49 = vpop.f32.mrb[29].mxu0 }
 0x393   : > { %v4586_v40 = vadd.f32 %v8437_v15, %v4585_v49  ;;  %v5239_v9 = vpop.f32.mrb[30].mxu0 }
 0x394   : > { %v4694_v2 = vadd.f32 %v4678_v21, %v4594_v31  ;;  %v4597_v27 = vadd.f32 %v5239_v9, %v8437_v15  ;;  %v4588_v57 = vpop.f32.mrb[31].mxu0  ;;  %v4726_v31 = vld [vmem:[#allocation2 + $0xf0] sm:$0xff] }
 0x395   : > { %v4692_v63 = vadd.f32 %v4676_v25, %v4586_v40  ;;  %v4589_v16 = vadd.f32 %v8437_v15, %v4588_v57  ;;  %v4724_v40 = vld [vmem:[#allocation2 + $0xe0] sm:$0xff] }
 0x396   : > { %4710 = vst [vmem:[#allocation2 + $0x70] sm:$0xff] %v4694_v2  ;;  %v4695_v20 = vadd.f32 %v4679_v45, %v4597_v27  ;;  %v4727_v2 = vld [vmem:[#allocation2 + $0xf8] sm:$0xff] }
 0x397   : > { %4708 = vst [vmem:[#allocation2 + $0x60] sm:$0xff] %v4692_v63  ;;  %v4693_v44 = vadd.f32 %v4677_v50, %v4589_v16  ;;  %v4725_v63 = vld [vmem:[#allocation2 + $0xe8] sm:$0xff] }
 0x398   : > { %4711 = vst [vmem:[#allocation2 + $0x78] sm:$0xff] %v4695_v20 }
 0x399   : > { %4709 = vst [vmem:[#allocation2 + $0x68] sm:$0xff] %v4693_v44 }
 0x3b9   : > { %v5242_v1 = vpop.f32.mrb[32].mxu0 }
 0x3ba   : > { %v4610_v11 = vadd.f32 %v5242_v1, %v8437_v15  ;;  %v4601_v59 = vpop.f32.mrb[33].mxu0 }
 0x3bb   : > { %v4602_v47 = vadd.f32 %v8437_v15, %v4601_v59  ;;  %v5243_v22 = vpop.f32.mrb[34].mxu0  ;;  %v4767_v59 = vld [vmem:[#allocation2 + $0x18] sm:$0xff] (!%p5032_p1) }
 0x3bc   : > { %v4730_v10 = vadd.f32 %v4714_v56, %v4610_v11  ;;  %v4613_v14 = vadd.f32 %v5243_v22, %v8437_v15  ;;  %v4604_v7 = vpop.f32.mrb[35].mxu0  ;;  %v4764_v56 = vld [vmem:[#allocation2] sm:$0xff] (!%p5032_p1)  ;;  %v4765_v11 = vld [vmem:[#allocation2 + $0x8] sm:$0xff] (!%p5032_p1)  ;;  %4799 = vst [vmem:[%s5599_s10 + $0x18] sm:$0xff] (!%p5032_p1), %v4767_v59  ;;  %v4770_v22 = vld [vmem:[#allocation2 + $0x30] sm:$0xff] (!%p5032_p1) }
 0x3bd   : > { %v4728_v6 = vadd.f32 %v4712_v23, %v4602_v47  ;;  %v4605_v51 = vadd.f32 %v8437_v15, %v4604_v7  ;;  %4796 = vst [vmem:[%s5599_s10] sm:$0xff] (!%p5032_p1), %v4764_v56  ;;  %4797 = vst [vmem:[%s5599_s10 + $0x8] sm:$0xff] (!%p5032_p1), %v4765_v11  ;;  %v4768_v23 = vld [vmem:[#allocation2 + $0x20] sm:$0xff] (!%p5032_p1)  ;;  %v4769_v47 = vld [vmem:[#allocation2 + $0x28] sm:$0xff] (!%p5032_p1) }
 0x3be   : > { %4746 = vst [vmem:[#allocation2 + $0x90] sm:$0xff] %v4730_v10  ;;  %v4731_v38 = vadd.f32 %v4715_v4, %v4613_v14  ;;  %4800 = vst [vmem:[%s5599_s10 + $0x20] sm:$0xff] (!%p5032_p1), %v4768_v23  ;;  %v4771_v4 = vld [vmem:[#allocation2 + $0x38] sm:$0xff] (!%p5032_p1)  ;;  %v4772_v10 = vld [vmem:[#allocation2 + $0x40] sm:$0xff] (!%p5032_p1) }
 0x3bf   : > { %4744 = vst [vmem:[#allocation2 + $0x80] sm:$0xff] %v4728_v6  ;;  %v4729_v48 = vadd.f32 %v4713_v55, %v4605_v51  ;;  %4801 = vst [vmem:[%s5599_s10 + $0x28] sm:$0xff] (!%p5032_p1), %v4769_v47  ;;  %v4773_v14 = vld [vmem:[#allocation2 + $0x48] sm:$0xff] (!%p5032_p1)  ;;  %v4774_v7 = vld [vmem:[#allocation2 + $0x50] sm:$0xff] (!%p5032_p1) }
 0x3c0   : > { %4747 = vst [vmem:[#allocation2 + $0x98] sm:$0xff] %v4731_v38  ;;  %4802 = vst [vmem:[%s5599_s10 + $0x30] sm:$0xff] (!%p5032_p1), %v4770_v22  ;;  %v4775_v55 = vld [vmem:[#allocation2 + $0x58] sm:$0xff] (!%p5032_p1)  ;;  %v4776_v6 = vld [vmem:[#allocation2 + $0x60] sm:$0xff] (!%p5032_p1) }
 0x3c1   : > { %4745 = vst [vmem:[#allocation2 + $0x88] sm:$0xff] %v4729_v48  ;;  %4803 = vst [vmem:[%s5599_s10 + $0x38] sm:$0xff] (!%p5032_p1), %v4771_v4  ;;  %v4777_v51 = vld [vmem:[#allocation2 + $0x68] sm:$0xff] (!%p5032_p1)  ;;  %v4778_v38 = vld [vmem:[#allocation2 + $0x70] sm:$0xff] (!%p5032_p1) }
 0x3c2   : > { %4804 = vst [vmem:[%s5599_s10 + $0x40] sm:$0xff] (!%p5032_p1), %v4772_v10  ;;  %4805 = vst [vmem:[%s5599_s10 + $0x48] sm:$0xff] (!%p5032_p1), %v4773_v14  ;;  %v4779_v48 = vld [vmem:[#allocation2 + $0x78] sm:$0xff] (!%p5032_p1) }
 0x3c3   : > { %4806 = vst [vmem:[%s5599_s10 + $0x50] sm:$0xff] (!%p5032_p1), %v4774_v7  ;;  %4807 = vst [vmem:[%s5599_s10 + $0x58] sm:$0xff] (!%p5032_p1), %v4775_v55 }
 0x3c4   : > { %4808 = vst [vmem:[%s5599_s10 + $0x60] sm:$0xff] (!%p5032_p1), %v4776_v6  ;;  %4809 = vst [vmem:[%s5599_s10 + $0x68] sm:$0xff] (!%p5032_p1), %v4777_v51 }
 0x3c5   : > { %4810 = vst [vmem:[%s5599_s10 + $0x70] sm:$0xff] (!%p5032_p1), %v4778_v38  ;;  %4811 = vst [vmem:[%s5599_s10 + $0x78] sm:$0xff] (!%p5032_p1), %v4779_v48 }
 0x3d1   : > { %v5246_v3 = vpop.f32.mrb[36].mxu0 }
 0x3d2   : > { %v4626_v26 = vadd.f32 %v5246_v3, %v8437_v15  ;;  %v4617_v17 = vpop.f32.mrb[37].mxu0  ;;  %v4780_v3 = vld [vmem:[#allocation2 + $0x80] sm:$0xff] (!%p5032_p1) }
 0x3d3   : > { %v4618_v24 = vadd.f32 %v8437_v15, %v4617_v17  ;;  %v5247_v46 = vpop.f32.mrb[38].mxu0  ;;  %4812 = vst [vmem:[%s5599_s10 + $0x80] sm:$0xff] (!%p5032_p1), %v4780_v3  ;;  %v4783_v17 = vld [vmem:[#allocation2 + $0x98] sm:$0xff] (!%p5032_p1) }
 0x3d4   : > { %v4734_v36 = vadd.f32 %v4718_v0, %v4626_v26  ;;  %v4629_v19 = vadd.f32 %v5247_v46, %v8437_v15  ;;  %v4620_v30 = vpop.f32.mrb[39].mxu0  ;;  %v4781_v0 = vld [vmem:[#allocation2 + $0x88] sm:$0xff] (!%p5032_p1)  ;;  %v4782_v26 = vld [vmem:[#allocation2 + $0x90] sm:$0xff] (!%p5032_p1)  ;;  %4815 = vst [vmem:[%s5599_s10 + $0x98] sm:$0xff] (!%p5032_p1), %v4783_v17 }
 0x3d5   : > { %v4732_v39 = vadd.f32 %v4716_v37, %v4618_v24  ;;  %v4621_v34 = vadd.f32 %v8437_v15, %v4620_v30  ;;  %4813 = vst [vmem:[%s5599_s10 + $0x88] sm:$0xff] (!%p5032_p1), %v4781_v0  ;;  %4814 = vst [vmem:[%s5599_s10 + $0x90] sm:$0xff] (!%p5032_p1), %v4782_v26 }
 0x3d6   : > { %4750 = vst [vmem:[#allocation2 + $0xb0] sm:$0xff] %v4734_v36  ;;  %v4735_v41 = vadd.f32 %v4719_v28, %v4629_v19 }
 0x3d7   : > { %4748 = vst [vmem:[#allocation2 + $0xa0] sm:$0xff] %v4732_v39  ;;  %v4733_v52 = vadd.f32 %v4717_v33, %v4621_v34 }
 0x3d8   : > { %4751 = vst [vmem:[#allocation2 + $0xb8] sm:$0xff] %v4735_v41 }
 0x3d9   : > { %4749 = vst [vmem:[#allocation2 + $0xa8] sm:$0xff] %v4733_v52 }
 0x3dd   : > { %v4786_v46 = vld [vmem:[#allocation2 + $0xb0] sm:$0xff] (!%p5032_p1) }
 0x3de   : > { %v4784_v37 = vld [vmem:[#allocation2 + $0xa0] sm:$0xff] (!%p5032_p1)  ;;  %4818 = vst [vmem:[%s5599_s10 + $0xb0] sm:$0xff] (!%p5032_p1), %v4786_v46 }
 0x3df   : > { %4816 = vst [vmem:[%s5599_s10 + $0xa0] sm:$0xff] (!%p5032_p1), %v4784_v37  ;;  %v4787_v28 = vld [vmem:[#allocation2 + $0xb8] sm:$0xff] (!%p5032_p1) }
 0x3e0   : > { %v4785_v24 = vld [vmem:[#allocation2 + $0xa8] sm:$0xff] (!%p5032_p1)  ;;  %4819 = vst [vmem:[%s5599_s10 + $0xb8] sm:$0xff] (!%p5032_p1), %v4787_v28 }
 0x3e1   : > { %4817 = vst [vmem:[%s5599_s10 + $0xa8] sm:$0xff] (!%p5032_p1), %v4785_v24 }
 0x3e7   : > { %v5250_v13 = vpop.f32.mrb[40].mxu0 }
 0x3e8   : > { %v4642_v61 = vadd.f32 %v5250_v13, %v8437_v15  ;;  %v4633_v60 = vpop.f32.mrb[41].mxu0 }
 0x3e9   : > { %v4634_v29 = vadd.f32 %v8437_v15, %v4633_v60  ;;  %v5251_v58 = vpop.f32.mrb[42].mxu0 }
 0x3ea   : > { %v4738_v32 = vadd.f32 %v4722_v53, %v4642_v61  ;;  %v4645_v8 = vadd.f32 %v5251_v58, %v8437_v15  ;;  %v4636_v18 = vpop.f32.mrb[43].mxu0 }
 0x3eb   : > { %v4736_v42 = vadd.f32 %v4720_v35, %v4634_v29  ;;  %v4637_v12 = vadd.f32 %v8437_v15, %v4636_v18 }
 0x3ec   : > { %4754 = vst [vmem:[#allocation2 + $0xd0] sm:$0xff] %v4738_v32  ;;  %v4739_v43 = vadd.f32 %v4723_v54, %v4645_v8 }
 0x3ed   : > { %4752 = vst [vmem:[#allocation2 + $0xc0] sm:$0xff] %v4736_v42  ;;  %v4737_v62 = vadd.f32 %v4721_v5, %v4637_v12 }
 0x3ee   : > { %4755 = vst [vmem:[#allocation2 + $0xd8] sm:$0xff] %v4739_v43 }
 0x3ef   : > { %4753 = vst [vmem:[#allocation2 + $0xc8] sm:$0xff] %v4737_v62 }
 0x3f2   : > { %v5254_v21 = vpop.f32.mrb[44].mxu0 }
 0x3f3   : > { %v4658_v49 = vadd.f32 %v5254_v21, %v8437_v15  ;;  %v4649_v25 = vpop.f32.mrb[45].mxu0  ;;  %v4790_v30 = vld [vmem:[#allocation2 + $0xd0] sm:$0xff] (!%p5032_p1) }
 0x3f4   : > { %v4650_v9 = vadd.f32 %v8437_v15, %v4649_v25  ;;  %v5255_v45 = vpop.f32.mrb[46].mxu0  ;;  %4763 = sbr.rel (%p5032_p1) target bundleno = 1027 (0x403), region = 44  ;;  %v4788_v36 = vld [vmem:[#allocation2 + $0xc0] sm:$0xff] (!%p5032_p1)  ;;  %4822 = vst [vmem:[%s5599_s10 + $0xd0] sm:$0xff] (!%p5032_p1), %v4790_v30 }
 0x3f5   : > { %v4742_v27 = vadd.f32 %v4726_v31, %v4658_v49  ;;  %v4661_v57 = vadd.f32 %v5255_v45, %v8437_v15  ;;  %v4652_v50 = vpop.f32.mrb[47].mxu0  ;;  %4820 = vst [vmem:[%s5599_s10 + $0xc0] sm:$0xff] (!%p5032_p1), %v4788_v36  ;;  %v4791_v33 = vld [vmem:[#allocation2 + $0xd8] sm:$0xff] (!%p5032_p1) }
 0x3f6   : > { %v4740_v16 = vadd.f32 %v4724_v40, %v4650_v9  ;;  %v4653_v20 = vadd.f32 %v8437_v15, %v4652_v50  ;;  %v4766_v15 = vld [vmem:[#allocation2 + $0x10] sm:$0xff] (!%p5032_p1)  ;;  %v4789_v19 = vld [vmem:[#allocation2 + $0xc8] sm:$0xff] (!%p5032_p1)  ;;  %4823 = vst [vmem:[%s5599_s10 + $0xd8] sm:$0xff] (!%p5032_p1), %v4791_v33 }
 0x3f7   : > { %4758 = vst [vmem:[#allocation2 + $0xf0] sm:$0xff] %v4742_v27  ;;  %v4743_v44 = vadd.f32 %v4727_v2, %v4661_v57  ;;  %4798 = vst [vmem:[%s5599_s10 + $0x10] sm:$0xff] (!%p5032_p1), %v4766_v15 }
 0x3f8   : > { %4756 = vst [vmem:[#allocation2 + $0xe0] sm:$0xff] %v4740_v16  ;;  %v4741_v1 = vadd.f32 %v4725_v63, %v4653_v20  ;;  %4821 = vst [vmem:[%s5599_s10 + $0xc8] sm:$0xff] (!%p5032_p1), %v4789_v19 }
 0x3f9   : > { %4759 = vst [vmem:[#allocation2 + $0xf8] sm:$0xff] %v4743_v44 }
 0x3fa   : > { %4757 = vst [vmem:[#allocation2 + $0xe8] sm:$0xff] %v4741_v1 }
 0x3fe   : > { %v4794_v41 = vld [vmem:[#allocation2 + $0xf0] sm:$0xff] }
 0x3ff   : > { %v4792_v39 = vld [vmem:[#allocation2 + $0xe0] sm:$0xff]  ;;  %4826 = vst [vmem:[%s5599_s10 + $0xf0] sm:$0xff] %v4794_v41 }
 0x400   : > { %4824 = vst [vmem:[%s5599_s10 + $0xe0] sm:$0xff] %v4792_v39  ;;  %v4795_v52 = vld [vmem:[#allocation2 + $0xf8] sm:$0xff] }
 0x401   : > { %v4793_v34 = vld [vmem:[#allocation2 + $0xe8] sm:$0xff]  ;;  %4827 = vst [vmem:[%s5599_s10 + $0xf8] sm:$0xff] %v4795_v52 }
 0x402   : > { %4825 = vst [vmem:[%s5599_s10 + $0xe8] sm:$0xff] %v4793_v34 }
 0x403 PF: > { %s5039_s18 = sshll.u32 %s5460_s19, 12  ;;  %s4842_s26 = sshll.u32 %s5599_s10, 4  ;;  %s8511_s26 = int_to_ptr.vmem [resolvable:$true] %s4842_s26 }
 0x404   : > { %s8508_s25 = scalar_lea.hbm %s8571_s4, %s5039_s18  ;;  %s8861_s5 = sand.u32 1, %s5448_s16  }
 0x405   : > { %s8515_s6 = scalar_lea.sflag [#allocation7], %s8861_s5  ;;  %s5378_s7 = scalar_lea.vmem %s8511_s26, 4096 }
 0x406   : > { %p5379_p2 = scmp.ne.s32.totalorder %s8511_s26, %s5378_s7  ;;  %s5475_s19 = smov [#allocation6]  }
 0x407   : > { %s5382_s9 = sshll.u32 %s5475_s19, 4  ;;  %s5383_s9 = int_to_ptr.vmem [resolvable:$false] %s5382_s9 }
 0x408   : > { %p5380_p4 = pnand %p5379_p2, %p5552_p3  ;;  %s5384_s11 = scalar_lea.vmem %s5383_s9, 8192 }
 0x409   : > { %p5385_p6 = scmp.lt.s32.totalorder %s8511_s26, %s5383_s9  ;;  %p5386_p7 = scmp.lt.s32.totalorder %s5384_s11, %s5378_s7 }
 0x40a   : > { %p5381_p5 = pneg %p5380_p4 }
 0x40b   : > { %p5387_p8 = por %p5386_p7, %p5385_p6 }
 0x40d   : > { %p5388_p10 = pnand %p5387_p8, %p5381_p5 }
 0x40f   : > { %5391 = shalt.err (!%p5388_p10)
}
 0x410   : > { %s5392_s12 = scalar_lea.hbm %s8508_s25, 4096  ;;  %s5396_s23 = scalar_lea.hbm %s8571_s4, 8192 }
 0x411   : > { %p5393_p11 = scmp.ne.s32.totalorder %s8508_s25, %s5392_s12  ;;  %p5397_p0 = scmp.lt.u32.totalorder %s8508_s25, %s8571_s4 }
 0x412   : > { %p5398_p1 = scmp.lt.u32.totalorder %s5396_s23, %s5392_s12  ;;  %p5400_p4 = scmp.lt.u32.totalorder %s5392_s12, %s8508_s25 }
 0x413   : > { %p5394_p12 = pnand %p5393_p11, %p5552_p3 }
 0x414   : > { %p5399_p2 = por %p5398_p1, %p5397_p0 }
 0x415   : > { %p5395_p13 = pneg %p5394_p12 }
 0x416   : > { %p5401_p5 = por %p5400_p4, %p5399_p2 }
 0x418   : > { %p5402_p6 = pnand %p5401_p5, %p5395_p13 }
 0x41a   : > { %5405 = shalt.err (!%p5402_p6)
}
 0x41b   : > { %s5476_s30 = smov 128   ;;  %s5477_s8 = smov 8  }
 0x41c   : > { %5275 = dma.vmem_to_hbm [thread:$0]  (%p5552_p3), %s8511_s26, 4096, %s8508_s25, %s8515_s6, %s5476_s30, %s5476_s30, %s5477_s8  }
 0x41d PF: > { %p5281_p7 = scmp.ge.s32.totalorder %s5472_s22, 2  ;;  %s4857_s10 = sand.u32 1, %s5444_s15  }
 0x41e   : > { %s4858_s18 = scalar_lea.sflag [#allocation7], %s4857_s10 }
 0x41f   : > { %p5278_p8 = pnand %p5281_p7, %p5562_p9 }
 0x421   : > { %5439 = dma.done.wait (!%p5278_p8), %s4858_s18, 4096  }
 0x422   : > { %5441 = vsyncadd (!%p5278_p8), %s4858_s18, 4294963200  ;;  %s17_s22 = sadd.s32 1, %s5472_s22   ;;  %s8862_s20 = sld [smem:[#allocation13_spill]] }
 0x423   : > { %p14_p10 = scmp.ge.s32.totalorder %s17_s22, 18   ;;  %s8863_s18 = sld [smem:[#allocation9_spill]] }
 0x424   : > { %s8864_s19 = sld [smem:[#allocation10_spill]]  ;;  %s8865_s27 = sld [smem:[#allocation11_spill]] }
 0x425   : > { %s8866_s21 = sld [smem:[#allocation12_spill]]  ;;  %s8867_s15 = smov %s5448_s16 }
 0x426   : > { %s8868_s16 = smov %s5452_s17  ;;  %16 = sbr.rel (!%p14_p10) target bundleno = 5 (0x5), region = 107 }
 0x428   : > { %s8869_s17 = smov %s8862_s20 }
 0x42a   : > { %s8870_s20 = smov %s8865_s27 }
 0x42d   :  { %4863 = vsyncpa [#allocation7], 1 }
 0x42e   :  { %4865 = vsyncpa [#allocation7 + $0x1], 1 }

</bundles_post_ra>
